<compile_context>
chip_gen: v7x
topology: tpu7x:2x2x1
jax: 0.10.0
libtpu: 0.0.40
codegen_flags: <defaults>
</compile_context>

<pallas_src>
import numpy as np

import jax
from jax import lax
import jax.numpy as jnp
from jax.experimental import pallas as pl
from jax.experimental.pallas import tpu as pltpu


def _make_tap_masks(H, W, NB):
    """(9, 1, NB*H*W) f32 border-validity masks for the 9 conv taps.

    mask[t, 0, b*P + y*W + x] == 1 iff (y+dy, x+dx) lies inside the image,
    where (dy, dx) = (t // 3 - 1, t % 3 - 1).  Identical pattern for every
    image packed into the lane axis.
    """
    P = H * W
    p = np.arange(P)
    y, x = p // W, p % W
    masks = np.zeros((9, 1, NB * P), np.float32)
    t = 0
    for dy in (-1, 0, 1):
        for dx in (-1, 0, 1):
            valid = ((y + dy >= 0) & (y + dy < H) &
                     (x + dx >= 0) & (x + dx < W)).astype(np.float32)
            masks[t, 0, :] = np.tile(valid, NB)
            t += 1
    return jnp.asarray(masks)


def _make_batch_seg(P, NB):
    """seg (NB, NB*P): 1 where a lane belongs to image b; poolT = seg.T / P."""
    L = NB * P
    seg = np.zeros((NB, L), np.float32)
    for b in range(NB):
        seg[b, b * P:(b + 1) * P] = 1.0
    pool_t = np.ascontiguousarray(seg.T) / np.float32(P)   # (L, NB)
    return jnp.asarray(seg), jnp.asarray(pool_t)


def se_basic_block(x_nchw, w1, s1, b1, w2, s2, b2, w_fc1, b_fc1, w_fc2, b_fc2,
                   batch_per_step=None):
    """SEBasicBlock forward (stride=1, inplanes==planes), BN in inference form.

    x_nchw: (N, C, H, W) f32
    w1, w2: (C, C, 3, 3) OIHW conv weights (bias-free, as in conv3x3()).
    s*, b*: (C,) folded BatchNorm scale / bias.
    w_fc1: (C//r, C), b_fc1: (C//r,), w_fc2: (C, C//r), b_fc2: (C,) SE weights.
    """
    N, C, H, W = x_nchw.shape
    P = H * W
    Cr = w_fc1.shape[0]

    if batch_per_step is None:
        # Fold as many images as possible into one lane-dense slab (widest MXU
        # lane dim, fewest grid steps).  On v7x (2 TCs) pass batch_per_step so
        # the grid length stays >= 2 and both cores get work.
        batch_per_step = 1
        for cand in range(1, N + 1):
            if N % cand == 0 and cand * P <= 2048:
                batch_per_step = cand
    NB = batch_per_step
    assert N % NB == 0, "batch_per_step must divide the batch size"
    L = NB * P
    G = N // NB

    f32, bf16 = jnp.float32, jnp.bfloat16

    # Lane-dense activations: (C, N*P); image b occupies lanes [b*P, (b+1)*P).
    xs = jnp.transpose(x_nchw.reshape(N, C, P).astype(f32),
                       (1, 0, 2)).reshape(C, N * P)

    masks = _make_tap_masks(H, W, NB)                      # (9, 1, L)
    seg, pool_t = _make_batch_seg(P, NB)                   # (NB, L), (L, NB)

    # Fused im2col conv weights: (C_out, 9*C_in), column index t*C_in + ci with
    # tap t = ky*3 + kx (cross-correlation, like nn.Conv2d).  bf16 MXU inputs.
    w1f = jnp.transpose(w1, (0, 2, 3, 1)).reshape(C, 9 * C).astype(bf16)
    w2f = jnp.transpose(w2, (0, 2, 3, 1)).reshape(C, 9 * C).astype(bf16)

    s1c = s1.reshape(C, 1).astype(f32)
    b1c = b1.reshape(C, 1).astype(f32)
    s2c = s2.reshape(C, 1).astype(f32)
    b2c = b2.reshape(C, 1).astype(f32)
    wf1 = w_fc1.astype(f32)                                # (Cr, C)
    bf1 = b_fc1.reshape(Cr, 1).astype(f32)
    wf2 = w_fc2.astype(f32)                                # (C, Cr)
    bf2 = b_fc2.reshape(C, 1).astype(f32)

    def kernel(x_ref, mask_ref, w1_ref, s1_ref, b1_ref, w2_ref, s2_ref, b2_ref,
               poolT_ref, seg_ref, wfc1_ref, bfc1_ref, wfc2_ref, bfc2_ref,
               out_ref):
        x = x_ref[...]                                     # (C, L) f32

        def conv3x3(v, w_flat_ref):
            # Padded 3x3 conv on a lane-dense (C, L) slab.  The 9 taps are
            # realized with pltpu.roll (XLU) + 0/1 border masks (VPU), stacked
            # into one (9*C, L) im2col slab, then contracted against the
            # (C, 9*C) weight in a single K=9*C MXU matmul (bf16 in, f32 acc).
            parts = []
            t = 0
            for dy in (-1, 0, 1):
                for dx in (-1, 0, 1):
                    shift = dy * W + dx
                    sh = v if shift == 0 else pltpu.roll(v, (-shift) % L, axis=1)
                    if dy != 0 or dx != 0:
                        sh = sh * mask_ref[t]              # zero the padded border
                    parts.append(sh.astype(bf16))
                    t += 1
            slab = jnp.concatenate(parts, axis=0)          # (9*C, L) bf16
            return jnp.dot(w_flat_ref[...], slab, preferred_element_type=f32)

        # ---- conv1 -> bn1 (folded scale/bias) -> relu ----
        h = conv3x3(x, w1_ref)
        h = jnp.maximum(h * s1_ref[...] + b1_ref[...], 0.0)

        # ---- conv2 -> bn2 ----
        o = conv3x3(h, w2_ref)
        o = o * s2_ref[...] + b2_ref[...]

        # ---- Squeeze-and-Excitation (per image in the lane-packed block) ----
        pooled = jnp.dot(o, poolT_ref[...], preferred_element_type=f32)       # (C, NB)
        z = jnp.dot(wfc1_ref[...], pooled, preferred_element_type=f32) + bfc1_ref[...]
        z = jnp.maximum(z, 0.0)                                                # (Cr, NB)
        g = jnp.dot(wfc2_ref[...], z, preferred_element_type=f32) + bfc2_ref[...]
        g = pl.reciprocal(1.0 + jnp.exp(-g), approx=True)                      # sigmoid (EUP)
        gate = jnp.dot(g, seg_ref[...], preferred_element_type=f32)            # (C, L)
        o = o * gate

        # ---- identity residual (stride == 1, inplanes == planes) + relu ----
        # TODO(synk): stride != 1 downsample (1x1 conv + BN) residual branch is
        # never taken by this stride=1 instance and is not implemented.
        out_ref[...] = jnp.maximum(o + x, 0.0).astype(out_ref.dtype)

    const2 = lambda g: (0, 0)
    const3 = lambda g: (0, 0, 0)

    conv_flops = 2 * (2 * C * (9 * C) * N * P)             # two K=9C MXU matmuls
    se_flops = N * (4 * C * P + 4 * C * Cr)                # GAP + gate + tiny FCs
    cost = pl.CostEstimate(
        flops=conv_flops + se_flops,
        transcendentals=2 * N * C,                         # exp + reciprocal
        bytes_accessed=(4 * 2 * N * C * P                  # x in + out (f32)
                        + 2 * 2 * 9 * C * C                # bf16 conv weights
                        + 4 * (9 * L + (NB + 1) * L + 6 * C + 2 * Cr + 2 * C * Cr)),
    )

    out = pl.pallas_call(
        kernel,
        out_shape=jax.ShapeDtypeStruct((C, N * P), f32),
        grid_spec=pltpu.PrefetchScalarGridSpec(
            num_scalar_prefetch=0,
            grid=(G,),
            in_specs=[
                pl.BlockSpec((C, L), lambda g: (0, g)),    # x slab (lane-dense)
                pl.BlockSpec((9, 1, L), const3),           # conv border masks
                pl.BlockSpec((C, 9 * C), const2),          # conv1 fused weight (bf16)
                pl.BlockSpec((C, 1), const2),              # bn1 scale
                pl.BlockSpec((C, 1), const2),              # bn1 bias
                pl.BlockSpec((C, 9 * C), const2),          # conv2 fused weight (bf16)
                pl.BlockSpec((C, 1), const2),              # bn2 scale
                pl.BlockSpec((C, 1), const2),              # bn2 bias
                pl.BlockSpec((L, NB), const2),             # per-image GAP matrix
                pl.BlockSpec((NB, L), const2),             # per-image gate broadcast
                pl.BlockSpec((Cr, C), const2),             # SE fc1 weight
                pl.BlockSpec((Cr, 1), const2),             # SE fc1 bias
                pl.BlockSpec((C, Cr), const2),             # SE fc2 weight
                pl.BlockSpec((C, 1), const2),              # SE fc2 bias
            ],
            out_specs=pl.BlockSpec((C, L), lambda g: (0, g)),
        ),
        compiler_params=pltpu.CompilerParams(
            dimension_semantics=("parallel",)),
        cost_estimate=cost,
    )(xs, masks, w1f, s1c, b1c, w2f, s2c, b2c, pool_t, seg, wf1, bf1, wf2, bf2)

    return jnp.transpose(out.reshape(C, N, P), (1, 0, 2)).reshape(N, C, H, W)


def reference_se_basic_block(x, w1, s1, b1, w2, s2, b2, wfc1, bfc1, wfc2, bfc2):
    """Pure-JAX reference (NCHW / OIHW, cross-correlation, matches nn.Conv2d)."""
    hp = lax.Precision.HIGHEST

    def conv(v, w):
        return lax.conv_general_dilated(
            v, w, window_strides=(1, 1), padding="SAME",
            dimension_numbers=("NCHW", "OIHW", "NCHW"), precision=hp)

    out = conv(x, w1)
    out = out * s1[None, :, None, None] + b1[None, :, None, None]
    out = jnp.maximum(out, 0.0)
    out = conv(out, w2)
    out = out * s2[None, :, None, None] + b2[None, :, None, None]
    # SE branch
    y = jnp.mean(out, axis=(2, 3))                                      # (N, C)
    z = jnp.maximum(jnp.dot(y, wfc1.T, precision=hp) + bfc1, 0.0)       # (N, C/r)
    g = 1.0 / (1.0 + jnp.exp(-(jnp.dot(z, wfc2.T, precision=hp) + bfc2)))  # (N, C)
    out = out * g[:, :, None, None]
    out = out + x                                                       # stride == 1
    return jnp.maximum(out, 0.0)


if __name__ == "__main__":
    # stride == 1, inplanes == planes == 32, reduction == 16 (default)
    N, C, H, W = 2, 32, 16, 16
    reduction = 16
    Cr = C // reduction
    eps = 1e-5

    key = jax.random.PRNGKey(0)
    ks = jax.random.split(key, 16)

    x = jax.random.normal(ks[0], (N, C, H, W), dtype=jnp.float32)

    # conv weights in OIHW (bias=False, like conv3x3()).
    w1 = 0.1 * jax.random.normal(ks[1], (C, C, 3, 3), dtype=jnp.float32)
    w2 = 0.1 * jax.random.normal(ks[2], (C, C, 3, 3), dtype=jnp.float32)

    # BatchNorm (inference): fold gamma/beta/running stats into scale + bias.
    g1 = jax.random.uniform(ks[3], (C,), minval=0.5, maxval=1.5)
    be1 = 0.1 * jax.random.normal(ks[4], (C,))
    m1 = 0.1 * jax.random.normal(ks[5], (C,))
    v1 = jax.random.uniform(ks[6], (C,), minval=0.5, maxval=1.5)
    g2 = jax.random.uniform(ks[7], (C,), minval=0.5, maxval=1.5)
    be2 = 0.1 * jax.random.normal(ks[8], (C,))
    m2 = 0.1 * jax.random.normal(ks[9], (C,))
    v2 = jax.random.uniform(ks[10], (C,), minval=0.5, maxval=1.5)
    s1 = g1 / jnp.sqrt(v1 + eps)
    b1 = be1 - m1 * s1
    s2 = g2 / jnp.sqrt(v2 + eps)
    b2 = be2 - m2 * s2

    # SE layer (nn.Linear weights, PyTorch (out_features, in_features) layout).
    w_fc1 = 0.5 * jax.random.normal(ks[11], (Cr, C), dtype=jnp.float32)
    b_fc1 = 0.1 * jax.random.normal(ks[12], (Cr,), dtype=jnp.float32)
    w_fc2 = 0.5 * jax.random.normal(ks[13], (C, Cr), dtype=jnp.float32)
    b_fc2 = 0.1 * jax.random.normal(ks[14], (C,), dtype=jnp.float32)

    out = se_basic_block(x, w1, s1, b1, w2, s2, b2, w_fc1, b_fc1, w_fc2, b_fc2)
    out = jax.block_until_ready(out)

    ref = reference_se_basic_block(x, w1, s1, b1, w2, s2, b2,
                                   w_fc1, b_fc1, w_fc2, b_fc2)
    ref = jax.block_until_ready(ref)

    assert out.shape == (N, C, H, W)
    err = float(jnp.max(jnp.abs(out - ref)))
    # bf16 MXU inputs (f32 accumulation) through two K=288 convolutions carry
    # ~2^-9 per-term rounding vs the Precision.HIGHEST reference; tolerance is
    # sized for that (typical max-abs error is well below this bound).
    assert jnp.allclose(out, ref, atol=5e-2, rtol=5e-3), f"max abs err = {err}"

    print("KERNEL_OK")
</pallas_src>

<mosaic_0001>
module attributes {stable_mosaic.version = 11 : i64} {
  func.func @kernel(%arg0: i32, %arg1: memref<32x512xf32, #tpu.memory_space<vmem>>, %arg2: memref<9x1x512xf32, #tpu.memory_space<vmem>>, %arg3: memref<32x288xbf16, #tpu.memory_space<vmem>>, %arg4: memref<32x1xf32, #tpu.memory_space<vmem>>, %arg5: memref<32x1xf32, #tpu.memory_space<vmem>>, %arg6: memref<32x288xbf16, #tpu.memory_space<vmem>>, %arg7: memref<32x1xf32, #tpu.memory_space<vmem>>, %arg8: memref<32x1xf32, #tpu.memory_space<vmem>>, %arg9: memref<512x2xf32, #tpu.memory_space<vmem>>, %arg10: memref<2x512xf32, #tpu.memory_space<vmem>>, %arg11: memref<2x32xf32, #tpu.memory_space<vmem>>, %arg12: memref<2x1xf32, #tpu.memory_space<vmem>>, %arg13: memref<32x2xf32, #tpu.memory_space<vmem>>, %arg14: memref<32x1xf32, #tpu.memory_space<vmem>>, %arg15: memref<32x512xf32, #tpu.memory_space<vmem>>) attributes {dimension_semantics = [#tpu.dimension_semantics<parallel>], iteration_bounds = array<i64: 1>, scalar_prefetch = 0 : i64, scratch_operands = 0 : i64, tpu.core_type = #tpu.core_type<tc>, window_params = [{transform_indices = @transform_0, window_bounds = array<i64: 32, 512>}, {pipeline_mode = #tpu.pipeline_mode<synchronous>, transform_indices = @transform_1, window_bounds = array<i64: 9, 1, 512>}, {pipeline_mode = #tpu.pipeline_mode<synchronous>, transform_indices = @transform_2, window_bounds = array<i64: 32, 288>}, {pipeline_mode = #tpu.pipeline_mode<synchronous>, transform_indices = @transform_3, window_bounds = array<i64: 32, 1>}, {pipeline_mode = #tpu.pipeline_mode<synchronous>, transform_indices = @transform_4, window_bounds = array<i64: 32, 1>}, {pipeline_mode = #tpu.pipeline_mode<synchronous>, transform_indices = @transform_5, window_bounds = array<i64: 32, 288>}, {pipeline_mode = #tpu.pipeline_mode<synchronous>, transform_indices = @transform_6, window_bounds = array<i64: 32, 1>}, {pipeline_mode = #tpu.pipeline_mode<synchronous>, transform_indices = @transform_7, window_bounds = array<i64: 32, 1>}, {pipeline_mode = #tpu.pipeline_mode<synchronous>, transform_indices = @transform_8, window_bounds = array<i64: 512, 2>}, {pipeline_mode = #tpu.pipeline_mode<synchronous>, transform_indices = @transform_9, window_bounds = array<i64: 2, 512>}, {pipeline_mode = #tpu.pipeline_mode<synchronous>, transform_indices = @transform_10, window_bounds = array<i64: 2, 32>}, {pipeline_mode = #tpu.pipeline_mode<synchronous>, transform_indices = @transform_11, window_bounds = array<i64: 2, 1>}, {pipeline_mode = #tpu.pipeline_mode<synchronous>, transform_indices = @transform_12, window_bounds = array<i64: 32, 2>}, {pipeline_mode = #tpu.pipeline_mode<synchronous>, transform_indices = @transform_13, window_bounds = array<i64: 32, 1>}, {transform_indices = @transform_14, window_bounds = array<i64: 32, 512>}]} {
    %c0 = arith.constant 0 : index
    %c0_0 = arith.constant 0 : index
    %0 = vector.load %arg1[%c0, %c0_0] : memref<32x512xf32, #tpu.memory_space<vmem>>, vector<32x512xf32>
    %c17_i32 = arith.constant 17 : i32
    %1 = tpu.dynamic_rotate %0 by %c17_i32 dim 1 : vector<32x512xf32>, i32 -> vector<32x512xf32>
    %c0_1 = arith.constant 0 : index
    %c0_2 = arith.constant 0 : index
    %c0_3 = arith.constant 0 : index
    %2 = vector.load %arg2[%c0_1, %c0_2, %c0_3] : memref<9x1x512xf32, #tpu.memory_space<vmem>>, vector<1x1x512xf32>
    %3 = vector.shape_cast %2 : vector<1x1x512xf32> to vector<1x512xf32>
    %4 = vector.broadcast %3 : vector<1x512xf32> to vector<32x512xf32>
    %5 = arith.mulf %1, %4 : vector<32x512xf32>
    %6 = arith.truncf %5 : vector<32x512xf32> to vector<32x512xbf16>
    %c16_i32 = arith.constant 16 : i32
    %7 = tpu.dynamic_rotate %0 by %c16_i32 dim 1 : vector<32x512xf32>, i32 -> vector<32x512xf32>
    %c1 = arith.constant 1 : index
    %c0_4 = arith.constant 0 : index
    %c0_5 = arith.constant 0 : index
    %8 = vector.load %arg2[%c1, %c0_4, %c0_5] : memref<9x1x512xf32, #tpu.memory_space<vmem>>, vector<1x1x512xf32>
    %9 = vector.shape_cast %8 : vector<1x1x512xf32> to vector<1x512xf32>
    %10 = vector.broadcast %9 : vector<1x512xf32> to vector<32x512xf32>
    %11 = arith.mulf %7, %10 : vector<32x512xf32>
    %12 = arith.truncf %11 : vector<32x512xf32> to vector<32x512xbf16>
    %c15_i32 = arith.constant 15 : i32
    %13 = tpu.dynamic_rotate %0 by %c15_i32 dim 1 : vector<32x512xf32>, i32 -> vector<32x512xf32>
    %c2 = arith.constant 2 : index
    %c0_6 = arith.constant 0 : index
    %c0_7 = arith.constant 0 : index
    %14 = vector.load %arg2[%c2, %c0_6, %c0_7] : memref<9x1x512xf32, #tpu.memory_space<vmem>>, vector<1x1x512xf32>
    %15 = vector.shape_cast %14 : vector<1x1x512xf32> to vector<1x512xf32>
    %16 = vector.broadcast %15 : vector<1x512xf32> to vector<32x512xf32>
    %17 = arith.mulf %13, %16 : vector<32x512xf32>
    %18 = arith.truncf %17 : vector<32x512xf32> to vector<32x512xbf16>
    %c1_i32 = arith.constant 1 : i32
    %19 = tpu.dynamic_rotate %0 by %c1_i32 dim 1 : vector<32x512xf32>, i32 -> vector<32x512xf32>
    %c3 = arith.constant 3 : index
    %c0_8 = arith.constant 0 : index
    %c0_9 = arith.constant 0 : index
    %20 = vector.load %arg2[%c3, %c0_8, %c0_9] : memref<9x1x512xf32, #tpu.memory_space<vmem>>, vector<1x1x512xf32>
    %21 = vector.shape_cast %20 : vector<1x1x512xf32> to vector<1x512xf32>
    %22 = vector.broadcast %21 : vector<1x512xf32> to vector<32x512xf32>
    %23 = arith.mulf %19, %22 : vector<32x512xf32>
    %24 = arith.truncf %23 : vector<32x512xf32> to vector<32x512xbf16>
    %25 = arith.truncf %0 : vector<32x512xf32> to vector<32x512xbf16>
    %c511_i32 = arith.constant 511 : i32
    %26 = tpu.dynamic_rotate %0 by %c511_i32 dim 1 : vector<32x512xf32>, i32 -> vector<32x512xf32>
    %c5 = arith.constant 5 : index
    %c0_10 = arith.constant 0 : index
    %c0_11 = arith.constant 0 : index
    %27 = vector.load %arg2[%c5, %c0_10, %c0_11] : memref<9x1x512xf32, #tpu.memory_space<vmem>>, vector<1x1x512xf32>
    %28 = vector.shape_cast %27 : vector<1x1x512xf32> to vector<1x512xf32>
    %29 = vector.broadcast %28 : vector<1x512xf32> to vector<32x512xf32>
    %30 = arith.mulf %26, %29 : vector<32x512xf32>
    %31 = arith.truncf %30 : vector<32x512xf32> to vector<32x512xbf16>
    %c497_i32 = arith.constant 497 : i32
    %32 = tpu.dynamic_rotate %0 by %c497_i32 dim 1 : vector<32x512xf32>, i32 -> vector<32x512xf32>
    %c6 = arith.constant 6 : index
    %c0_12 = arith.constant 0 : index
    %c0_13 = arith.constant 0 : index
    %33 = vector.load %arg2[%c6, %c0_12, %c0_13] : memref<9x1x512xf32, #tpu.memory_space<vmem>>, vector<1x1x512xf32>
    %34 = vector.shape_cast %33 : vector<1x1x512xf32> to vector<1x512xf32>
    %35 = vector.broadcast %34 : vector<1x512xf32> to vector<32x512xf32>
    %36 = arith.mulf %32, %35 : vector<32x512xf32>
    %37 = arith.truncf %36 : vector<32x512xf32> to vector<32x512xbf16>
    %c496_i32 = arith.constant 496 : i32
    %38 = tpu.dynamic_rotate %0 by %c496_i32 dim 1 : vector<32x512xf32>, i32 -> vector<32x512xf32>
    %c7 = arith.constant 7 : index
    %c0_14 = arith.constant 0 : index
    %c0_15 = arith.constant 0 : index
    %39 = vector.load %arg2[%c7, %c0_14, %c0_15] : memref<9x1x512xf32, #tpu.memory_space<vmem>>, vector<1x1x512xf32>
    %40 = vector.shape_cast %39 : vector<1x1x512xf32> to vector<1x512xf32>
    %41 = vector.broadcast %40 : vector<1x512xf32> to vector<32x512xf32>
    %42 = arith.mulf %38, %41 : vector<32x512xf32>
    %43 = arith.truncf %42 : vector<32x512xf32> to vector<32x512xbf16>
    %c495_i32 = arith.constant 495 : i32
    %44 = tpu.dynamic_rotate %0 by %c495_i32 dim 1 : vector<32x512xf32>, i32 -> vector<32x512xf32>
    %c8 = arith.constant 8 : index
    %c0_16 = arith.constant 0 : index
    %c0_17 = arith.constant 0 : index
    %45 = vector.load %arg2[%c8, %c0_16, %c0_17] : memref<9x1x512xf32, #tpu.memory_space<vmem>>, vector<1x1x512xf32>
    %46 = vector.shape_cast %45 : vector<1x1x512xf32> to vector<1x512xf32>
    %47 = vector.broadcast %46 : vector<1x512xf32> to vector<32x512xf32>
    %48 = arith.mulf %44, %47 : vector<32x512xf32>
    %49 = arith.truncf %48 : vector<32x512xf32> to vector<32x512xbf16>
    %50 = tpu.concatenate %6, %12, %18, %24, %25, %31, %37, %43, %49 in 0 : vector<32x512xbf16>, vector<32x512xbf16>, vector<32x512xbf16>, vector<32x512xbf16>, vector<32x512xbf16>, vector<32x512xbf16>, vector<32x512xbf16>, vector<32x512xbf16>, vector<32x512xbf16> -> vector<288x512xbf16>
    %c0_18 = arith.constant 0 : index
    %c0_19 = arith.constant 0 : index
    %51 = vector.load %arg3[%c0_18, %c0_19] : memref<32x288xbf16, #tpu.memory_space<vmem>>, vector<32x288xbf16>
    %cst = arith.constant dense<0.000000e+00> : vector<32x512xf32>
    %52 = tpu.matmul %51, %50, %cst {dimension_numbers = #tpu.dot_dimension_numbers<[1], [0], [0], [1], [0, 0, 1, 1], [], []>} : vector<32x288xbf16>, vector<288x512xbf16>, vector<32x512xf32> -> vector<32x512xf32>
    %c0_20 = arith.constant 0 : index
    %c0_21 = arith.constant 0 : index
    %53 = vector.load %arg4[%c0_20, %c0_21] : memref<32x1xf32, #tpu.memory_space<vmem>>, vector<32x1xf32>
    %54 = vector.broadcast %53 : vector<32x1xf32> to vector<32x512xf32>
    %55 = arith.mulf %52, %54 : vector<32x512xf32>
    %c0_22 = arith.constant 0 : index
    %c0_23 = arith.constant 0 : index
    %56 = vector.load %arg5[%c0_22, %c0_23] : memref<32x1xf32, #tpu.memory_space<vmem>>, vector<32x1xf32>
    %57 = vector.broadcast %56 : vector<32x1xf32> to vector<32x512xf32>
    %58 = arith.addf %55, %57 : vector<32x512xf32>
    %cst_24 = arith.constant 0.000000e+00 : f32
    %59 = vector.broadcast %cst_24 : f32 to vector<32x512xf32>
    %60 = arith.maximumf %58, %59 : vector<32x512xf32>
    %c17_i32_25 = arith.constant 17 : i32
    %61 = tpu.dynamic_rotate %60 by %c17_i32_25 dim 1 : vector<32x512xf32>, i32 -> vector<32x512xf32>
    %c0_26 = arith.constant 0 : index
    %c0_27 = arith.constant 0 : index
    %c0_28 = arith.constant 0 : index
    %62 = vector.load %arg2[%c0_26, %c0_27, %c0_28] : memref<9x1x512xf32, #tpu.memory_space<vmem>>, vector<1x1x512xf32>
    %63 = vector.shape_cast %62 : vector<1x1x512xf32> to vector<1x512xf32>
    %64 = vector.broadcast %63 : vector<1x512xf32> to vector<32x512xf32>
    %65 = arith.mulf %61, %64 : vector<32x512xf32>
    %66 = arith.truncf %65 : vector<32x512xf32> to vector<32x512xbf16>
    %c16_i32_29 = arith.constant 16 : i32
    %67 = tpu.dynamic_rotate %60 by %c16_i32_29 dim 1 : vector<32x512xf32>, i32 -> vector<32x512xf32>
    %c1_30 = arith.constant 1 : index
    %c0_31 = arith.constant 0 : index
    %c0_32 = arith.constant 0 : index
    %68 = vector.load %arg2[%c1_30, %c0_31, %c0_32] : memref<9x1x512xf32, #tpu.memory_space<vmem>>, vector<1x1x512xf32>
    %69 = vector.shape_cast %68 : vector<1x1x512xf32> to vector<1x512xf32>
    %70 = vector.broadcast %69 : vector<1x512xf32> to vector<32x512xf32>
    %71 = arith.mulf %67, %70 : vector<32x512xf32>
    %72 = arith.truncf %71 : vector<32x512xf32> to vector<32x512xbf16>
    %c15_i32_33 = arith.constant 15 : i32
    %73 = tpu.dynamic_rotate %60 by %c15_i32_33 dim 1 : vector<32x512xf32>, i32 -> vector<32x512xf32>
    %c2_34 = arith.constant 2 : index
    %c0_35 = arith.constant 0 : index
    %c0_36 = arith.constant 0 : index
    %74 = vector.load %arg2[%c2_34, %c0_35, %c0_36] : memref<9x1x512xf32, #tpu.memory_space<vmem>>, vector<1x1x512xf32>
    %75 = vector.shape_cast %74 : vector<1x1x512xf32> to vector<1x512xf32>
    %76 = vector.broadcast %75 : vector<1x512xf32> to vector<32x512xf32>
    %77 = arith.mulf %73, %76 : vector<32x512xf32>
    %78 = arith.truncf %77 : vector<32x512xf32> to vector<32x512xbf16>
    %c1_i32_37 = arith.constant 1 : i32
    %79 = tpu.dynamic_rotate %60 by %c1_i32_37 dim 1 : vector<32x512xf32>, i32 -> vector<32x512xf32>
    %c3_38 = arith.constant 3 : index
    %c0_39 = arith.constant 0 : index
    %c0_40 = arith.constant 0 : index
    %80 = vector.load %arg2[%c3_38, %c0_39, %c0_40] : memref<9x1x512xf32, #tpu.memory_space<vmem>>, vector<1x1x512xf32>
    %81 = vector.shape_cast %80 : vector<1x1x512xf32> to vector<1x512xf32>
    %82 = vector.broadcast %81 : vector<1x512xf32> to vector<32x512xf32>
    %83 = arith.mulf %79, %82 : vector<32x512xf32>
    %84 = arith.truncf %83 : vector<32x512xf32> to vector<32x512xbf16>
    %85 = arith.truncf %60 : vector<32x512xf32> to vector<32x512xbf16>
    %c511_i32_41 = arith.constant 511 : i32
    %86 = tpu.dynamic_rotate %60 by %c511_i32_41 dim 1 : vector<32x512xf32>, i32 -> vector<32x512xf32>
    %c5_42 = arith.constant 5 : index
    %c0_43 = arith.constant 0 : index
    %c0_44 = arith.constant 0 : index
    %87 = vector.load %arg2[%c5_42, %c0_43, %c0_44] : memref<9x1x512xf32, #tpu.memory_space<vmem>>, vector<1x1x512xf32>
    %88 = vector.shape_cast %87 : vector<1x1x512xf32> to vector<1x512xf32>
    %89 = vector.broadcast %88 : vector<1x512xf32> to vector<32x512xf32>
    %90 = arith.mulf %86, %89 : vector<32x512xf32>
    %91 = arith.truncf %90 : vector<32x512xf32> to vector<32x512xbf16>
    %c497_i32_45 = arith.constant 497 : i32
    %92 = tpu.dynamic_rotate %60 by %c497_i32_45 dim 1 : vector<32x512xf32>, i32 -> vector<32x512xf32>
    %c6_46 = arith.constant 6 : index
    %c0_47 = arith.constant 0 : index
    %c0_48 = arith.constant 0 : index
    %93 = vector.load %arg2[%c6_46, %c0_47, %c0_48] : memref<9x1x512xf32, #tpu.memory_space<vmem>>, vector<1x1x512xf32>
    %94 = vector.shape_cast %93 : vector<1x1x512xf32> to vector<1x512xf32>
    %95 = vector.broadcast %94 : vector<1x512xf32> to vector<32x512xf32>
    %96 = arith.mulf %92, %95 : vector<32x512xf32>
    %97 = arith.truncf %96 : vector<32x512xf32> to vector<32x512xbf16>
    %c496_i32_49 = arith.constant 496 : i32
    %98 = tpu.dynamic_rotate %60 by %c496_i32_49 dim 1 : vector<32x512xf32>, i32 -> vector<32x512xf32>
    %c7_50 = arith.constant 7 : index
    %c0_51 = arith.constant 0 : index
    %c0_52 = arith.constant 0 : index
    %99 = vector.load %arg2[%c7_50, %c0_51, %c0_52] : memref<9x1x512xf32, #tpu.memory_space<vmem>>, vector<1x1x512xf32>
    %100 = vector.shape_cast %99 : vector<1x1x512xf32> to vector<1x512xf32>
    %101 = vector.broadcast %100 : vector<1x512xf32> to vector<32x512xf32>
    %102 = arith.mulf %98, %101 : vector<32x512xf32>
    %103 = arith.truncf %102 : vector<32x512xf32> to vector<32x512xbf16>
    %c495_i32_53 = arith.constant 495 : i32
    %104 = tpu.dynamic_rotate %60 by %c495_i32_53 dim 1 : vector<32x512xf32>, i32 -> vector<32x512xf32>
    %c8_54 = arith.constant 8 : index
    %c0_55 = arith.constant 0 : index
    %c0_56 = arith.constant 0 : index
    %105 = vector.load %arg2[%c8_54, %c0_55, %c0_56] : memref<9x1x512xf32, #tpu.memory_space<vmem>>, vector<1x1x512xf32>
    %106 = vector.shape_cast %105 : vector<1x1x512xf32> to vector<1x512xf32>
    %107 = vector.broadcast %106 : vector<1x512xf32> to vector<32x512xf32>
    %108 = arith.mulf %104, %107 : vector<32x512xf32>
    %109 = arith.truncf %108 : vector<32x512xf32> to vector<32x512xbf16>
    %110 = tpu.concatenate %66, %72, %78, %84, %85, %91, %97, %103, %109 in 0 : vector<32x512xbf16>, vector<32x512xbf16>, vector<32x512xbf16>, vector<32x512xbf16>, vector<32x512xbf16>, vector<32x512xbf16>, vector<32x512xbf16>, vector<32x512xbf16>, vector<32x512xbf16> -> vector<288x512xbf16>
    %c0_57 = arith.constant 0 : index
    %c0_58 = arith.constant 0 : index
    %111 = vector.load %arg6[%c0_57, %c0_58] : memref<32x288xbf16, #tpu.memory_space<vmem>>, vector<32x288xbf16>
    %cst_59 = arith.constant dense<0.000000e+00> : vector<32x512xf32>
    %112 = tpu.matmul %111, %110, %cst_59 {dimension_numbers = #tpu.dot_dimension_numbers<[1], [0], [0], [1], [0, 0, 1, 1], [], []>} : vector<32x288xbf16>, vector<288x512xbf16>, vector<32x512xf32> -> vector<32x512xf32>
    %c0_60 = arith.constant 0 : index
    %c0_61 = arith.constant 0 : index
    %113 = vector.load %arg7[%c0_60, %c0_61] : memref<32x1xf32, #tpu.memory_space<vmem>>, vector<32x1xf32>
    %114 = vector.broadcast %113 : vector<32x1xf32> to vector<32x512xf32>
    %115 = arith.mulf %112, %114 : vector<32x512xf32>
    %c0_62 = arith.constant 0 : index
    %c0_63 = arith.constant 0 : index
    %116 = vector.load %arg8[%c0_62, %c0_63] : memref<32x1xf32, #tpu.memory_space<vmem>>, vector<32x1xf32>
    %117 = vector.broadcast %116 : vector<32x1xf32> to vector<32x512xf32>
    %118 = arith.addf %115, %117 : vector<32x512xf32>
    %c0_64 = arith.constant 0 : index
    %c0_65 = arith.constant 0 : index
    %119 = vector.load %arg9[%c0_64, %c0_65] : memref<512x2xf32, #tpu.memory_space<vmem>>, vector<512x2xf32>
    %cst_66 = arith.constant dense<0.000000e+00> : vector<32x2xf32>
    %120 = tpu.matmul %118, %119, %cst_66 {dimension_numbers = #tpu.dot_dimension_numbers<[1], [0], [0], [1], [0, 0, 1, 1], [], []>} : vector<32x512xf32>, vector<512x2xf32>, vector<32x2xf32> -> vector<32x2xf32>
    %c0_67 = arith.constant 0 : index
    %c0_68 = arith.constant 0 : index
    %121 = vector.load %arg11[%c0_67, %c0_68] : memref<2x32xf32, #tpu.memory_space<vmem>>, vector<2x32xf32>
    %cst_69 = arith.constant dense<0.000000e+00> : vector<2x2xf32>
    %122 = tpu.matmul %121, %120, %cst_69 {dimension_numbers = #tpu.dot_dimension_numbers<[1], [0], [0], [1], [0, 0, 1, 1], [], []>} : vector<2x32xf32>, vector<32x2xf32>, vector<2x2xf32> -> vector<2x2xf32>
    %c0_70 = arith.constant 0 : index
    %c0_71 = arith.constant 0 : index
    %123 = vector.load %arg12[%c0_70, %c0_71] : memref<2x1xf32, #tpu.memory_space<vmem>>, vector<2x1xf32>
    %124 = vector.broadcast %123 : vector<2x1xf32> to vector<2x2xf32>
    %125 = arith.addf %122, %124 : vector<2x2xf32>
    %cst_72 = arith.constant 0.000000e+00 : f32
    %126 = vector.broadcast %cst_72 : f32 to vector<2x2xf32>
    %127 = arith.maximumf %125, %126 : vector<2x2xf32>
    %c0_73 = arith.constant 0 : index
    %c0_74 = arith.constant 0 : index
    %128 = vector.load %arg13[%c0_73, %c0_74] : memref<32x2xf32, #tpu.memory_space<vmem>>, vector<32x2xf32>
    %cst_75 = arith.constant dense<0.000000e+00> : vector<32x2xf32>
    %129 = tpu.matmul %128, %127, %cst_75 {dimension_numbers = #tpu.dot_dimension_numbers<[1], [0], [0], [1], [0, 0, 1, 1], [], []>} : vector<32x2xf32>, vector<2x2xf32>, vector<32x2xf32> -> vector<32x2xf32>
    %c0_76 = arith.constant 0 : index
    %c0_77 = arith.constant 0 : index
    %130 = vector.load %arg14[%c0_76, %c0_77] : memref<32x1xf32, #tpu.memory_space<vmem>>, vector<32x1xf32>
    %131 = vector.broadcast %130 : vector<32x1xf32> to vector<32x2xf32>
    %132 = arith.addf %129, %131 : vector<32x2xf32>
    %cst_78 = arith.constant 0.000000e+00 : f32
    %133 = vector.broadcast %cst_78 : f32 to vector<32x2xf32>
    %134 = arith.subf %133, %132 : vector<32x2xf32>
    %135 = math.exp %134 : vector<32x2xf32>
    %cst_79 = arith.constant 1.000000e+00 : f32
    %136 = vector.broadcast %cst_79 : f32 to vector<32x2xf32>
    %137 = arith.addf %136, %135 : vector<32x2xf32>
    %138 = tpu.reciprocal %137 {approx = true} : vector<32x2xf32> -> vector<32x2xf32>
    %c0_80 = arith.constant 0 : index
    %c0_81 = arith.constant 0 : index
    %139 = vector.load %arg10[%c0_80, %c0_81] : memref<2x512xf32, #tpu.memory_space<vmem>>, vector<2x512xf32>
    %cst_82 = arith.constant dense<0.000000e+00> : vector<32x512xf32>
    %140 = tpu.matmul %138, %139, %cst_82 {dimension_numbers = #tpu.dot_dimension_numbers<[1], [0], [0], [1], [0, 0, 1, 1], [], []>} : vector<32x2xf32>, vector<2x512xf32>, vector<32x512xf32> -> vector<32x512xf32>
    %141 = arith.mulf %118, %140 : vector<32x512xf32>
    %142 = arith.addf %141, %0 : vector<32x512xf32>
    %cst_83 = arith.constant 0.000000e+00 : f32
    %143 = vector.broadcast %cst_83 : f32 to vector<32x512xf32>
    %144 = arith.maximumf %142, %143 : vector<32x512xf32>
    %c0_84 = arith.constant 0 : index
    %c0_85 = arith.constant 0 : index
    %145 = vector.load %arg15[%c0_84, %c0_85] : memref<32x512xf32, #tpu.memory_space<vmem>>, vector<32x512xf32>
    tpu.vector_store %arg15[%c0_84, %c0_85], %144 {strides = array<i32>} : memref<32x512xf32, #tpu.memory_space<vmem>>, vector<32x512xf32>,
    return
  }
  func.func @transform_0(%arg0: i32) -> (i32, i32) {
    %c0_i32 = arith.constant 0 : i32
    %c0_i32_0 = arith.constant 0 : i32
    return %c0_i32, %arg0 : i32, i32
  }
  func.func @transform_1(%arg0: i32) -> (i32, i32, i32) {
    %c0_i32 = arith.constant 0 : i32
    %c0_i32_0 = arith.constant 0 : i32
    %c0_i32_1 = arith.constant 0 : i32
    %c0_i32_2 = arith.constant 0 : i32
    return %c0_i32, %c0_i32_0, %c0_i32_1 : i32, i32, i32
  }
  func.func @transform_2(%arg0: i32) -> (i32, i32) {
    %c0_i32 = arith.constant 0 : i32
    %c0_i32_0 = arith.constant 0 : i32
    %c0_i32_1 = arith.constant 0 : i32
    return %c0_i32, %c0_i32_0 : i32, i32
  }
  func.func @transform_3(%arg0: i32) -> (i32, i32) {
    %c0_i32 = arith.constant 0 : i32
    %c0_i32_0 = arith.constant 0 : i32
    %c0_i32_1 = arith.constant 0 : i32
    return %c0_i32, %c0_i32_0 : i32, i32
  }
  func.func @transform_4(%arg0: i32) -> (i32, i32) {
    %c0_i32 = arith.constant 0 : i32
    %c0_i32_0 = arith.constant 0 : i32
    %c0_i32_1 = arith.constant 0 : i32
    return %c0_i32, %c0_i32_0 : i32, i32
  }
  func.func @transform_5(%arg0: i32) -> (i32, i32) {
    %c0_i32 = arith.constant 0 : i32
    %c0_i32_0 = arith.constant 0 : i32
    %c0_i32_1 = arith.constant 0 : i32
    return %c0_i32, %c0_i32_0 : i32, i32
  }
  func.func @transform_6(%arg0: i32) -> (i32, i32) {
    %c0_i32 = arith.constant 0 : i32
    %c0_i32_0 = arith.constant 0 : i32
    %c0_i32_1 = arith.constant 0 : i32
    return %c0_i32, %c0_i32_0 : i32, i32
  }
  func.func @transform_7(%arg0: i32) -> (i32, i32) {
    %c0_i32 = arith.constant 0 : i32
    %c0_i32_0 = arith.constant 0 : i32
    %c0_i32_1 = arith.constant 0 : i32
    return %c0_i32, %c0_i32_0 : i32, i32
  }
  func.func @transform_8(%arg0: i32) -> (i32, i32) {
    %c0_i32 = arith.constant 0 : i32
    %c0_i32_0 = arith.constant 0 : i32
    %c0_i32_1 = arith.constant 0 : i32
    return %c0_i32, %c0_i32_0 : i32, i32
  }
  func.func @transform_9(%arg0: i32) -> (i32, i32) {
    %c0_i32 = arith.constant 0 : i32
    %c0_i32_0 = arith.constant 0 : i32
    %c0_i32_1 = arith.constant 0 : i32
    return %c0_i32, %c0_i32_0 : i32, i32
  }
  func.func @transform_10(%arg0: i32) -> (i32, i32) {
    %c0_i32 = arith.constant 0 : i32
    %c0_i32_0 = arith.constant 0 : i32
    %c0_i32_1 = arith.constant 0 : i32
    return %c0_i32, %c0_i32_0 : i32, i32
  }
  func.func @transform_11(%arg0: i32) -> (i32, i32) {
    %c0_i32 = arith.constant 0 : i32
    %c0_i32_0 = arith.constant 0 : i32
    %c0_i32_1 = arith.constant 0 : i32
    return %c0_i32, %c0_i32_0 : i32, i32
  }
  func.func @transform_12(%arg0: i32) -> (i32, i32) {
    %c0_i32 = arith.constant 0 : i32
    %c0_i32_0 = arith.constant 0 : i32
    %c0_i32_1 = arith.constant 0 : i32
    return %c0_i32, %c0_i32_0 : i32, i32
  }
  func.func @transform_13(%arg0: i32) -> (i32, i32) {
    %c0_i32 = arith.constant 0 : i32
    %c0_i32_0 = arith.constant 0 : i32
    %c0_i32_1 = arith.constant 0 : i32
    return %c0_i32, %c0_i32_0 : i32, i32
  }
  func.func @transform_14(%arg0: i32) -> (i32, i32) {
    %c0_i32 = arith.constant 0 : i32
    %c0_i32_0 = arith.constant 0 : i32
    return %c0_i32, %arg0 : i32, i32
  }
}

</mosaic_0001>

<bundles_post_ra>
// kernel: tpu_custom_call.1
= control target key start
LH: loop header
LB: loop body
LE: loop exit
PB: predicated region body
PF: predicated region fallthrough
CT: control target
= control target key end

     0   :  { %s3232_s17 = smov 17   ;;  %s5685_s0 = inlined_call_operand.vmem [shape: f32[32,512], index: 0, kind: input, shape index: {}]   ;;  %s5686_s1 = inlined_call_operand.vmem [shape: f32[9,1,512], index: 1, kind: input, shape index: {}]   ;;  %s5687_s2 = inlined_call_operand.vmem [shape: bf16[32,288], index: 2, kind: input, shape index: {}]   ;;  %s5688_s3 = inlined_call_operand.vmem [shape: f32[32,1], index: 3, kind: input, shape index: {}]   ;;  %s5689_s4 = inlined_call_operand.vmem [shape: f32[32,1], index: 4, kind: input, shape index: {}]   ;;  %s5690_s5 = inlined_call_operand.vmem [shape: bf16[32,288], index: 5, kind: input, shape index: {}]   ;;  %s5691_s6 = inlined_call_operand.vmem [shape: f32[32,1], index: 6, kind: input, shape index: {}]   ;;  %s5692_s7 = inlined_call_operand.vmem [shape: f32[32,1], index: 7, kind: input, shape index: {}]   ;;  %s5693_s8 = inlined_call_operand.vmem [shape: f32[512,2], index: 8, kind: input, shape index: {}]   ;;  %s5694_s9 = inlined_call_operand.vmem [shape: f32[2,512], index: 9, kind: input, shape index: {}]   ;;  %s5695_s10 = inlined_call_operand.vmem [shape: f32[2,32], index: 10, kind: input, shape index: {}]   ;;  %s5696_s11 = inlined_call_operand.vmem [shape: f32[2,1], index: 11, kind: input, shape index: {}]   ;;  %s5697_s12 = inlined_call_operand.vmem [shape: f32[32,2], index: 12, kind: input, shape index: {}]   ;;  %s5698_s13 = inlined_call_operand.vmem [shape: f32[32,1], index: 13, kind: input, shape index: {}]   ;;  %s5699_s14 = inlined_call_operand.hbm [shape: f32[32,512], index: 14, kind: output, shape index: {}]  }
   0x1   :  { %v3326_v0 = vld [vmem:[%s5685_s0 + $0x8] sm:$0xff]  ;;  %v3331_v1 = vld [vmem:[%s5685_s0] sm:$0xff]  ;;  %v3354_v4 = vld [vmem:[%s5685_s0 + $0x30] sm:$0xff] }
   0x2   :  { %73 = vrot.lane.b32.xlu1 %v3326_v0, %s3232_s17  ;;  %65 = vrot.lane.b32.xlu0 %v3331_v1, %s3232_s17  ;;  %v3340_v2 = vld [vmem:[%s5685_s0 + $0x28] sm:$0xff]  ;;  %v3345_v3 = vld [vmem:[%s5685_s0 + $0x20] sm:$0xff] }
   0x3   :  { %v3359_v5 = vld [vmem:[%s5685_s0 + $0x10] sm:$0xff]  ;;  %v3364_v6 = vld [vmem:[%s5685_s0 + $0x38] sm:$0xff] }
   0x4   :  { %v3369_v7 = vld [vmem:[%s5685_s0 + $0x18] sm:$0xff] }
   0x6   :  { %75 = vrot.lane.b32.xlu1 %v3340_v2, %s3232_s17  ;;  %67 = vrot.lane.b32.xlu0 %v3345_v3, %s3232_s17 }
   0xa   :  { %83 = vrot.lane.b32.xlu1 %v3354_v4, %s3232_s17  ;;  %81 = vrot.lane.b32.xlu0 %v3359_v5, %s3232_s17 }
   0xb   :  { %19 = vsyncpa [#allocation3], 0  ;;  %v3382_v8 = vld [vmem:[%s5685_s0 + $0x60] sm:$0xff]  ;;  %v3396_v10 = vld [vmem:[%s5685_s0 + $0x68] sm:$0xff]  ;;  %s3233_s15 = smov 16   ;;  %s3234_s16 = smov 15   ;;  %v97_v16 = vlaneseq }
   0xc   :  { %v3387_v9 = vld [vmem:[%s5685_s0 + $0x40] sm:$0xff]  ;;  %v3401_v11 = vld [vmem:[%s5685_s0 + $0x48] sm:$0xff]  ;;  %v3410_v12 = vld [vmem:[%s5685_s0 + $0x70] sm:$0xff]  ;;  %s3235_s18 = smov 1   ;;  %s3236_s21 = smov 127   ;;  %vm880_vm8 = vcmask 261120  }
   0xd   :  { %v3415_v13 = vld [vmem:[%s5685_s0 + $0x50] sm:$0xff]  ;;  %v3424_v14 = vld [vmem:[%s5685_s0 + $0x78] sm:$0xff]  ;;  %v3515_v17 = vshrl.u32 %v97_v16, 7  ;;  %v3517_v18 = vand.u32 127, %v97_v16  ;;  %v116_v20 = vld [vmem:[%s5686_s1] sm:$0xf] }
   0xe   :  { %91 = vrot.lane.b32.xlu1 %v3364_v6, %s3232_s17  ;;  %89 = vrot.lane.b32.xlu0 %v3369_v7, %s3232_s17  ;;  %v3429_v15 = vld [vmem:[%s5685_s0 + $0x58] sm:$0xff]  ;;  %s3237_s24 = smov 113   ;;  %s3238_s27 = smov 112   ;;  %vm3242_vm9 = vmmov 0   ;;  %vm2458_vm10 = vcmask 15360   ;;  %vm2471_vm11 = vcmask 1041408  }
   0xf   :  { %5771 = vst [vmem:[#allocation5_spill] sm:$0xff] %v3515_v17  ;;  %v3524_v19 = vsub.s32 1, %v3515_v17  ;;  %vm99_vm0 = vcmp.lt.s32.totalorder %v3517_v18, 17  ;;  %v3540_v27 = vsub.s32 2, %v3515_v17  ;;  %v3551_v31 = vsub.s32 0, %v3515_v17  ;;  %s3239_s20 = smov 111  }
  0x10   :  { %v3554_v32 = vsub.s32 3, %v3515_v17  ;;  %vm194_vm1 = vcmp.lt.s32.totalorder %v3517_v18, 16  ;;  %vm290_vm2 = vcmp.lt.s32.totalorder %v3517_v18, 15  ;;  %vm386_vm3 = vcmp.lt.s32.totalorder %v3517_v18, 1 }
  0x11   :  { %v3535_v23 = vrot.slane %v116_v20, %v3524_v19  ;;  %v3557_v36 = vrot.slane %v116_v20, %v3540_v27  ;;  %v3568_v39 = vrot.slane %v116_v20, %v3551_v31  ;;  %vm490_vm4 = vcmp.lt.s32.totalorder %v3517_v18, 127 }
  0x12   :  { %71 = vrot.lane.b32.xlu1 %v3382_v8, %s3232_s17  ;;  %69 = vrot.lane.b32.xlu0 %v3387_v9, %s3232_s17  ;;  %v3571_v40 = vrot.slane %v116_v20, %v3554_v32  ;;  %vm586_vm5 = vcmp.lt.s32.totalorder %v3517_v18, 113  ;;  %vm682_vm6 = vcmp.lt.s32.totalorder %v3517_v18, 112  ;;  %vm778_vm7 = vcmp.lt.s32.totalorder %v3517_v18, 111 }
  0x16   :  { %79 = vrot.lane.b32.xlu1 %v3396_v10, %s3232_s17  ;;  %77 = vrot.lane.b32.xlu0 %v3401_v11, %s3232_s17 }
  0x1a   :  { %87 = vrot.lane.b32.xlu1 %v3410_v12, %s3232_s17  ;;  %85 = vrot.lane.b32.xlu0 %v3415_v13, %s3232_s17 }
  0x1e   :  { %95 = vrot.lane.b32.xlu1 %v3424_v14, %s3232_s17  ;;  %93 = vrot.lane.b32.xlu0 %v3429_v15, %s3232_s17 }
  0x22   :  { %164 = vrot.lane.b32.xlu1 %v3345_v3, %s3233_s15  ;;  %162 = vrot.lane.b32.xlu0 %v3331_v1, %s3233_s15 }
  0x26   :  { %172 = vrot.lane.b32.xlu1 %v3340_v2, %s3233_s15  ;;  %170 = vrot.lane.b32.xlu0 %v3326_v0, %s3233_s15 }
  0x2a   :  { %180 = vrot.lane.b32.xlu1 %v3354_v4, %s3233_s15  ;;  %178 = vrot.lane.b32.xlu0 %v3359_v5, %s3233_s15 }
  0x2e   :  { %188 = vrot.lane.b32.xlu1 %v3364_v6, %s3233_s15  ;;  %186 = vrot.lane.b32.xlu0 %v3369_v7, %s3233_s15 }
  0x32   :  { %168 = vrot.lane.b32.xlu1 %v3382_v8, %s3233_s15  ;;  %166 = vrot.lane.b32.xlu0 %v3387_v9, %s3233_s15 }
  0x36   :  { %176 = vrot.lane.b32.xlu1 %v3396_v10, %s3233_s15  ;;  %174 = vrot.lane.b32.xlu0 %v3401_v11, %s3233_s15 }
  0x3a   :  { %184 = vrot.lane.b32.xlu1 %v3410_v12, %s3233_s15  ;;  %182 = vrot.lane.b32.xlu0 %v3415_v13, %s3233_s15 }
  0x3e   :  { %192 = vrot.lane.b32.xlu1 %v3424_v14, %s3233_s15  ;;  %190 = vrot.lane.b32.xlu0 %v3429_v15, %s3233_s15 }
  0x42   :  { %260 = vrot.lane.b32.xlu1 %v3345_v3, %s3234_s16  ;;  %258 = vrot.lane.b32.xlu0 %v3331_v1, %s3234_s16 }
  0x46   :  { %268 = vrot.lane.b32.xlu1 %v3340_v2, %s3234_s16  ;;  %266 = vrot.lane.b32.xlu0 %v3326_v0, %s3234_s16 }
  0x4a   :  { %276 = vrot.lane.b32.xlu1 %v3354_v4, %s3234_s16  ;;  %274 = vrot.lane.b32.xlu0 %v3359_v5, %s3234_s16 }
  0x4e   :  { %284 = vrot.lane.b32.xlu1 %v3364_v6, %s3234_s16  ;;  %282 = vrot.lane.b32.xlu0 %v3369_v7, %s3234_s16 }
  0x52   :  { %264 = vrot.lane.b32.xlu1 %v3382_v8, %s3234_s16  ;;  %262 = vrot.lane.b32.xlu0 %v3387_v9, %s3234_s16 }
  0x56   :  { %272 = vrot.lane.b32.xlu1 %v3396_v10, %s3234_s16  ;;  %270 = vrot.lane.b32.xlu0 %v3401_v11, %s3234_s16 }
  0x5a   :  { %280 = vrot.lane.b32.xlu1 %v3410_v12, %s3234_s16  ;;  %278 = vrot.lane.b32.xlu0 %v3415_v13, %s3234_s16 }
  0x5e   :  { %288 = vrot.lane.b32.xlu1 %v3424_v14, %s3234_s16  ;;  %286 = vrot.lane.b32.xlu0 %v3429_v15, %s3234_s16 }
  0x62   :  { %356 = vrot.lane.b32.xlu1 %v3345_v3, %s3235_s18  ;;  %354 = vrot.lane.b32.xlu0 %v3331_v1, %s3235_s18 }
  0x66   :  { %364 = vrot.lane.b32.xlu1 %v3340_v2, %s3235_s18  ;;  %362 = vrot.lane.b32.xlu0 %v3326_v0, %s3235_s18 }
  0x6a   :  { %372 = vrot.lane.b32.xlu1 %v3354_v4, %s3235_s18  ;;  %370 = vrot.lane.b32.xlu0 %v3359_v5, %s3235_s18 }
  0x6e   :  { %380 = vrot.lane.b32.xlu1 %v3364_v6, %s3235_s18  ;;  %378 = vrot.lane.b32.xlu0 %v3369_v7, %s3235_s18 }
  0x72   :  { %360 = vrot.lane.b32.xlu1 %v3382_v8, %s3235_s18  ;;  %358 = vrot.lane.b32.xlu0 %v3387_v9, %s3235_s18 }
  0x74   :  { %v74_v21 = vpop.permute.xlu1 %73  ;;  %v66_v22 = vpop.permute.xlu0 %65 }
  0x75   :  { %v108_v24 = vsel %vm99_vm0, %v66_v22, %v74_v21 }
  0x76   :  { %368 = vrot.lane.b32.xlu1 %v3396_v10, %s3235_s18  ;;  %366 = vrot.lane.b32.xlu0 %v3401_v11, %s3235_s18  ;;  %v139_v29 = vmul.f32 %v3535_v23, %v108_v24 }
  0x78   :  { %v76_v25 = vpop.permute.xlu1 %75  ;;  %v68_v26 = vpop.permute.xlu0 %67 }
  0x79   :  { %v109_v28 = vsel %vm99_vm0, %v68_v26, %v76_v25 }
  0x7a   :  { %376 = vrot.lane.b32.xlu1 %v3410_v12, %s3235_s18  ;;  %374 = vrot.lane.b32.xlu0 %v3415_v13, %s3235_s18  ;;  %v143_v30 = vmul.f32 %v3535_v23, %v109_v28 }
  0x7c   :  { %v84_v33 = vpop.permute.xlu1 %83  ;;  %v82_v34 = vpop.permute.xlu0 %81  ;;  %v155_v35 = vpack.c.bf16 %v143_v30, %v139_v29 }
  0x7d   :  { %v105_v37 = vsel %vm99_vm0, %v76_v25, %v84_v33  ;;  %v104_v38 = vsel %vm99_vm0, %v74_v21, %v82_v34 }
  0x7e   :  { %384 = vrot.lane.b32.xlu1 %v3424_v14, %s3235_s18  ;;  %382 = vrot.lane.b32.xlu0 %v3429_v15, %s3235_s18  ;;  %v140_v43 = vmul.f32 %v3557_v36, %v104_v38  ;;  %v144_v44 = vmul.f32 %v3557_v36, %v105_v37 }
  0x7f   :  { %887 = vmatprep.subr.bf16.mxu0 %v155_v35 }
  0x80   :  { %v92_v41 = vpop.permute.xlu1 %91  ;;  %v90_v42 = vpop.permute.xlu0 %89  ;;  %v156_v57 = vpack.c.bf16 %v144_v44, %v140_v43  ;;  %v2877_v43 = vld [vmem:[%s5686_s1 + $0x4] sm:$0xf] }
  0x81   :  { %v113_v45 = vsel %vm99_vm0, %v92_v41, %v68_v26  ;;  %v112_v46 = vsel %vm99_vm0, %v90_v42, %v66_v22  ;;  %v100_v47 = vsel %vm99_vm0, %v82_v34, %v90_v42  ;;  %v101_v48 = vsel %vm99_vm0, %v84_v33, %v92_v41 }
  0x82   :  { %460 = vrot.lane.b32.xlu1 %v3345_v3, %s3236_s21  ;;  %458 = vrot.lane.b32.xlu0 %v3331_v1, %s3236_s21  ;;  %v138_v49 = vmul.f32 %v3568_v39, %v112_v46  ;;  %v142_v50 = vmul.f32 %v3568_v39, %v113_v45  ;;  %v141_v51 = vmul.f32 %v3571_v40, %v100_v47 }
  0x83   :  { %v145_v52 = vmul.f32 %v3571_v40, %v101_v48 }
  0x84   :  { %v72_v53 = vpop.permute.xlu1 %71  ;;  %v70_v54 = vpop.permute.xlu0 %69  ;;  %v154_v55 = vpack.c.bf16 %v142_v50, %v138_v49  ;;  %v3638_v49 = vrot.slane %v2877_v43, %v3524_v19 }
  0x85   :  { %v157_v56 = vpack.c.bf16 %v145_v52, %v141_v51 }
  0x86   :  { %468 = vrot.lane.b32.xlu1 %v3340_v2, %s3236_s21  ;;  %466 = vrot.lane.b32.xlu0 %v3326_v0, %s3236_s21 }
  0x87   :  { %888 = vmatpush1.bf16.msra.mxu0 %v154_v55  ;;  %993 = vmatprep.subr.bf16.mxu1 %v157_v56  ;;  %v3653_v56 = vrot.slane %v2877_v43, %v3540_v27 }
  0x88   :  { %994 = vmatpush1.bf16.msra.mxu1 %v156_v57  ;;  %v80_v58 = vpop.permute.xlu1 %79  ;;  %v78_v59 = vpop.permute.xlu0 %77 }
  0x89   :  { %v111_v60 = vsel %vm99_vm0, %v72_v53, %v80_v58  ;;  %v110_v61 = vsel %vm99_vm0, %v70_v54, %v78_v59 }
  0x8a   :  { %v151_v62 = vmul.f32 %v3535_v23, %v111_v60  ;;  %v147_v63 = vmul.f32 %v3535_v23, %v110_v61  ;;  %476 = vrot.lane.b32.xlu1 %v3354_v4, %s3236_s21  ;;  %474 = vrot.lane.b32.xlu0 %v3359_v5, %s3236_s21 }
  0x8c   :  { %v88_v16 = vpop.permute.xlu1 %87  ;;  %v86_v20 = vpop.permute.xlu0 %85  ;;  %v159_v21 = vpack.c.bf16 %v151_v62, %v147_v63  ;;  %v3662_v62 = vrot.slane %v2877_v43, %v3551_v31  ;;  %v3665_v63 = vrot.slane %v2877_v43, %v3554_v32 }
  0x8d   :  { %v107_v22 = vsel %vm99_vm0, %v80_v58, %v88_v16  ;;  %v106_v24 = vsel %vm99_vm0, %v78_v59, %v86_v20 }
  0x8e   :  { %484 = vrot.lane.b32.xlu1 %v3364_v6, %s3236_s21  ;;  %482 = vrot.lane.b32.xlu0 %v3369_v7, %s3236_s21  ;;  %v152_v25 = vmul.f32 %v3557_v36, %v107_v22  ;;  %v148_v26 = vmul.f32 %v3557_v36, %v106_v24 }
  0x8f   :  { %889 = vmatprep.subr.bf16.mxu0 %v159_v21 }
  0x90   :  { %v96_v28 = vpop.permute.xlu1 %95  ;;  %v94_v29 = vpop.permute.xlu0 %93  ;;  %v160_v48 = vpack.c.bf16 %v152_v25, %v148_v26 }
  0x91   :  { %v103_v30 = vsel %vm99_vm0, %v88_v16, %v96_v28  ;;  %v115_v33 = vsel %vm99_vm0, %v96_v28, %v72_v53  ;;  %v102_v34 = vsel %vm99_vm0, %v86_v20, %v94_v29  ;;  %v114_v35 = vsel %vm99_vm0, %v94_v29, %v70_v54 }
  0x92   :  { %v150_v37 = vmul.f32 %v3568_v39, %v115_v33  ;;  %v153_v38 = vmul.f32 %v3571_v40, %v103_v30  ;;  %v146_v41 = vmul.f32 %v3568_v39, %v114_v35  ;;  %v149_v42 = vmul.f32 %v3571_v40, %v102_v34  ;;  %464 = vrot.lane.b32.xlu1 %v3382_v8, %s3236_s21 }
  0x93   :  { %462 = vrot.lane.b32.xlu0 %v3387_v9, %s3236_s21 }
  0x94   :  { %v165_v44 = vpop.permute.xlu1 %164  ;;  %v163_v45 = vpop.permute.xlu0 %162  ;;  %v158_v46 = vpack.c.bf16 %v150_v37, %v146_v41  ;;  %v161_v47 = vpack.c.bf16 %v153_v38, %v149_v42 }
  0x96   :  { %472 = vrot.lane.b32.xlu1 %v3396_v10, %s3236_s21  ;;  %890 = vmatpush1.bf16.msra.mxu0 %v158_v46 }
  0x97   :  { %470 = vrot.lane.b32.xlu0 %v3401_v11, %s3236_s21  ;;  %995 = vmatprep.subr.bf16.mxu1 %v161_v47 }
  0x98   :  { %996 = vmatpush1.bf16.msra.mxu1 %v160_v48  ;;  %v173_v50 = vpop.permute.xlu1 %172  ;;  %v171_v51 = vpop.permute.xlu0 %170 }
  0x99   :  { %v204_v52 = vsel %vm194_vm1, %v165_v44, %v173_v50  ;;  %v203_v53 = vsel %vm194_vm1, %v163_v45, %v171_v51 }
  0x9a   :  { %v239_v54 = vmul.f32 %v3638_v49, %v204_v52  ;;  %v235_v55 = vmul.f32 %v3638_v49, %v203_v53  ;;  %480 = vrot.lane.b32.xlu1 %v3410_v12, %s3236_s21 }
  0x9b   :  { %478 = vrot.lane.b32.xlu0 %v3415_v13, %s3236_s21 }
  0x9c   :  { %v181_v57 = vpop.permute.xlu1 %180  ;;  %v179_v58 = vpop.permute.xlu0 %178  ;;  %v251_v59 = vpack.c.bf16 %v239_v54, %v235_v55 }
  0x9d   :  { %v200_v60 = vsel %vm194_vm1, %v173_v50, %v181_v57  ;;  %v199_v61 = vsel %vm194_vm1, %v171_v51, %v179_v58 }
  0x9e   :  { %488 = vrot.lane.b32.xlu1 %v3424_v14, %s3236_s21  ;;  %891 = vmatprep.subr.bf16.mxu0 %v251_v59  ;;  %v240_v16 = vmul.f32 %v3653_v56, %v200_v60  ;;  %v236_v20 = vmul.f32 %v3653_v56, %v199_v61 }
  0x9f   :  { %486 = vrot.lane.b32.xlu0 %v3429_v15, %s3236_s21 }
  0xa0   :  { %v189_v21 = vpop.permute.xlu1 %188  ;;  %v187_v22 = vpop.permute.xlu0 %186  ;;  %v252_v42 = vpack.c.bf16 %v240_v16, %v236_v20 }
  0xa1   :  { %v196_v24 = vsel %vm194_vm1, %v181_v57, %v189_v21  ;;  %v208_v25 = vsel %vm194_vm1, %v189_v21, %v165_v44  ;;  %v195_v26 = vsel %vm194_vm1, %v179_v58, %v187_v22  ;;  %v207_v28 = vsel %vm194_vm1, %v187_v22, %v163_v45 }
  0xa2   :  { %v238_v29 = vmul.f32 %v3662_v62, %v208_v25  ;;  %v241_v30 = vmul.f32 %v3665_v63, %v196_v24  ;;  %v234_v33 = vmul.f32 %v3662_v62, %v207_v28  ;;  %v237_v34 = vmul.f32 %v3665_v63, %v195_v26  ;;  %556 = vrot.lane.b32.xlu1 %v3345_v3, %s3237_s24  ;;  %v2878_v26 = vld [vmem:[%s5686_s1 + $0x8] sm:$0xf] }
  0xa3   :  { %554 = vrot.lane.b32.xlu0 %v3331_v1, %s3237_s24 }
  0xa4   :  { %v169_v35 = vpop.permute.xlu1 %168  ;;  %v167_v37 = vpop.permute.xlu0 %166  ;;  %v250_v38 = vpack.c.bf16 %v238_v29, %v234_v33  ;;  %v253_v41 = vpack.c.bf16 %v241_v30, %v237_v34 }
  0xa6   :  { %564 = vrot.lane.b32.xlu1 %v3340_v2, %s3237_s24  ;;  %892 = vmatpush1.bf16.msra.mxu0 %v250_v38 }
  0xa7   :  { %562 = vrot.lane.b32.xlu0 %v3326_v0, %s3237_s24  ;;  %997 = vmatprep.subr.bf16.mxu1 %v253_v41 }
  0xa8   :  { %998 = vmatpush1.bf16.msra.mxu1 %v252_v42  ;;  %v177_v43 = vpop.permute.xlu1 %176  ;;  %v175_v44 = vpop.permute.xlu0 %174 }
  0xa9   :  { %v206_v45 = vsel %vm194_vm1, %v169_v35, %v177_v43  ;;  %v205_v46 = vsel %vm194_vm1, %v167_v37, %v175_v44 }
  0xaa   :  { %v247_v47 = vmul.f32 %v3638_v49, %v206_v45  ;;  %v243_v48 = vmul.f32 %v3638_v49, %v205_v46  ;;  %572 = vrot.lane.b32.xlu1 %v3354_v4, %s3237_s24  ;;  %v3749_v45 = vrot.slane %v2878_v26, %v3540_v27 }
  0xab   :  { %570 = vrot.lane.b32.xlu0 %v3359_v5, %s3237_s24 }
  0xac   :  { %v185_v50 = vpop.permute.xlu1 %184  ;;  %v183_v51 = vpop.permute.xlu0 %182  ;;  %v255_v52 = vpack.c.bf16 %v247_v47, %v243_v48 }
  0xad   :  { %v202_v53 = vsel %vm194_vm1, %v177_v43, %v185_v50  ;;  %v201_v54 = vsel %vm194_vm1, %v175_v44, %v183_v51 }
  0xae   :  { %580 = vrot.lane.b32.xlu1 %v3364_v6, %s3237_s24  ;;  %893 = vmatprep.subr.bf16.mxu0 %v255_v52  ;;  %v248_v55 = vmul.f32 %v3653_v56, %v202_v53  ;;  %v244_v57 = vmul.f32 %v3653_v56, %v201_v54  ;;  %v3758_v52 = vrot.slane %v2878_v26, %v3551_v31 }
  0xaf   :  { %578 = vrot.lane.b32.xlu0 %v3369_v7, %s3237_s24  ;;  %v3761_v53 = vrot.slane %v2878_v26, %v3554_v32 }
  0xb0   :  { %v193_v58 = vpop.permute.xlu1 %192  ;;  %v191_v59 = vpop.permute.xlu0 %190  ;;  %v256_v34 = vpack.c.bf16 %v248_v55, %v244_v57 }
  0xb1   :  { %v198_v60 = vsel %vm194_vm1, %v185_v50, %v193_v58  ;;  %v210_v61 = vsel %vm194_vm1, %v193_v58, %v169_v35  ;;  %v197_v16 = vsel %vm194_vm1, %v183_v51, %v191_v59  ;;  %v209_v20 = vsel %vm194_vm1, %v191_v59, %v167_v37 }
  0xb2   :  { %v246_v21 = vmul.f32 %v3662_v62, %v210_v61  ;;  %v249_v22 = vmul.f32 %v3665_v63, %v198_v60  ;;  %v242_v24 = vmul.f32 %v3662_v62, %v209_v20  ;;  %v245_v25 = vmul.f32 %v3665_v63, %v197_v16  ;;  %560 = vrot.lane.b32.xlu1 %v3382_v8, %s3237_s24 }
  0xb3   :  { %558 = vrot.lane.b32.xlu0 %v3387_v9, %s3237_s24  ;;  %v3734_v35 = vrot.slane %v2878_v26, %v3524_v19 }
  0xb4   :  { %v261_v28 = vpop.permute.xlu1 %260  ;;  %v259_v29 = vpop.permute.xlu0 %258  ;;  %v254_v30 = vpack.c.bf16 %v246_v21, %v242_v24  ;;  %v257_v33 = vpack.c.bf16 %v249_v22, %v245_v25 }
  0xb6   :  { %568 = vrot.lane.b32.xlu1 %v3396_v10, %s3237_s24  ;;  %894 = vmatpush1.bf16.msra.mxu0 %v254_v30 }
  0xb7   :  { %566 = vrot.lane.b32.xlu0 %v3401_v11, %s3237_s24  ;;  %999 = vmatprep.subr.bf16.mxu1 %v257_v33 }
  0xb8   :  { %1000 = vmatpush1.bf16.msra.mxu1 %v256_v34  ;;  %v269_v37 = vpop.permute.xlu1 %268  ;;  %v267_v38 = vpop.permute.xlu0 %266 }
  0xb9   :  { %v300_v41 = vsel %vm290_vm2, %v261_v28, %v269_v37  ;;  %v299_v42 = vsel %vm290_vm2, %v259_v29, %v267_v38 }
  0xba   :  { %v335_v43 = vmul.f32 %v3734_v35, %v300_v41  ;;  %v331_v44 = vmul.f32 %v3734_v35, %v299_v42  ;;  %576 = vrot.lane.b32.xlu1 %v3410_v12, %s3237_s24 }
  0xbb   :  { %574 = vrot.lane.b32.xlu0 %v3415_v13, %s3237_s24 }
  0xbc   :  { %v277_v46 = vpop.permute.xlu1 %276  ;;  %v275_v47 = vpop.permute.xlu0 %274  ;;  %v347_v48 = vpack.c.bf16 %v335_v43, %v331_v44 }
  0xbd   :  { %v296_v50 = vsel %vm290_vm2, %v269_v37, %v277_v46  ;;  %v295_v51 = vsel %vm290_vm2, %v267_v38, %v275_v47 }
  0xbe   :  { %584 = vrot.lane.b32.xlu1 %v3424_v14, %s3237_s24  ;;  %895 = vmatprep.subr.bf16.mxu0 %v347_v48  ;;  %v336_v54 = vmul.f32 %v3749_v45, %v296_v50  ;;  %v332_v55 = vmul.f32 %v3749_v45, %v295_v51 }
  0xbf   :  { %582 = vrot.lane.b32.xlu0 %v3429_v15, %s3237_s24 }
  0xc0   :  { %v285_v57 = vpop.permute.xlu1 %284  ;;  %v283_v58 = vpop.permute.xlu0 %282 }
  0xc1   :  { %v292_v59 = vsel %vm290_vm2, %v277_v46, %v285_v57  ;;  %v304_v60 = vsel %vm290_vm2, %v285_v57, %v261_v28  ;;  %v291_v61 = vsel %vm290_vm2, %v275_v47, %v283_v58  ;;  %v303_v16 = vsel %vm290_vm2, %v283_v58, %v259_v29 }
  0xc2   :  { %v334_v20 = vmul.f32 %v3758_v52, %v304_v60  ;;  %v337_v21 = vmul.f32 %v3761_v53, %v292_v59  ;;  %v330_v22 = vmul.f32 %v3758_v52, %v303_v16  ;;  %v333_v24 = vmul.f32 %v3761_v53, %v291_v61  ;;  %652 = vrot.lane.b32.xlu1 %v3345_v3, %s3238_s27 }
  0xc3   :  { %650 = vrot.lane.b32.xlu0 %v3331_v1, %s3238_s27  ;;  %v348_v29 = vpack.c.bf16 %v336_v54, %v332_v55 }
  0xc4   :  { %v265_v25 = vpop.permute.xlu1 %264  ;;  %v263_v26 = vpop.permute.xlu0 %262  ;;  %v346_v28 = vpack.c.bf16 %v334_v20, %v330_v22  ;;  %v349_v30 = vpack.c.bf16 %v337_v21, %v333_v24  ;;  %v2879_v22 = vld [vmem:[%s5686_s1 + $0xc] sm:$0xf] }
  0xc6   :  { %660 = vrot.lane.b32.xlu1 %v3340_v2, %s3238_s27  ;;  %896 = vmatpush1.bf16.msra.mxu0 %v346_v28 }
  0xc7   :  { %658 = vrot.lane.b32.xlu0 %v3326_v0, %s3238_s27  ;;  %1001 = vmatprep.subr.bf16.mxu1 %v349_v30 }
  0xc8   :  { %1002 = vmatpush1.bf16.msra.mxu1 %v348_v29  ;;  %v273_v33 = vpop.permute.xlu1 %272  ;;  %v271_v34 = vpop.permute.xlu0 %270  ;;  %v3830_v29 = vrot.slane %v2879_v22, %v3524_v19 }
  0xc9   :  { %v302_v37 = vsel %vm290_vm2, %v265_v25, %v273_v33  ;;  %v301_v38 = vsel %vm290_vm2, %v263_v26, %v271_v34 }
  0xca   :  { %v343_v41 = vmul.f32 %v3734_v35, %v302_v37  ;;  %v339_v42 = vmul.f32 %v3734_v35, %v301_v38  ;;  %668 = vrot.lane.b32.xlu1 %v3354_v4, %s3238_s27 }
  0xcb   :  { %666 = vrot.lane.b32.xlu0 %v3359_v5, %s3238_s27 }
  0xcc   :  { %v281_v43 = vpop.permute.xlu1 %280  ;;  %v279_v44 = vpop.permute.xlu0 %278  ;;  %v351_v46 = vpack.c.bf16 %v343_v41, %v339_v42 }
  0xcd   :  { %v298_v47 = vsel %vm290_vm2, %v273_v33, %v281_v43  ;;  %v297_v48 = vsel %vm290_vm2, %v271_v34, %v279_v44 }
  0xce   :  { %676 = vrot.lane.b32.xlu1 %v3364_v6, %s3238_s27  ;;  %897 = vmatprep.subr.bf16.mxu0 %v351_v46  ;;  %v344_v50 = vmul.f32 %v3749_v45, %v298_v47  ;;  %v340_v51 = vmul.f32 %v3749_v45, %v297_v48 }
  0xcf   :  { %674 = vrot.lane.b32.xlu0 %v3369_v7, %s3238_s27 }
  0xd0   :  { %v289_v54 = vpop.permute.xlu1 %288  ;;  %v287_v55 = vpop.permute.xlu0 %286  ;;  %v352_v30 = vpack.c.bf16 %v344_v50, %v340_v51  ;;  %v3854_v51 = vrot.slane %v2879_v22, %v3551_v31 }
  0xd1   :  { %v294_v57 = vsel %vm290_vm2, %v281_v43, %v289_v54  ;;  %v306_v58 = vsel %vm290_vm2, %v289_v54, %v265_v25  ;;  %v293_v59 = vsel %vm290_vm2, %v279_v44, %v287_v55  ;;  %v305_v60 = vsel %vm290_vm2, %v287_v55, %v263_v26 }
  0xd2   :  { %v342_v61 = vmul.f32 %v3758_v52, %v306_v58  ;;  %v345_v16 = vmul.f32 %v3761_v53, %v294_v57  ;;  %v338_v20 = vmul.f32 %v3758_v52, %v305_v60  ;;  %v341_v21 = vmul.f32 %v3761_v53, %v293_v59  ;;  %656 = vrot.lane.b32.xlu1 %v3382_v8, %s3238_s27 }
  0xd3   :  { %654 = vrot.lane.b32.xlu0 %v3387_v9, %s3238_s27  ;;  %v3845_v43 = vrot.slane %v2879_v22, %v3540_v27  ;;  %5772 = vst [vmem:[#allocation6_spill] sm:$0xff] %v3854_v51  ;;  %v3857_v54 = vrot.slane %v2879_v22, %v3554_v32 }
  0xd4   :  { %v357_v24 = vpop.permute.xlu1 %356  ;;  %v355_v25 = vpop.permute.xlu0 %354  ;;  %v350_v26 = vpack.c.bf16 %v342_v61, %v338_v20  ;;  %v353_v28 = vpack.c.bf16 %v345_v16, %v341_v21  ;;  %v3161_v21 = vld [vmem:[%s5687_s2 + $0x4] ss:$12 sps:$4 sm:$0xff]  }
  0xd5   :  { %5773 = vst [vmem:[#allocation7_spill] sm:$0xff] %v3857_v54  ;;  %919 = vmatprep.mubr.bf16.mxu0 %v3161_v21  ;;  %1025 = vmatprep.mubr.bf16.mxu1 %v3161_v21 }
  0xd6   :  { %664 = vrot.lane.b32.xlu1 %v3396_v10, %s3238_s27  ;;  %898 = vmatpush1.bf16.msra.mxu0 %v350_v26 }
  0xd7   :  { %662 = vrot.lane.b32.xlu0 %v3401_v11, %s3238_s27  ;;  %1003 = vmatprep.subr.bf16.mxu1 %v353_v28 }
  0xd8   :  { %1004 = vmatpush1.bf16.msra.mxu1 %v352_v30  ;;  %v365_v33 = vpop.permute.xlu1 %364  ;;  %v363_v34 = vpop.permute.xlu0 %362 }
  0xd9   :  { %v396_v37 = vsel %vm386_vm3, %v357_v24, %v365_v33  ;;  %v395_v38 = vsel %vm386_vm3, %v355_v25, %v363_v34 }
  0xda   :  { %v431_v41 = vmul.f32 %v3830_v29, %v396_v37  ;;  %v427_v42 = vmul.f32 %v3830_v29, %v395_v38  ;;  %672 = vrot.lane.b32.xlu1 %v3410_v12, %s3238_s27 }
  0xdb   :  { %670 = vrot.lane.b32.xlu0 %v3415_v13, %s3238_s27 }
  0xdc   :  { %v373_v44 = vpop.permute.xlu1 %372  ;;  %v371_v46 = vpop.permute.xlu0 %370  ;;  %v443_v47 = vpack.c.bf16 %v431_v41, %v427_v42 }
  0xdd   :  { %v392_v48 = vsel %vm386_vm3, %v365_v33, %v373_v44  ;;  %v391_v50 = vsel %vm386_vm3, %v363_v34, %v371_v46 }
  0xde   :  { %680 = vrot.lane.b32.xlu1 %v3424_v14, %s3238_s27  ;;  %899 = vmatprep.subr.bf16.mxu0 %v443_v47  ;;  %v432_v55 = vmul.f32 %v3845_v43, %v392_v48  ;;  %v428_v57 = vmul.f32 %v3845_v43, %v391_v50 }
  0xdf   :  { %678 = vrot.lane.b32.xlu0 %v3429_v15, %s3238_s27 }
  0xe0   :  { %v381_v58 = vpop.permute.xlu1 %380  ;;  %v379_v59 = vpop.permute.xlu0 %378  ;;  %v444_v37 = vpack.c.bf16 %v432_v55, %v428_v57 }
  0xe1   :  { %v388_v60 = vsel %vm386_vm3, %v373_v44, %v381_v58  ;;  %v400_v61 = vsel %vm386_vm3, %v381_v58, %v357_v24  ;;  %v387_v16 = vsel %vm386_vm3, %v371_v46, %v379_v59  ;;  %v399_v20 = vsel %vm386_vm3, %v379_v59, %v355_v25 }
  0xe2   :  { %v430_v22 = vmul.f32 %v3854_v51, %v400_v61  ;;  %v433_v26 = vmul.f32 %v3857_v54, %v388_v60  ;;  %v426_v28 = vmul.f32 %v3854_v51, %v399_v20  ;;  %v429_v30 = vmul.f32 %v3857_v54, %v387_v16  ;;  %748 = vrot.lane.b32.xlu1 %v3345_v3, %s3239_s20 }
  0xe3   :  { %746 = vrot.lane.b32.xlu0 %v3331_v1, %s3239_s20 }
  0xe4   :  { %v361_v24 = vpop.permute.xlu1 %360  ;;  %v359_v25 = vpop.permute.xlu0 %358  ;;  %v442_v33 = vpack.c.bf16 %v430_v22, %v426_v28  ;;  %v445_v34 = vpack.c.bf16 %v433_v26, %v429_v30 }
  0xe6   :  { %756 = vrot.lane.b32.xlu1 %v3340_v2, %s3239_s20  ;;  %900 = vmatpush1.bf16.msra.mxu0 %v442_v33 }
  0xe7   :  { %754 = vrot.lane.b32.xlu0 %v3326_v0, %s3239_s20  ;;  %1005 = vmatprep.subr.bf16.mxu1 %v445_v34 }
  0xe8   :  { %1006 = vmatpush1.bf16.msra.mxu1 %v444_v37  ;;  %v369_v38 = vpop.permute.xlu1 %368  ;;  %v367_v41 = vpop.permute.xlu0 %366 }
  0xe9   :  { %v398_v42 = vsel %vm386_vm3, %v361_v24, %v369_v38  ;;  %v397_v44 = vsel %vm386_vm3, %v359_v25, %v367_v41 }
  0xea   :  { %v439_v46 = vmul.f32 %v3830_v29, %v398_v42  ;;  %v435_v47 = vmul.f32 %v3830_v29, %v397_v44  ;;  %764 = vrot.lane.b32.xlu1 %v3354_v4, %s3239_s20  ;;  %v2880_v42 = vld [vmem:[%s5686_s1 + $0x14] sm:$0xf]  ;;  %v453_v44 = vpack.c.bf16 %v3364_v6, %v3369_v7 }
  0xeb   :  { %762 = vrot.lane.b32.xlu0 %v3359_v5, %s3239_s20 }
  0xec   :  { %v377_v48 = vpop.permute.xlu1 %376  ;;  %v375_v50 = vpop.permute.xlu0 %374  ;;  %v447_v55 = vpack.c.bf16 %v439_v46, %v435_v47  ;;  %v450_v47 = vpack.c.bf16 %v3345_v3, %v3331_v1 }
  0xed   :  { %v394_v57 = vsel %vm386_vm3, %v369_v38, %v377_v48  ;;  %v393_v58 = vsel %vm386_vm3, %v367_v41, %v375_v50 }
  0xee   :  { %772 = vrot.lane.b32.xlu1 %v3364_v6, %s3239_s20  ;;  %901 = vmatprep.subr.bf16.mxu0 %v447_v55  ;;  %v440_v59 = vmul.f32 %v3845_v43, %v394_v57  ;;  %v436_v60 = vmul.f32 %v3845_v43, %v393_v58 }
  0xef   :  { %770 = vrot.lane.b32.xlu0 %v3369_v7, %s3239_s20 }
  0xf0   :  { %v385_v61 = vpop.permute.xlu1 %384  ;;  %v383_v16 = vpop.permute.xlu0 %382  ;;  %v448_v46 = vpack.c.bf16 %v440_v59, %v436_v60  ;;  %v456_v59 = vpack.c.bf16 %v3410_v12, %v3415_v13 }
  0xf1   :  { %v390_v20 = vsel %vm386_vm3, %v377_v48, %v385_v61  ;;  %v402_v21 = vsel %vm386_vm3, %v385_v61, %v361_v24  ;;  %v389_v22 = vsel %vm386_vm3, %v375_v50, %v383_v16  ;;  %v401_v26 = vsel %vm386_vm3, %v383_v16, %v359_v25 }
  0xf2   :  { %v438_v28 = vmul.f32 %v3854_v51, %v402_v21  ;;  %v441_v30 = vmul.f32 %v3857_v54, %v390_v20  ;;  %v434_v33 = vmul.f32 %v3854_v51, %v401_v26  ;;  %v437_v34 = vmul.f32 %v3857_v54, %v389_v22  ;;  %752 = vrot.lane.b32.xlu1 %v3382_v8, %s3239_s20 }
  0xf3   :  { %750 = vrot.lane.b32.xlu0 %v3387_v9, %s3239_s20  ;;  %v451_v25 = vpack.c.bf16 %v3340_v2, %v3326_v0  ;;  %v455_v0 = vpack.c.bf16 %v3396_v10, %v3401_v11  ;;  %v3939_v2 = vrot.slane %v2880_v42, %v3551_v31  ;;  %v452_v48 = vpack.c.bf16 %v3354_v4, %v3359_v5 }
  0xf4   :  { %v461_v24 = vpop.permute.xlu1 %460  ;;  %v459_v37 = vpop.permute.xlu0 %458  ;;  %v446_v38 = vpack.c.bf16 %v438_v28, %v434_v33  ;;  %v449_v41 = vpack.c.bf16 %v441_v30, %v437_v34  ;;  %v3953_v50 = vrot.slane %v2880_v42, %v3524_v19  ;;  %v454_v4 = vpack.c.bf16 %v3382_v8, %v3387_v9 }
  0xf5   :  { %5774 = vst [vmem:[#allocation8_spill] sm:$0xff] %v3939_v2  ;;  %v3969_v9 = vrot.slane %v2880_v42, %v3540_v27 }
  0xf6   :  { %760 = vrot.lane.b32.xlu1 %v3396_v10, %s3239_s20  ;;  %902 = vmatpush1.bf16.msra.mxu0 %v446_v38  ;;  %v457_v10 = vpack.c.bf16 %v3424_v14, %v3429_v15  ;;  %5775 = vst [vmem:[#allocation9_spill] sm:$0xff] %v3953_v50 }
  0xf7   :  { %758 = vrot.lane.b32.xlu0 %v3401_v11, %s3239_s20  ;;  %1007 = vmatprep.subr.bf16.mxu1 %v449_v41  ;;  %v5700_v11 = vmov 0   ;;  %5776 = vst [vmem:[#allocation10_spill] sm:$0xff] %v3969_v9  ;;  %v1099_v41 = vld [vmem:[%s5688_s3] sm:$0xff] }
  0xf8   :  { %1008 = vmatpush1.bf16.msra.mxu1 %v448_v46  ;;  %v469_v6 = vpop.permute.xlu1 %468  ;;  %v467_v7 = vpop.permute.xlu0 %466  ;;  %903 = vmatprep.subr.bf16.mxu0 %v451_v25  ;;  %v1139_v46 = vld [vmem:[%s5689_s4] sm:$0xff] }
  0xf9   :  { %v500_v1 = vsel %vm490_vm4, %v461_v24, %v469_v6  ;;  %v499_v3 = vsel %vm490_vm4, %v459_v37, %v467_v7  ;;  %1009 = vmatprep.subr.bf16.mxu1 %v453_v44  ;;  %3158 = vset.pattern.permute.xlu1 %v5700_v11 }
  0xfa   :  { %768 = vrot.lane.b32.xlu1 %v3410_v12, %s3239_s20  ;;  %904 = vmatpush1.bf16.msra.mxu0 %v450_v47  ;;  %v534_v5 = vmul.f32 %v3939_v2, %v500_v1  ;;  %v530_v55 = vmul.f32 %v3939_v2, %v499_v3  ;;  %v3976_v12 = vrot.slane %v2880_v42, %v3554_v32  ;;  %v1140_v47 = vld [vmem:[%s5689_s4 + $0x8] sm:$0xff] }
  0xfb   :  { %766 = vrot.lane.b32.xlu0 %v3415_v13, %s3239_s20  ;;  %905 = vmatprep.subr.bf16.mxu0 %v455_v0 }
  0xfc   :  { %v477_v57 = vpop.permute.xlu1 %476  ;;  %v475_v58 = vpop.permute.xlu0 %474  ;;  %1010 = vmatpush1.bf16.msra.mxu1 %v452_v48  ;;  %3157 = vset.pattern.permute.xlu0 %v5700_v11  ;;  %5777 = vst [vmem:[#allocation11_spill] sm:$0xff] %v3976_v12  ;;  %v546_v22 = vpack.c.bf16 %v534_v5, %v530_v55  ;;  %v1102_v48 = vld [vmem:[%s5688_s3 + $0x18] sm:$0xff] }
  0xfd   :  { %v496_v60 = vsel %vm490_vm4, %v469_v6, %v477_v57  ;;  %v495_v8 = vsel %vm490_vm4, %v467_v7, %v475_v58  ;;  %1011 = vmatprep.subr.bf16.mxu1 %v457_v10  ;;  %v1101_v7 = vld [vmem:[%s5688_s3 + $0x10] sm:$0xff] }
  0xfe   :  { %v535_v61 = vmul.f32 %v3953_v50, %v496_v60  ;;  %v531_v16 = vmul.f32 %v3953_v50, %v495_v8  ;;  %776 = vrot.lane.b32.xlu1 %v3424_v14, %s3239_s20  ;;  %906 = vmatpush1.bf16.msra.mxu0 %v454_v4 }
  0xff   :  { %774 = vrot.lane.b32.xlu0 %v3429_v15, %s3239_s20 }
 0x100   :  { %v485_v13 = vpop.permute.xlu1 %484  ;;  %v483_v20 = vpop.permute.xlu0 %482  ;;  %v547_v21 = vpack.c.bf16 %v535_v61, %v531_v16  ;;  %1012 = vmatpush1.bf16.msra.mxu1 %v456_v59  ;;  %v1142_v59 = vld [vmem:[%s5689_s4 + $0x18] sm:$0xff] }
 0x101   :  { %v492_v26 = vsel %vm490_vm4, %v477_v57, %v485_v13  ;;  %v504_v28 = vsel %vm490_vm4, %v485_v13, %v461_v24  ;;  %v491_v14 = vsel %vm490_vm4, %v475_v58, %v483_v20  ;;  %v503_v30 = vsel %vm490_vm4, %v483_v20, %v459_v37  ;;  %v1100_v24 = vld [vmem:[%s5688_s3 + $0x8] sm:$0xff]  ;;  %v1141_v58 = vld [vmem:[%s5689_s4 + $0x10] sm:$0xff] }
 0x102   :  { %v536_v33 = vmul.f32 %v3969_v9, %v492_v26  ;;  %v537_v15 = vmul.f32 %v3976_v12, %v504_v28  ;;  %v532_v34 = vmul.f32 %v3969_v9, %v491_v14  ;;  %v533_v38 = vmul.f32 %v3976_v12, %v503_v30  ;;  %907 = vmatprep.subr.bf16.mxu0 %v547_v21 }
 0x103   :  { %908 = vmatpush1.bf16.msra.mxu0 %v546_v22  ;;  %1110 = vperm.xlu1 %3158, %v1100_v24  }
 0x104   :  { %v465_v25 = vpop.permute.xlu1 %464  ;;  %v549_v37 = vpack.c.bf16 %v537_v15, %v533_v38  ;;  %v548_v42 = vpack.c.bf16 %v536_v33, %v532_v34  ;;  %1105 = vperm.xlu0 %3157, %v1099_v41  }
 0x105   :  { %v463_v44 = vpop.permute.xlu0 %462 }
 0x106   :  { %1013 = vmatprep.subr.bf16.mxu1 %v549_v37  ;;  %v2881_v37 = vld [vmem:[%s5686_s1 + $0x18] sm:$0xf] }
 0x107   :  { %1014 = vmatpush1.bf16.msra.mxu1 %v548_v42  ;;  %1145 = vperm.xlu1 %3158, %v1139_v46  }
 0x108   :  { %v473_v0 = vpop.permute.xlu1 %472  ;;  %1150 = vperm.xlu0 %3157, %v1140_v47  }
 0x109   :  { %v471_v6 = vpop.permute.xlu0 %470  ;;  %v502_v1 = vsel %vm490_vm4, %v465_v25, %v473_v0 }
 0x10a   :  { %v501_v3 = vsel %vm490_vm4, %v463_v44, %v471_v6  ;;  %v542_v4 = vmul.f32 %v3939_v2, %v502_v1 }
 0x10b   :  { %1115 = vperm.xlu1 %3158, %v1101_v7   ;;  %v538_v5 = vmul.f32 %v3939_v2, %v501_v3 }
 0x10c   :  { %v481_v10 = vpop.permute.xlu1 %480  ;;  %1120 = vperm.xlu0 %3157, %v1102_v48  }
 0x10d   :  { %v498_v55 = vsel %vm490_vm4, %v473_v0, %v481_v10  ;;  %v479_v57 = vpop.permute.xlu0 %478  ;;  %v550_v26 = vpack.c.bf16 %v542_v4, %v538_v5 }
 0x10e   :  { %v543_v60 = vmul.f32 %v3953_v50, %v498_v55  ;;  %v497_v8 = vsel %vm490_vm4, %v471_v6, %v479_v57  ;;  %v4052_v6 = vrot.slane %v2881_v37, %v3524_v19  ;;  %v4062_v55 = vrot.slane %v2881_v37, %v3540_v27 }
 0x10f   :  { %v539_v61 = vmul.f32 %v3953_v50, %v497_v8  ;;  %1155 = vperm.xlu1 %3158, %v1141_v58  }
 0x110   :  { %v489_v16 = vpop.permute.xlu1 %488  ;;  %1160 = vperm.xlu0 %3157, %v1142_v59   ;;  %5779 = vst [vmem:[#allocation13_spill] sm:$0xff] %v4052_v6  ;;  %5780 = vst [vmem:[#allocation14_spill] sm:$0xff] %v4062_v55 }
 0x111   :  { %v494_v13 = vsel %vm490_vm4, %v481_v10, %v489_v16  ;;  %v506_v20 = vsel %vm490_vm4, %v489_v16, %v465_v25  ;;  %v487_v21 = vpop.permute.xlu0 %486  ;;  %v551_v22 = vpack.c.bf16 %v543_v60, %v539_v61 }
 0x112   :  { %v544_v28 = vmul.f32 %v3969_v9, %v494_v13  ;;  %v545_v14 = vmul.f32 %v3976_v12, %v506_v20  ;;  %v493_v30 = vsel %vm490_vm4, %v479_v57, %v487_v21  ;;  %v505_v33 = vsel %vm490_vm4, %v487_v21, %v463_v44 }
 0x113   :  { %v540_v15 = vmul.f32 %v3969_v9, %v493_v30  ;;  %v541_v34 = vmul.f32 %v3976_v12, %v505_v33  ;;  %909 = vmatprep.subr.bf16.mxu0 %v551_v22  ;;  %v4045_v44 = vrot.slane %v2881_v37, %v3551_v31  ;;  %v4065_v57 = vrot.slane %v2881_v37, %v3554_v32 }
 0x114   :  { %910 = vmatpush1.bf16.msra.mxu0 %v550_v26  ;;  %v557_v38 = vpop.permute.xlu1 %556 }
 0x115   :  { %v555_v24 = vpop.permute.xlu0 %554  ;;  %v553_v41 = vpack.c.bf16 %v545_v14, %v541_v34  ;;  %v552_v25 = vpack.c.bf16 %v544_v28, %v540_v15  ;;  %5778 = vst [vmem:[#allocation12_spill] sm:$0xff] %v4045_v44  ;;  %5781 = vst [vmem:[#allocation15_spill] sm:$0xff] %v4065_v57 }
 0x117   :  { %1015 = vmatprep.subr.bf16.mxu1 %v553_v41 }
 0x118   :  { %1016 = vmatpush1.bf16.msra.mxu1 %v552_v25  ;;  %v565_v42 = vpop.permute.xlu1 %564 }
 0x119   :  { %v563_v46 = vpop.permute.xlu0 %562  ;;  %v596_v47 = vsel %vm586_vm5, %v557_v38, %v565_v42 }
 0x11a   :  { %v595_v0 = vsel %vm586_vm5, %v555_v24, %v563_v46  ;;  %v630_v48 = vmul.f32 %v4045_v44, %v596_v47 }
 0x11b   :  { %v626_v1 = vmul.f32 %v4045_v44, %v595_v0 }
 0x11c   :  { %v573_v7 = vpop.permute.xlu1 %572 }
 0x11d   :  { %v592_v3 = vsel %vm586_vm5, %v565_v42, %v573_v7  ;;  %v571_v10 = vpop.permute.xlu0 %570  ;;  %v642_v13 = vpack.c.bf16 %v630_v48, %v626_v1 }
 0x11e   :  { %v631_v4 = vmul.f32 %v4052_v6, %v592_v3  ;;  %v591_v5 = vsel %vm586_vm5, %v563_v46, %v571_v10 }
 0x11f   :  { %v627_v58 = vmul.f32 %v4052_v6, %v591_v5 }
 0x120   :  { %v581_v59 = vpop.permute.xlu1 %580 }
 0x121   :  { %v588_v60 = vsel %vm586_vm5, %v573_v7, %v581_v59  ;;  %v600_v8 = vsel %vm586_vm5, %v581_v59, %v557_v38  ;;  %v579_v61 = vpop.permute.xlu0 %578  ;;  %v643_v16 = vpack.c.bf16 %v631_v4, %v627_v58 }
 0x122   :  { %v632_v20 = vmul.f32 %v4062_v55, %v588_v60  ;;  %v633_v21 = vmul.f32 %v4065_v57, %v600_v8  ;;  %v587_v22 = vsel %vm586_vm5, %v571_v10, %v579_v61  ;;  %v599_v26 = vsel %vm586_vm5, %v579_v61, %v555_v24 }
 0x123   :  { %v628_v28 = vmul.f32 %v4062_v55, %v587_v22  ;;  %v629_v14 = vmul.f32 %v4065_v57, %v599_v26  ;;  %911 = vmatprep.subr.bf16.mxu0 %v643_v16 }
 0x124   :  { %912 = vmatpush1.bf16.msra.mxu0 %v642_v13  ;;  %v561_v30 = vpop.permute.xlu1 %560 }
 0x125   :  { %v559_v33 = vpop.permute.xlu0 %558  ;;  %v645_v15 = vpack.c.bf16 %v633_v21, %v629_v14  ;;  %v644_v34 = vpack.c.bf16 %v632_v20, %v628_v28  ;;  %v2882_v14 = vld [vmem:[%s5686_s1 + $0x1c] sm:$0xf] }
 0x127   :  { %1017 = vmatprep.subr.bf16.mxu1 %v645_v15 }
 0x128   :  { %1018 = vmatpush1.bf16.msra.mxu1 %v644_v34  ;;  %v569_v38 = vpop.permute.xlu1 %568 }
 0x129   :  { %v567_v41 = vpop.permute.xlu0 %566  ;;  %v598_v25 = vsel %vm586_vm5, %v561_v30, %v569_v38 }
 0x12a   :  { %v597_v24 = vsel %vm586_vm5, %v559_v33, %v567_v41  ;;  %v638_v42 = vmul.f32 %v4045_v44, %v598_v25 }
 0x12b   :  { %v634_v46 = vmul.f32 %v4045_v44, %v597_v24 }
 0x12c   :  { %v577_v37 = vpop.permute.xlu1 %576 }
 0x12d   :  { %v594_v47 = vsel %vm586_vm5, %v569_v38, %v577_v37  ;;  %v575_v0 = vpop.permute.xlu0 %574  ;;  %v646_v59 = vpack.c.bf16 %v638_v42, %v634_v46 }
 0x12e   :  { %v639_v7 = vmul.f32 %v4052_v6, %v594_v47  ;;  %v593_v48 = vsel %vm586_vm5, %v567_v41, %v575_v0  ;;  %v4116_v41 = vrot.slane %v2882_v14, %v3524_v19 }
 0x12f   :  { %v635_v1 = vmul.f32 %v4052_v6, %v593_v48  ;;  %v4129_v48 = vrot.slane %v2882_v14, %v3554_v32 }
 0x130   :  { %v585_v3 = vpop.permute.xlu1 %584  ;;  %5783 = vst [vmem:[#allocation17_spill] sm:$0xff] %v4116_v41 }
 0x131   :  { %v590_v10 = vsel %vm586_vm5, %v577_v37, %v585_v3  ;;  %v602_v4 = vsel %vm586_vm5, %v585_v3, %v561_v30  ;;  %v583_v5 = vpop.permute.xlu0 %582  ;;  %v647_v58 = vpack.c.bf16 %v639_v7, %v635_v1  ;;  %v4126_v7 = vrot.slane %v2882_v14, %v3540_v27  ;;  %5785 = vst [vmem:[#allocation19_spill] sm:$0xff] %v4129_v48 }
 0x132   :  { %v640_v60 = vmul.f32 %v4062_v55, %v590_v10  ;;  %v641_v8 = vmul.f32 %v4065_v57, %v602_v4  ;;  %v589_v61 = vsel %vm586_vm5, %v575_v0, %v583_v5  ;;  %v601_v16 = vsel %vm586_vm5, %v583_v5, %v559_v33 }
 0x133   :  { %v636_v13 = vmul.f32 %v4062_v55, %v589_v61  ;;  %v637_v20 = vmul.f32 %v4065_v57, %v601_v16  ;;  %913 = vmatprep.subr.bf16.mxu0 %v647_v58  ;;  %v4109_v33 = vrot.slane %v2882_v14, %v3551_v31  ;;  %5784 = vst [vmem:[#allocation18_spill] sm:$0xff] %v4126_v7 }
 0x134   :  { %914 = vmatpush1.bf16.msra.mxu0 %v646_v59  ;;  %v653_v21 = vpop.permute.xlu1 %652 }
 0x135   :  { %v651_v22 = vpop.permute.xlu0 %650  ;;  %v649_v26 = vpack.c.bf16 %v641_v8, %v637_v20  ;;  %v648_v28 = vpack.c.bf16 %v640_v60, %v636_v13  ;;  %5782 = vst [vmem:[#allocation16_spill] sm:$0xff] %v4109_v33 }
 0x137   :  { %1019 = vmatprep.subr.bf16.mxu1 %v649_v26 }
 0x138   :  { %1020 = vmatpush1.bf16.msra.mxu1 %v648_v28  ;;  %v661_v30 = vpop.permute.xlu1 %660 }
 0x139   :  { %v659_v15 = vpop.permute.xlu0 %658  ;;  %v692_v34 = vsel %vm682_vm6, %v653_v21, %v661_v30 }
 0x13a   :  { %v691_v38 = vsel %vm682_vm6, %v651_v22, %v659_v15  ;;  %v726_v24 = vmul.f32 %v4109_v33, %v692_v34 }
 0x13b   :  { %v722_v37 = vmul.f32 %v4109_v33, %v691_v38 }
 0x13c   :  { %v669_v25 = vpop.permute.xlu1 %668 }
 0x13d   :  { %v688_v42 = vsel %vm682_vm6, %v661_v30, %v669_v25  ;;  %v667_v46 = vpop.permute.xlu0 %666  ;;  %v738_v59 = vpack.c.bf16 %v726_v24, %v722_v37 }
 0x13e   :  { %v727_v47 = vmul.f32 %v4116_v41, %v688_v42  ;;  %v687_v0 = vsel %vm682_vm6, %v659_v15, %v667_v46 }
 0x13f   :  { %v723_v1 = vmul.f32 %v4116_v41, %v687_v0 }
 0x140   :  { %v677_v3 = vpop.permute.xlu1 %676 }
 0x141   :  { %v684_v10 = vsel %vm682_vm6, %v669_v25, %v677_v3  ;;  %v696_v4 = vsel %vm682_vm6, %v677_v3, %v653_v21  ;;  %v675_v5 = vpop.permute.xlu0 %674  ;;  %v739_v58 = vpack.c.bf16 %v727_v47, %v723_v1 }
 0x142   :  { %v728_v60 = vmul.f32 %v4126_v7, %v684_v10  ;;  %v729_v8 = vmul.f32 %v4129_v48, %v696_v4  ;;  %v683_v61 = vsel %vm682_vm6, %v667_v46, %v675_v5  ;;  %v695_v16 = vsel %vm682_vm6, %v675_v5, %v651_v22 }
 0x143   :  { %v724_v13 = vmul.f32 %v4126_v7, %v683_v61  ;;  %v725_v20 = vmul.f32 %v4129_v48, %v695_v16  ;;  %915 = vmatprep.subr.bf16.mxu0 %v739_v58 }
 0x144   :  { %916 = vmatpush1.bf16.msra.mxu0 %v738_v59  ;;  %v657_v21 = vpop.permute.xlu1 %656 }
 0x145   :  { %v655_v26 = vpop.permute.xlu0 %654  ;;  %v741_v28 = vpack.c.bf16 %v729_v8, %v725_v20  ;;  %v740_v14 = vpack.c.bf16 %v728_v60, %v724_v13  ;;  %v3159_v20 = vld [vmem:[%s5687_s2] ss:$12 sps:$4 sm:$0xff]  }
 0x147   :  { %1021 = vmatprep.subr.bf16.mxu1 %v741_v28  ;;  %v3162_v28 = vld [vmem:[%s5687_s2 + $0x1c] ss:$12 sps:$4 sm:$0xff]  }
 0x148   :  { %1022 = vmatpush1.bf16.msra.mxu1 %v740_v14  ;;  %v665_v30 = vpop.permute.xlu1 %664 }
 0x149   :  { %v663_v15 = vpop.permute.xlu0 %662  ;;  %v694_v34 = vsel %vm682_vm6, %v657_v21, %v665_v30 }
 0x14a   :  { %v693_v22 = vsel %vm682_vm6, %v655_v26, %v663_v15  ;;  %v734_v25 = vmul.f32 %v4109_v33, %v694_v34 }
 0x14b   :  { %v730_v24 = vmul.f32 %v4109_v33, %v693_v22 }
 0x14c   :  { %v673_v38 = vpop.permute.xlu1 %672 }
 0x14d   :  { %v690_v37 = vsel %vm682_vm6, %v665_v30, %v673_v38  ;;  %v671_v42 = vpop.permute.xlu0 %670  ;;  %v742_v58 = vpack.c.bf16 %v734_v25, %v730_v24 }
 0x14e   :  { %v735_v46 = vmul.f32 %v4116_v41, %v690_v37  ;;  %v689_v47 = vsel %vm682_vm6, %v663_v15, %v671_v42 }
 0x14f   :  { %v731_v0 = vmul.f32 %v4116_v41, %v689_v47 }
 0x150   :  { %v681_v1 = vpop.permute.xlu1 %680 }
 0x151   :  { %v686_v3 = vsel %vm682_vm6, %v673_v38, %v681_v1  ;;  %v698_v10 = vsel %vm682_vm6, %v681_v1, %v657_v21  ;;  %v679_v4 = vpop.permute.xlu0 %678  ;;  %v743_v5 = vpack.c.bf16 %v735_v46, %v731_v0 }
 0x152   :  { %v736_v59 = vmul.f32 %v4126_v7, %v686_v3  ;;  %v737_v60 = vmul.f32 %v4129_v48, %v698_v10  ;;  %v685_v8 = vsel %vm682_vm6, %v671_v42, %v679_v4  ;;  %v697_v61 = vsel %vm682_vm6, %v679_v4, %v655_v26  ;;  %v2883_v26 = vld [vmem:[%s5686_s1 + $0x20] sm:$0xf]  ;;  %v3164_v42 = vld [vmem:[%s5687_s2 + $0x18] ss:$12 sps:$4 sm:$0xff]  }
 0x153   :  { %v732_v16 = vmul.f32 %v4126_v7, %v685_v8  ;;  %v733_v13 = vmul.f32 %v4129_v48, %v697_v61  ;;  %917 = vmatprep.subr.bf16.mxu0 %v743_v5  ;;  %v4179_v22 = vrot.slane %v2883_v26, %v3551_v31  ;;  %v4186_v37 = vrot.slane %v2883_v26, %v3524_v19 }
 0x154   :  { %918 = vmatpush1.bf16.msra.mxu0 %v742_v58  ;;  %v749_v21 = vpop.permute.xlu1 %748  ;;  %v4199_v10 = vrot.slane %v2883_v26, %v3540_v27  ;;  %v4202_v4 = vrot.slane %v2883_v26, %v3554_v32 }
 0x155   :  { %v747_v14 = vpop.permute.xlu0 %746  ;;  %v745_v30 = vpack.c.bf16 %v737_v60, %v733_v13  ;;  %v744_v15 = vpack.c.bf16 %v736_v59, %v732_v16  ;;  %5786 = vst [vmem:[#allocation20_spill] sm:$0xff] %v4179_v22  ;;  %5787 = vst [vmem:[#allocation21_spill] sm:$0xff] %v4186_v37 }
 0x156   :  { %5788 = vst [vmem:[#allocation22_spill] sm:$0xff] %v4199_v10  ;;  %5789 = vst [vmem:[#allocation23_spill] sm:$0xff] %v4202_v4 }
 0x157   :  { %1023 = vmatprep.subr.bf16.mxu1 %v745_v30  ;;  %920 = vmatmul.mubr.bf16.vlgmr.msra.gmra.mrb[0].mxu0 %v3159_v20 }
 0x158   :  { %1024 = vmatpush1.bf16.msra.mxu1 %v744_v15  ;;  %v757_v34 = vpop.permute.xlu1 %756  ;;  %929 = vmatprep.mubr.bf16.mxu0 %v3162_v28 }
 0x159   :  { %v755_v38 = vpop.permute.xlu0 %754  ;;  %v788_v25 = vsel %vm778_vm7, %v749_v21, %v757_v34 }
 0x15a   :  { %v787_v24 = vsel %vm778_vm7, %v747_v14, %v755_v38  ;;  %v822_v31 = vmul.f32 %v4179_v22, %v788_v25 }
 0x15b   :  { %1026 = vmatmul.mubr.bf16.vlgmr.msra.gmra.mrb[0].mxu1 %v3159_v20  ;;  %v818_v47 = vmul.f32 %v4179_v22, %v787_v24 }
 0x15c   :  { %v765_v46 = vpop.permute.xlu1 %764  ;;  %1035 = vmatprep.mubr.bf16.mxu1 %v3162_v28 }
 0x15d   :  { %v784_v0 = vsel %vm778_vm7, %v757_v34, %v765_v46  ;;  %v763_v1 = vpop.permute.xlu0 %762  ;;  %v834_v59 = vpack.c.bf16 %v822_v31, %v818_v47 }
 0x15e   :  { %v823_v3 = vmul.f32 %v4186_v37, %v784_v0  ;;  %v783_v19 = vsel %vm778_vm7, %v755_v38, %v763_v1 }
 0x15f   :  { %v819_v5 = vmul.f32 %v4186_v37, %v783_v19  ;;  %930 = vmatmul.mubr.bf16.gmra.mrb[4].mxu0 %v3164_v42 }
 0x160   :  { %v773_v58 = vpop.permute.xlu1 %772  ;;  %972 = vmatprep.mubr.bf16.mxu0 %v5700_v11 }
 0x161   :  { %v780_v60 = vsel %vm778_vm7, %v765_v46, %v773_v58  ;;  %v792_v8 = vsel %vm778_vm7, %v773_v58, %v749_v21  ;;  %v771_v61 = vpop.permute.xlu0 %770  ;;  %v835_v16 = vpack.c.bf16 %v823_v3, %v819_v5 }
 0x162   :  { %v824_v27 = vmul.f32 %v4199_v10, %v780_v60  ;;  %v825_v32 = vmul.f32 %v4202_v4, %v792_v8  ;;  %v779_v13 = vsel %vm778_vm7, %v763_v1, %v771_v61  ;;  %v791_v20 = vsel %vm778_vm7, %v771_v61, %v747_v14 }
 0x163   :  { %v820_v28 = vmul.f32 %v4199_v10, %v779_v13  ;;  %v821_v30 = vmul.f32 %v4202_v4, %v791_v20  ;;  %940 = vmatprep.subr.bf16.mxu0 %v835_v16  ;;  %1036 = vmatmul.mubr.bf16.gmra.mrb[4].mxu1 %v3164_v42 }
 0x164   :  { %941 = vmatpush1.bf16.msra.mxu0 %v834_v59  ;;  %v753_v21 = vpop.permute.xlu1 %752  ;;  %1078 = vmatprep.mubr.bf16.mxu1 %v5700_v11 }
 0x165   :  { %v836_v15 = vpack.c.bf16 %v824_v27, %v820_v28  ;;  %v751_v26 = vpop.permute.xlu0 %750  ;;  %v837_v34 = vpack.c.bf16 %v825_v32, %v821_v30  ;;  %v3165_v30 = vld [vmem:[%s5687_s2 + $0x8] ss:$12 sps:$4 sm:$0xff]  }
 0x167   :  { %1046 = vmatprep.subr.bf16.mxu1 %v837_v34 }
 0x168   :  { %1047 = vmatpush1.bf16.msra.mxu1 %v836_v15  ;;  %v761_v38 = vpop.permute.xlu1 %760 }
 0x169   :  { %v759_v25 = vpop.permute.xlu0 %758  ;;  %v790_v14 = vsel %vm778_vm7, %v753_v21, %v761_v38 }
 0x16a   :  { %v789_v24 = vsel %vm778_vm7, %v751_v26, %v759_v25  ;;  %v830_v42 = vmul.f32 %v4179_v22, %v790_v14 }
 0x16b   :  { %v826_v31 = vmul.f32 %v4179_v22, %v789_v24 }
 0x16c   :  { %v769_v46 = vpop.permute.xlu1 %768 }
 0x16d   :  { %v786_v47 = vsel %vm778_vm7, %v761_v38, %v769_v46  ;;  %v767_v0 = vpop.permute.xlu0 %766  ;;  %v838_v58 = vpack.c.bf16 %v830_v42, %v826_v31 }
 0x16e   :  { %v831_v1 = vmul.f32 %v4186_v37, %v786_v47  ;;  %v785_v3 = vsel %vm778_vm7, %v759_v25, %v767_v0 }
 0x16f   :  { %v827_v19 = vmul.f32 %v4186_v37, %v785_v3 }
 0x170   :  { %v777_v5 = vpop.permute.xlu1 %776 }
 0x171   :  { %v782_v59 = vsel %vm778_vm7, %v769_v46, %v777_v5  ;;  %v794_v60 = vsel %vm778_vm7, %v777_v5, %v753_v21  ;;  %v775_v8 = vpop.permute.xlu0 %774  ;;  %v839_v61 = vpack.c.bf16 %v831_v1, %v827_v19 }
 0x172   :  { %v832_v16 = vmul.f32 %v4199_v10, %v782_v59  ;;  %v833_v27 = vmul.f32 %v4202_v4, %v794_v60  ;;  %v781_v32 = vsel %vm778_vm7, %v767_v0, %v775_v8  ;;  %v793_v13 = vsel %vm778_vm7, %v775_v8, %v751_v26  ;;  %v3166_v26 = vld [vmem:[%s5687_s2 + $0x20] ss:$12 sps:$4 sm:$0xff]   ;;  %s3245_s2 = smov [#allocation2]  }
 0x173   :  { %v828_v20 = vmul.f32 %v4199_v10, %v781_v32  ;;  %v829_v28 = vmul.f32 %v4202_v4, %v793_v13  ;;  %942 = vmatprep.subr.bf16.mxu0 %v839_v61 }
 0x174   :  { %943 = vmatpush1.bf16.msra.mxu0 %v838_v58 }
 0x175   :  { %v840_v21 = vpack.c.bf16 %v832_v16, %v828_v20  ;;  %v841_v15 = vpack.c.bf16 %v833_v27, %v829_v28 }
 0x177   :  { %2890 = vmatmul.mubr.msk.bf16.vlgmr.msra.gmra.mrb[0].mxu0 %vm880_vm8, %v3165_v30  ;;  %1048 = vmatprep.subr.bf16.mxu1 %v841_v15 }
 0x178   :  { %1049 = vmatpush1.bf16.msra.mxu1 %v840_v21  ;;  %982 = vmatprep.mubr.bf16.mxu0 %v5700_v11 }
 0x17b   :  { %2892 = vmatmul.mubr.msk.bf16.vlgmr.msra.gmra.mrb[0].mxu1 %vm880_vm8, %v3165_v30 }
 0x17c   :  { %1088 = vmatprep.mubr.bf16.mxu1 %v5700_v11 }
 0x17f   :  { %2891 = vmatmul.mubr.msk.bf16.gmra.mrb[4].mxu0 %vm880_vm8, %v3166_v26 }
 0x182   :  { %v1111_v34 = vpop.permute.xlu1 %1110 }
 0x183   :  { %2893 = vmatmul.mubr.msk.bf16.gmra.mrb[4].mxu1 %vm880_vm8, %v3166_v26  ;;  %v1106_v38 = vpop.permute.xlu0 %1105 }
 0x186   :  { %v1146_v46 = vpop.permute.xlu1 %1145 }
 0x187   :  { %v1151_v1 = vpop.permute.xlu0 %1150 }
 0x24a   :  { %v974_v25 = vpop.f32.mrb[0].mxu0 }
 0x24b   :  { %v1123_v14 = vmul.f32 %v1106_v38, %v974_v25  ;;  %v976_v24 = vpop.f32.mrb[1].mxu0 }
 0x24c   :  { %v978_v42 = vpop.f32.mrb[2].mxu0 }
 0x24d   :  { %v1163_v31 = vadd.f32 %v1146_v46, %v1123_v14  ;;  %v1127_v47 = vmul.f32 %v1111_v34, %v978_v42  ;;  %v980_v0 = vpop.f32.mrb[3].mxu0 }
 0x24e   :  { %v1080_v3 = vpop.f32.mrb[0].mxu1 }
 0x24f   :  { %v4255_v19 = vmax.f32 %v1163_v31, 0.0  ;;  %v1167_v5 = vadd.f32 %v1151_v1, %v1127_v47  ;;  %v1125_v58 = vmul.f32 %v1106_v38, %v1080_v3  ;;  %v1082_v59 = vpop.f32.mrb[1].mxu1  ;;  %v1124_v31 = vmul.f32 %v1106_v38, %v976_v24 }
 0x250   :  { %v1084_v60 = vpop.f32.mrb[2].mxu1  ;;  %v1128_v47 = vmul.f32 %v1111_v34, %v980_v0 }
 0x251   :  { %5790 = vst [vmem:[#allocation24_spill] sm:$0xff] %v4255_v19  ;;  %v4257_v8 = vmax.f32 %v1167_v5, 0.0  ;;  %v1165_v61 = vadd.f32 %v1146_v46, %v1125_v58  ;;  %v1129_v16 = vmul.f32 %v1111_v34, %v1084_v60  ;;  %v1086_v27 = vpop.f32.mrb[3].mxu1  ;;  %1195 = vrot.lane.b32.xlu1 %v4255_v19, %s3232_s17  ;;  %v1164_v3 = vadd.f32 %v1146_v46, %v1124_v31 }
 0x252   :  { %v984_v32 = vpop.f32.mrb[4].mxu0  ;;  %v1126_v5 = vmul.f32 %v1106_v38, %v1082_v59  ;;  %v1168_v58 = vadd.f32 %v1151_v1, %v1128_v47  ;;  %v1130_v60 = vmul.f32 %v1111_v34, %v1086_v27 }
 0x253   :  { %5791 = vst [vmem:[#allocation25_spill] sm:$0xff] %v4257_v8  ;;  %v4261_v13 = vmax.f32 %v1165_v61, 0.0  ;;  %v1169_v20 = vadd.f32 %v1151_v1, %v1129_v16  ;;  %1197 = vrot.lane.b32.xlu0 %v4257_v8, %s3232_s17  ;;  %v4265_v28 = vpop.f32.mrb[5].mxu0  ;;  %v4309_v61 = vmax.f32 %v1164_v3, 0.0 }
 0x254   :  { %v988_v30 = vpop.f32.mrb[6].mxu0  ;;  %v1166_v24 = vadd.f32 %v1146_v46, %v1126_v5  ;;  %v4313_v0 = vmax.f32 %v1168_v58, 0.0  ;;  %v1170_v16 = vadd.f32 %v1151_v1, %v1130_v60  ;;  %v1116_v46 = vpop.permute.xlu1 %1115 }
 0x255   :  { %5792 = vst [vmem:[#allocation26_spill] sm:$0xff] %v4261_v13  ;;  %v4267_v21 = vmax.f32 %v1169_v20, 0.0  ;;  %1211 = vrot.lane.b32.xlu1 %v4261_v13, %s3232_s17  ;;  %v4271_v15 = vpop.f32.mrb[7].mxu0  ;;  %5794 = vst [vmem:[#allocation28_spill] sm:$0xff] %v4309_v61  ;;  %v1121_v1 = vpop.permute.xlu0 %1120  ;;  %v1131_v59 = vmul.f32 %v1116_v46, %v984_v32 }
 0x256   :  { %v1090_v26 = vpop.f32.mrb[4].mxu1  ;;  %v4317_v38 = vmax.f32 %v1166_v24, 0.0  ;;  %v4321_v34 = vmax.f32 %v1170_v16, 0.0  ;;  %v1135_v27 = vmul.f32 %v1121_v1, %v988_v30  ;;  %v1132_v16 = vmul.f32 %v1116_v46, %v4265_v28 }
 0x257   :  { %5793 = vst [vmem:[#allocation27_spill] sm:$0xff] %v4267_v21  ;;  %v4273_v25 = vpop.f32.mrb[5].mxu1  ;;  %1213 = vrot.lane.b32.xlu0 %v4267_v21, %s3232_s17  ;;  %v1133_v47 = vmul.f32 %v1116_v46, %v1090_v26 }
 0x258   :  { %v1094_v14 = vpop.f32.mrb[6].mxu1  ;;  %5795 = vst [vmem:[#allocation29_spill] sm:$0xff] %v4317_v38  ;;  %5796 = vst [vmem:[#allocation30_spill] sm:$0xff] %v4321_v34  ;;  %v1156_v20 = vpop.permute.xlu1 %1155 }
 0x259   :  { %v4277_v42 = vpop.f32.mrb[7].mxu1  ;;  %1267 = vrot.lane.b32.xlu1 %v4255_v19, %s3233_s15  ;;  %v1171_v31 = vadd.f32 %v1156_v20, %v1131_v59  ;;  %v1161_v3 = vpop.permute.xlu0 %1160  ;;  %v1137_v58 = vmul.f32 %v1121_v1, %v1094_v14  ;;  %v1173_v60 = vadd.f32 %v1156_v20, %v1133_v47  ;;  %v1136_v59 = vmul.f32 %v1121_v1, %v4271_v15 }
 0x25a   :  { %v1175_v5 = vadd.f32 %v1161_v3, %v1135_v27  ;;  %v1172_v27 = vadd.f32 %v1156_v20, %v1132_v16 }
 0x25b   :  { %1269 = vrot.lane.b32.xlu0 %v4257_v8, %s3233_s15  ;;  %v4357_v32 = vmax.f32 %v1171_v31, 0.0  ;;  %v1177_v24 = vadd.f32 %v1161_v3, %v1137_v58  ;;  %v4365_v26 = vmax.f32 %v1173_v60, 0.0  ;;  %v1134_v31 = vmul.f32 %v1116_v46, %v4273_v25 }
 0x25c   :  { %v4361_v30 = vmax.f32 %v1175_v5, 0.0  ;;  %v1176_v5 = vadd.f32 %v1161_v3, %v1136_v59  ;;  %v1138_v58 = vmul.f32 %v1121_v1, %v4277_v42  ;;  %v4411_v28 = vmax.f32 %v1172_v27, 0.0 }
 0x25d   :  { %1283 = vrot.lane.b32.xlu1 %v4261_v13, %s3233_s15  ;;  %5797 = vst [vmem:[#allocation31_spill] sm:$0xff] %v4357_v32  ;;  %v4369_v14 = vmax.f32 %v1177_v24, 0.0  ;;  %v1174_v15 = vadd.f32 %v1156_v20, %v1134_v31 }
 0x25e   :  { %v4415_v25 = vmax.f32 %v1176_v5, 0.0  ;;  %v1178_v46 = vadd.f32 %v1161_v3, %v1138_v58 }
 0x25f   :  { %1285 = vrot.lane.b32.xlu0 %v4267_v21, %s3233_s15  ;;  %v4419_v42 = vmax.f32 %v1174_v15, 0.0 }
 0x260   :  { %v4425_v59 = vmax.f32 %v1178_v46, 0.0 }
 0x261   :  { %1339 = vrot.lane.b32.xlu1 %v4255_v19, %s3234_s16 }
 0x263   :  { %1341 = vrot.lane.b32.xlu0 %v4257_v8, %s3234_s16 }
 0x265   :  { %1355 = vrot.lane.b32.xlu1 %v4261_v13, %s3234_s16 }
 0x267   :  { %1357 = vrot.lane.b32.xlu0 %v4267_v21, %s3234_s16 }
 0x269   :  { %1411 = vrot.lane.b32.xlu1 %v4255_v19, %s3235_s18 }
 0x26b   :  { %1413 = vrot.lane.b32.xlu0 %v4257_v8, %s3235_s18 }
 0x26d   :  { %1427 = vrot.lane.b32.xlu1 %v4261_v13, %s3235_s18 }
 0x26f   :  { %1429 = vrot.lane.b32.xlu0 %v4267_v21, %s3235_s18 }
 0x271   :  { %1491 = vrot.lane.b32.xlu1 %v4255_v19, %s3236_s21 }
 0x273   :  { %1493 = vrot.lane.b32.xlu0 %v4257_v8, %s3236_s21 }
 0x275   :  { %1507 = vrot.lane.b32.xlu1 %v4261_v13, %s3236_s21 }
 0x277   :  { %1509 = vrot.lane.b32.xlu0 %v4267_v21, %s3236_s21 }
 0x279   :  { %1203 = vrot.lane.b32.xlu1 %v4309_v61, %s3232_s17 }
 0x27b   :  { %1205 = vrot.lane.b32.xlu0 %v4313_v0, %s3232_s17 }
 0x27d   :  { %1219 = vrot.lane.b32.xlu1 %v4317_v38, %s3232_s17 }
 0x27f   :  { %1221 = vrot.lane.b32.xlu0 %v4321_v34, %s3232_s17 }
 0x281   :  { %1275 = vrot.lane.b32.xlu1 %v4309_v61, %s3233_s15 }
 0x283   :  { %1277 = vrot.lane.b32.xlu0 %v4313_v0, %s3233_s15 }
 0x285   :  { %1291 = vrot.lane.b32.xlu1 %v4317_v38, %s3233_s15 }
 0x287   :  { %1293 = vrot.lane.b32.xlu0 %v4321_v34, %s3233_s15 }
 0x289   :  { %1347 = vrot.lane.b32.xlu1 %v4309_v61, %s3234_s16 }
 0x28b   :  { %1349 = vrot.lane.b32.xlu0 %v4313_v0, %s3234_s16 }
 0x28d   :  { %1363 = vrot.lane.b32.xlu1 %v4317_v38, %s3234_s16 }
 0x28f   :  { %1365 = vrot.lane.b32.xlu0 %v4321_v34, %s3234_s16 }
 0x291   :  { %1419 = vrot.lane.b32.xlu1 %v4309_v61, %s3235_s18 }
 0x293   :  { %1421 = vrot.lane.b32.xlu0 %v4313_v0, %s3235_s18 }
 0x295   :  { %1435 = vrot.lane.b32.xlu1 %v4317_v38, %s3235_s18 }
 0x297   :  { %1437 = vrot.lane.b32.xlu0 %v4321_v34, %s3235_s18 }
 0x299   :  { %1499 = vrot.lane.b32.xlu1 %v4309_v61, %s3236_s21 }
 0x29b   :  { %1501 = vrot.lane.b32.xlu0 %v4313_v0, %s3236_s21 }
 0x29d   :  { %1515 = vrot.lane.b32.xlu1 %v4317_v38, %s3236_s21 }
 0x29f   :  { %1517 = vrot.lane.b32.xlu0 %v4321_v34, %s3236_s21 }
 0x2a1   :  { %1199 = vrot.lane.b32.xlu1 %v4357_v32, %s3232_s17 }
 0x2a3   :  { %1201 = vrot.lane.b32.xlu0 %v4361_v30, %s3232_s17 }
 0x2a5   :  { %1215 = vrot.lane.b32.xlu1 %v4365_v26, %s3232_s17 }
 0x2a7   :  { %1217 = vrot.lane.b32.xlu0 %v4369_v14, %s3232_s17 }
 0x2a9   :  { %1271 = vrot.lane.b32.xlu1 %v4357_v32, %s3233_s15 }
 0x2ab   :  { %1273 = vrot.lane.b32.xlu0 %v4361_v30, %s3233_s15 }
 0x2ad   :  { %1287 = vrot.lane.b32.xlu1 %v4365_v26, %s3233_s15 }
 0x2af   :  { %1289 = vrot.lane.b32.xlu0 %v4369_v14, %s3233_s15 }
 0x2b1   :  { %1343 = vrot.lane.b32.xlu1 %v4357_v32, %s3234_s16 }
 0x2b3   :  { %1345 = vrot.lane.b32.xlu0 %v4361_v30, %s3234_s16 }
 0x2b5   :  { %1359 = vrot.lane.b32.xlu1 %v4365_v26, %s3234_s16 }
 0x2b7   :  { %1361 = vrot.lane.b32.xlu0 %v4369_v14, %s3234_s16 }
 0x2b9   :  { %1415 = vrot.lane.b32.xlu1 %v4357_v32, %s3235_s18 }
 0x2bb   :  { %1417 = vrot.lane.b32.xlu0 %v4361_v30, %s3235_s18 }
 0x2bd   :  { %1431 = vrot.lane.b32.xlu1 %v4365_v26, %s3235_s18 }
 0x2bf   :  { %1433 = vrot.lane.b32.xlu0 %v4369_v14, %s3235_s18 }
 0x2c1   :  { %1495 = vrot.lane.b32.xlu1 %v4357_v32, %s3236_s21 }
 0x2c3   :  { %v1196_v47 = vpop.permute.xlu1 %1195  ;;  %1497 = vrot.lane.b32.xlu0 %v4361_v30, %s3236_s21 }
 0x2c5   :  { %v4407_v60 = vpop.permute.xlu0 %1197  ;;  %1511 = vrot.lane.b32.xlu1 %v4365_v26, %s3236_s21 }
 0x2c7   :  { %v1212_v24 = vpop.permute.xlu1 %1211  ;;  %1513 = vrot.lane.b32.xlu0 %v4369_v14, %s3236_s21 }
 0x2c9   :  { %v1214_v16 = vpop.permute.xlu0 %1213  ;;  %1207 = vrot.lane.b32.xlu1 %v4411_v28, %s3232_s17 }
 0x2cb   :  { %v4421_v1 = vpop.permute.xlu1 %1267  ;;  %1209 = vrot.lane.b32.xlu0 %v4415_v25, %s3232_s17 }
 0x2cd   :  { %v4427_v20 = vpop.permute.xlu0 %1269  ;;  %1223 = vrot.lane.b32.xlu1 %v4419_v42, %s3232_s17 }
 0x2cf   :  { %v4431_v27 = vpop.permute.xlu1 %1283  ;;  %1225 = vrot.lane.b32.xlu0 %v4425_v59, %s3232_s17  ;;  %s2866_s17 = sshll.u32 %s3245_s2, 4  ;;  %s2867_s17 = int_to_ptr.vmem [resolvable:$true] %s2866_s17 }
 0x2d0   :  { %p3213_p1 = scmp.lt.s32.totalorder %s2867_s17, %s2867_s17 }
 0x2d1   :  { %v4435_v3 = vpop.permute.xlu0 %1285  ;;  %1279 = vrot.lane.b32.xlu1 %v4411_v28, %s3233_s15 }
 0x2d3   :  { %v4439_v31 = vpop.permute.xlu1 %1339  ;;  %1281 = vrot.lane.b32.xlu0 %v4415_v25, %s3233_s15 }
 0x2d5   :  { %v4443_v5 = vpop.permute.xlu0 %1341  ;;  %1295 = vrot.lane.b32.xlu1 %v4419_v42, %s3233_s15 }
 0x2d7   :  { %v4447_v58 = vpop.permute.xlu1 %1355  ;;  %1297 = vrot.lane.b32.xlu0 %v4425_v59, %s3233_s15 }
 0x2d9   :  { %v4451_v15 = vpop.permute.xlu0 %1357  ;;  %1351 = vrot.lane.b32.xlu1 %v4411_v28, %s3234_s16 }
 0x2db   :  { %v4455_v46 = vpop.permute.xlu1 %1411  ;;  %1353 = vrot.lane.b32.xlu0 %v4415_v25, %s3234_s16 }
 0x2dd   :  { %v4459_v11 = vpop.permute.xlu0 %1413  ;;  %1367 = vrot.lane.b32.xlu1 %v4419_v42, %s3234_s16 }
 0x2de   :  { %5798 = vst [vmem:[#allocation32_spill] sm:$0xff] %v4459_v11 }
 0x2df   :  { %v4463_v17 = vpop.permute.xlu1 %1427  ;;  %1369 = vrot.lane.b32.xlu0 %v4425_v59, %s3234_s16 }
 0x2e1   :  { %v4467_v4 = vpop.permute.xlu0 %1429  ;;  %1423 = vrot.lane.b32.xlu1 %v4411_v28, %s3235_s18 }
 0x2e3   :  { %v4471_v10 = vpop.permute.xlu1 %1491  ;;  %1425 = vrot.lane.b32.xlu0 %v4415_v25, %s3235_s18 }
 0x2e4   :  { %5799 = vst [vmem:[#allocation33_spill] sm:$0xff] %v4471_v10 }
 0x2e5   :  { %v4475_v37 = vpop.permute.xlu0 %1493  ;;  %1439 = vrot.lane.b32.xlu1 %v4419_v42, %s3235_s18 }
 0x2e6   :  { %5800 = vst [vmem:[#allocation34_spill] sm:$0xff] %v4475_v37 }
 0x2e7   :  { %v4479_v22 = vpop.permute.xlu1 %1507  ;;  %1441 = vrot.lane.b32.xlu0 %v4425_v59, %s3235_s18 }
 0x2e8   :  { %5801 = vst [vmem:[#allocation35_spill] sm:$0xff] %v4479_v22 }
 0x2e9   :  { %v4483_v48 = vpop.permute.xlu0 %1509  ;;  %1503 = vrot.lane.b32.xlu1 %v4411_v28, %s3236_s21 }
 0x2ea   :  { %5802 = vst [vmem:[#allocation36_spill] sm:$0xff] %v4483_v48 }
 0x2eb   :  { %v1204_v7 = vpop.permute.xlu1 %1203  ;;  %1505 = vrot.lane.b32.xlu0 %v4415_v25, %s3236_s21 }
 0x2ec   :  { %v1235_v41 = vsel %vm99_vm0, %v1196_v47, %v1204_v7  ;;  %v1231_v50 = vsel %vm99_vm0, %v1204_v7, %v1212_v24 }
 0x2ed   :  { %v1206_v33 = vpop.permute.xlu0 %1205  ;;  %1519 = vrot.lane.b32.xlu1 %v4419_v42, %s3236_s21  ;;  %v1244_v55 = vmul.f32 %v1235_v41, %v3535_v23 }
 0x2ee   :  { %v1236_v57 = vsel %vm99_vm0, %v4407_v60, %v1206_v33  ;;  %v1232_v6 = vsel %vm99_vm0, %v1206_v33, %v1214_v16 }
 0x2ef   :  { %v1248_v44 = vmul.f32 %v1236_v57, %v3535_v23  ;;  %v1220_v9 = vpop.permute.xlu1 %1219  ;;  %1521 = vrot.lane.b32.xlu0 %v4425_v59, %s3236_s21  ;;  %v1249_v57 = vmul.f32 %v1232_v6, %v3557_v36 }
 0x2f0   :  { %v1227_v12 = vsel %vm99_vm0, %v1212_v24, %v1220_v9  ;;  %v1239_v2 = vsel %vm99_vm0, %v1220_v9, %v1196_v47 }
 0x2f1   :  { %v1222_v22 = vpop.permute.xlu0 %1221  ;;  %1563 = vrot.lane.b32.xlu1 %v4255_v19, %s3237_s24  ;;  %v1260_v33 = vpack.c.bf16 %v1248_v44, %v1244_v55  ;;  %v1243_v41 = vmul.f32 %v1239_v2, %v3568_v39  ;;  %v1246_v9 = vmul.f32 %v1227_v12, %v3571_v40  ;;  %v1245_v2 = vmul.f32 %v1231_v50, %v3557_v36 }
 0x2f2   :  { %v1228_v37 = vsel %vm99_vm0, %v1214_v16, %v1222_v22  ;;  %v1240_v10 = vsel %vm99_vm0, %v1222_v22, %v4407_v60 }
 0x2f3   :  { %v1247_v7 = vmul.f32 %v1240_v10, %v3568_v39  ;;  %v1250_v47 = vmul.f32 %v1228_v37, %v3571_v40  ;;  %v4520_v24 = vpop.permute.xlu1 %1275  ;;  %1823 = vmatprep.subr.bf16.mxu0 %v1260_v33  ;;  %1565 = vrot.lane.b32.xlu0 %v4257_v8, %s3237_s24  ;;  %v1261_v12 = vpack.c.bf16 %v1249_v57, %v1245_v2 }
 0x2f5   :  { %v1259_v44 = vpack.c.bf16 %v1247_v7, %v1243_v41  ;;  %v4525_v6 = vpop.permute.xlu0 %1277  ;;  %1571 = vrot.lane.b32.xlu1 %v4309_v61, %s3237_s24  ;;  %v1262_v55 = vpack.c.bf16 %v1250_v47, %v1246_v9 }
 0x2f7   :  { %v4529_v22 = vpop.permute.xlu1 %1291  ;;  %1824 = vmatpush1.bf16.msra.mxu0 %v1259_v44  ;;  %1929 = vmatprep.subr.bf16.mxu1 %v1262_v55 }
 0x2f8   :  { %1573 = vrot.lane.b32.xlu0 %v4313_v0, %s3237_s24  ;;  %1930 = vmatpush1.bf16.msra.mxu1 %v1261_v12 }
 0x2f9   :  { %v4533_v37 = vpop.permute.xlu0 %1293  ;;  %1579 = vrot.lane.b32.xlu1 %v4261_v13, %s3237_s24 }
 0x2fb   :  { %v4537_v50 = vpop.permute.xlu1 %1347 }
 0x2fc   :  { %1581 = vrot.lane.b32.xlu0 %v4267_v21, %s3237_s24 }
 0x2fd   :  { %v4541_v10 = vpop.permute.xlu0 %1349  ;;  %1587 = vrot.lane.b32.xlu1 %v4317_v38, %s3237_s24 }
 0x2ff   :  { %v4545_v60 = vpop.permute.xlu1 %1363 }
 0x300   :  { %1589 = vrot.lane.b32.xlu0 %v4321_v34, %s3237_s24 }
 0x301   :  { %v4549_v16 = vpop.permute.xlu0 %1365  ;;  %1567 = vrot.lane.b32.xlu1 %v4357_v32, %s3237_s24 }
 0x303   :  { %v4553_v33 = vpop.permute.xlu1 %1419 }
 0x304   :  { %1569 = vrot.lane.b32.xlu0 %v4361_v30, %s3237_s24 }
 0x305   :  { %v4557_v57 = vpop.permute.xlu0 %1421  ;;  %1575 = vrot.lane.b32.xlu1 %v4411_v28, %s3237_s24 }
 0x307   :  { %v4561_v41 = vpop.permute.xlu1 %1435 }
 0x308   :  { %5803 = vst [vmem:[#allocation37_spill] sm:$0xff] %v4561_v41  ;;  %1577 = vrot.lane.b32.xlu0 %v4415_v25, %s3237_s24 }
 0x309   :  { %v4565_v9 = vpop.permute.xlu0 %1437  ;;  %1583 = vrot.lane.b32.xlu1 %v4365_v26, %s3237_s24 }
 0x30a   :  { %5804 = vst [vmem:[#allocation38_spill] sm:$0xff] %v4565_v9 }
 0x30b   :  { %v4569_v7 = vpop.permute.xlu1 %1499 }
 0x30c   :  { %5805 = vst [vmem:[#allocation39_spill] sm:$0xff] %v4569_v7  ;;  %1585 = vrot.lane.b32.xlu0 %v4369_v14, %s3237_s24 }
 0x30d   :  { %v4573_v47 = vpop.permute.xlu0 %1501  ;;  %1591 = vrot.lane.b32.xlu1 %v4419_v42, %s3237_s24 }
 0x30e   :  { %5806 = vst [vmem:[#allocation40_spill] sm:$0xff] %v4573_v47 }
 0x30f   :  { %v4577_v2 = vpop.permute.xlu1 %1515 }
 0x310   :  { %5807 = vst [vmem:[#allocation41_spill] sm:$0xff] %v4577_v2  ;;  %1593 = vrot.lane.b32.xlu0 %v4425_v59, %s3237_s24 }
 0x311   :  { %v4581_v44 = vpop.permute.xlu0 %1517  ;;  %1635 = vrot.lane.b32.xlu1 %v4255_v19, %s3238_s27 }
 0x312   :  { %5808 = vst [vmem:[#allocation42_spill] sm:$0xff] %v4581_v44 }
 0x313   :  { %v4585_v55 = vpop.permute.xlu1 %1199 }
 0x314   :  { %1637 = vrot.lane.b32.xlu0 %v4257_v8, %s3238_s27 }
 0x315   :  { %1643 = vrot.lane.b32.xlu1 %v4309_v61, %s3238_s27  ;;  %v4591_v12 = vpop.permute.xlu0 %1201 }
 0x317   :  { %v4593_v7 = vpop.permute.xlu1 %1215 }
 0x318   :  { %1645 = vrot.lane.b32.xlu0 %v4313_v0, %s3238_s27 }
 0x319   :  { %1651 = vrot.lane.b32.xlu1 %v4261_v13, %s3238_s27  ;;  %v4599_v2 = vpop.permute.xlu0 %1217 }
 0x31b   :  { %v4601_v44 = vpop.permute.xlu1 %1271 }
 0x31c   :  { %1653 = vrot.lane.b32.xlu0 %v4267_v21, %s3238_s27 }
 0x31d   :  { %1659 = vrot.lane.b32.xlu1 %v4317_v38, %s3238_s27  ;;  %v4607_v47 = vpop.permute.xlu0 %1273 }
 0x31f   :  { %v4609_v48 = vpop.permute.xlu1 %1287 }
 0x320   :  { %5809 = vst [vmem:[#allocation43_spill] sm:$0xff] %v4609_v48  ;;  %1661 = vrot.lane.b32.xlu0 %v4321_v34, %s3238_s27 }
 0x321   :  { %1639 = vrot.lane.b32.xlu1 %v4357_v32, %s3238_s27  ;;  %v4615_v51 = vpop.permute.xlu0 %1289 }
 0x323   :  { %v4617_v54 = vpop.permute.xlu1 %1343 }
 0x324   :  { %5810 = vst [vmem:[#allocation44_spill] sm:$0xff] %v4617_v54  ;;  %1641 = vrot.lane.b32.xlu0 %v4361_v30, %s3238_s27 }
 0x325   :  { %1647 = vrot.lane.b32.xlu1 %v4411_v28, %s3238_s27  ;;  %v4623_v9 = vpop.permute.xlu0 %1345 }
 0x326   :  { %5811 = vst [vmem:[#allocation45_spill] sm:$0xff] %v4623_v9 }
 0x327   :  { %v4625_v41 = vpop.permute.xlu1 %1359 }
 0x328   :  { %5812 = vst [vmem:[#allocation46_spill] sm:$0xff] %v4625_v41  ;;  %1649 = vrot.lane.b32.xlu0 %v4415_v25, %s3238_s27 }
 0x329   :  { %1655 = vrot.lane.b32.xlu1 %v4365_v26, %s3238_s27  ;;  %v4631_v48 = vpop.permute.xlu0 %1361 }
 0x32a   :  { %5813 = vst [vmem:[#allocation47_spill] sm:$0xff] %v4631_v48 }
 0x32b   :  { %v4633_v11 = vpop.permute.xlu1 %1415 }
 0x32c   :  { %5814 = vst [vmem:[#allocation48_spill] sm:$0xff] %v4633_v11  ;;  %1657 = vrot.lane.b32.xlu0 %v4369_v14, %s3238_s27  ;;  %v3169_v11 = vld [vmem:[%s5690_s5 + $0x4] ss:$12 sps:$4 sm:$0xff]  }
 0x32d   :  { %1663 = vrot.lane.b32.xlu1 %v4419_v42, %s3238_s27  ;;  %v4639_v54 = vpop.permute.xlu0 %1417  ;;  %1855 = vmatprep.mubr.bf16.mxu0 %v3169_v11 }
 0x32e   :  { %5815 = vst [vmem:[#allocation49_spill] sm:$0xff] %v4639_v54  ;;  %1961 = vmatprep.mubr.bf16.mxu1 %v3169_v11  ;;  %v1311_v11 = vsel %vm194_vm1, %v4529_v22, %v4421_v1 }
 0x32f   :  { %v4641_v9 = vpop.permute.xlu1 %1431 }
 0x330   :  { %5816 = vst [vmem:[#allocation50_spill] sm:$0xff] %v4641_v9  ;;  %1665 = vrot.lane.b32.xlu0 %v4425_v59, %s3238_s27  ;;  %v1304_v9 = vsel %vm194_vm1, %v4525_v6, %v4435_v3  ;;  %s3208_s27 = scalar_lea.vmem %s2867_s17, 2048 }
 0x331   :  { %1707 = vrot.lane.b32.xlu1 %v4255_v19, %s3239_s20  ;;  %v4647_v41 = vpop.permute.xlu0 %1433  ;;  %v1308_v19 = vsel %vm194_vm1, %v4427_v20, %v4525_v6  ;;  %v1300_v6 = vsel %vm194_vm1, %v4435_v3, %v4533_v37  ;;  %v4694_v54 = vmul.f32 %v1304_v9, %v3653_v56  ;;  %v1299_v3 = vsel %vm194_vm1, %v4431_v27, %v4529_v22  ;;  %p3209_p0 = scmp.ne.s32.totalorder %s2867_s17, %s3208_s27  ;;  %p3214_p2 = scmp.lt.s32.totalorder %s3208_s27, %s3208_s27 }
 0x332   :  { %5817 = vst [vmem:[#allocation51_spill] sm:$0xff] %v4647_v41  ;;  %v1312_v41 = vsel %vm194_vm1, %v4533_v37, %v4427_v20  ;;  %v1303_v20 = vsel %vm194_vm1, %v4520_v24, %v4431_v27  ;;  %v4719_v27 = vmul.f32 %v1311_v11, %v3662_v62  ;;  %v1379_v22 = vsel %vm290_vm2, %v4439_v31, %v4537_v50 }
 0x333   :  { %v4652_v48 = vpop.permute.xlu1 %1495  ;;  %v4716_v9 = vmul.f32 %v1303_v20, %v3653_v56  ;;  %v1380_v20 = vsel %vm290_vm2, %v4443_v5, %v4541_v10  ;;  %p3215_p3 = por %p3214_p2, %p3213_p1 }
 0x334   :  { %5818 = vst [vmem:[#allocation52_spill] sm:$0xff] %v4652_v48  ;;  %1709 = vrot.lane.b32.xlu0 %v4257_v8, %s3239_s20  ;;  %v1307_v8 = vsel %vm194_vm1, %v4421_v1, %v4520_v24  ;;  %v4701_v24 = vmul.f32 %v1312_v41, %v3662_v62  ;;  %v4730_v41 = vmul.f32 %v1299_v3, %v3665_v63 }
 0x335   :  { %1715 = vrot.lane.b32.xlu1 %v4309_v61, %s3239_s20  ;;  %v4670_v48 = vpop.permute.xlu0 %1497  ;;  %v4691_v61 = vmul.f32 %v1308_v19, %v3638_v49  ;;  %v4706_v1 = vmul.f32 %v1307_v8, %v3638_v49  ;;  %v4709_v19 = vmul.f32 %v1300_v6, %v3665_v63  ;;  %v1375_v8 = vsel %vm290_vm2, %v4537_v50, %v4447_v58  ;;  %p3216_p4 = pnand %p3215_p3, %p3209_p0 }
 0x336   :  { %5819 = vst [vmem:[#allocation53_spill] sm:$0xff] %v4670_v48  ;;  %v1376_v6 = vsel %vm290_vm2, %v4541_v10, %v4451_v15  ;;  %v4755_v10 = vmul.f32 %v1375_v8, %v3749_v45  ;;  %v1372_v8 = vsel %vm290_vm2, %v4451_v15, %v4549_v16  ;;  %v1383_v15 = vsel %vm290_vm2, %v4545_v60, %v4439_v31 }
 0x337   :  { %v4688_v48 = vpop.permute.xlu1 %1511  ;;  %v1451_v31 = vsel %vm386_vm3, %v4455_v46, %v4553_v33 }
 0x338   :  { %5820 = vst [vmem:[#allocation54_spill] sm:$0xff] %v4688_v48  ;;  %1717 = vrot.lane.b32.xlu0 %v4313_v0, %s3239_s20  ;;  %v1384_v48 = vsel %vm290_vm2, %v4549_v16, %v4443_v5 }
 0x339   :  { %1723 = vrot.lane.b32.xlu1 %v4261_v13, %s3239_s20  ;;  %v4713_v37 = vpop.permute.xlu0 %1513  ;;  %v4752_v13 = vmul.f32 %v1379_v22, %v3734_v35  ;;  %v1371_v22 = vsel %vm290_vm2, %v4447_v58, %v4545_v60  ;;  %v4792_v16 = vmul.f32 %v1384_v48, %v3758_v52  ;;  %v1447_v48 = vsel %vm386_vm3, %v4553_v33, %v4463_v17 }
 0x33a   :  { %5821 = vst [vmem:[#allocation55_spill] sm:$0xff] %v4713_v37  ;;  %v1332_v37 = vpack.c.bf16 %v4691_v61, %v4706_v1  ;;  %v4766_v61 = vmul.f32 %v1380_v20, %v3734_v35  ;;  %v4769_v1 = vmul.f32 %v1376_v6, %v3749_v45 }
 0x33b   :  { %v1208_v11 = vpop.permute.xlu1 %1207 }
 0x33c   :  { %v1237_v3 = vsel %vm99_vm0, %v4585_v55, %v1208_v11  ;;  %1725 = vrot.lane.b32.xlu0 %v4267_v21, %s3239_s20 }
 0x33d   :  { %1731 = vrot.lane.b32.xlu1 %v4317_v38, %s3239_s20  ;;  %v1210_v50 = vpop.permute.xlu0 %1209  ;;  %v1252_v20 = vmul.f32 %v1237_v3, %v3535_v23 }
 0x33e   :  { %v1238_v5 = vsel %vm99_vm0, %v4591_v12, %v1210_v50  ;;  %v1234_v6 = vsel %vm99_vm0, %v1210_v50, %v4599_v2 }
 0x33f   :  { %v1256_v21 = vmul.f32 %v1238_v5, %v3535_v23  ;;  %v1224_v38 = vpop.permute.xlu1 %1223  ;;  %v4803_v23 = vmul.f32 %v1372_v8, %v3761_v53  ;;  %v1257_v50 = vmul.f32 %v1234_v6, %v3557_v36 }
 0x340   :  { %v1229_v58 = vsel %vm99_vm0, %v4593_v7, %v1224_v38  ;;  %v1241_v3 = vsel %vm99_vm0, %v1224_v38, %v4585_v55  ;;  %1733 = vrot.lane.b32.xlu0 %v4321_v34, %s3239_s20  ;;  %v1233_v55 = vsel %vm99_vm0, %v1208_v11, %v4593_v7  ;;  %v1405_v7 = vpack.c.bf16 %v4769_v1, %v4755_v10  ;;  %v5837_v1 = vld [vmem:[#allocation51_spill] sm:$0xff] }
 0x341   :  { %1711 = vrot.lane.b32.xlu1 %v4357_v32, %s3239_s20  ;;  %v1226_v38 = vpop.permute.xlu0 %1225  ;;  %v1264_v60 = vpack.c.bf16 %v1256_v21, %v1252_v20  ;;  %v1251_v33 = vmul.f32 %v1241_v3, %v3568_v39  ;;  %v1254_v32 = vmul.f32 %v1229_v58, %v3571_v40  ;;  %v4832_v11 = vmul.f32 %v1383_v15, %v3758_v52 }
 0x342   :  { %v1230_v8 = vsel %vm99_vm0, %v4599_v2, %v1226_v38  ;;  %v1242_v5 = vsel %vm99_vm0, %v1226_v38, %v4591_v12  ;;  %v4835_v2 = vmul.f32 %v1371_v22, %v3761_v53  ;;  %v1404_v12 = vpack.c.bf16 %v4766_v61, %v4752_v13 }
 0x343   :  { %v1255_v21 = vmul.f32 %v1242_v5, %v3568_v39  ;;  %v1258_v20 = vmul.f32 %v1230_v8, %v3571_v40  ;;  %v1280_v34 = vpop.permute.xlu1 %1279  ;;  %1825 = vmatprep.subr.bf16.mxu0 %v1264_v60  ;;  %v1253_v39 = vmul.f32 %v1233_v55, %v3557_v36  ;;  %v1403_v22 = vpack.c.bf16 %v4792_v16, %v4832_v11 }
 0x344   :  { %1713 = vrot.lane.b32.xlu0 %v4361_v30, %s3239_s20  ;;  %v1309_v6 = vsel %vm194_vm1, %v4601_v44, %v1280_v34  ;;  %v4850_v3 = vmul.f32 %v1451_v31, %v3830_v29  ;;  %v4853_v38 = vmul.f32 %v1447_v48, %v3845_v43 }
 0x345   :  { %v1263_v40 = vpack.c.bf16 %v1255_v21, %v1251_v33  ;;  %1719 = vrot.lane.b32.xlu1 %v4411_v28, %s3239_s20  ;;  %v1282_v15 = vpop.permute.xlu0 %1281  ;;  %v1266_v58 = vpack.c.bf16 %v1258_v20, %v1254_v32  ;;  %v1265_v60 = vpack.c.bf16 %v1257_v50, %v1253_v39  ;;  %v1406_v32 = vpack.c.bf16 %v4803_v23, %v4835_v2  ;;  %v5822_v23 = vld [vmem:[#allocation32_spill] sm:$0xff]  ;;  %v5823_v33 = vld [vmem:[#allocation43_spill] sm:$0xff] }
 0x346   :  { %v1310_v36 = vsel %vm194_vm1, %v4607_v47, %v1282_v15  ;;  %v1324_v5 = vmul.f32 %v1309_v6, %v3638_v49  ;;  %v1306_v48 = vsel %vm194_vm1, %v1282_v15, %v4615_v51  ;;  %v1448_v50 = vsel %vm386_vm3, %v4557_v57, %v4467_v4 }
 0x347   :  { %v1328_v55 = vmul.f32 %v1310_v36, %v3638_v49  ;;  %v1296_v8 = vpop.permute.xlu1 %1295  ;;  %1826 = vmatpush1.bf16.msra.mxu0 %v1263_v40  ;;  %1931 = vmatprep.subr.bf16.mxu1 %v1266_v58  ;;  %v1452_v49 = vsel %vm386_vm3, %v5822_v23, %v4557_v57  ;;  %v5824_v20 = vpack.c.bf16 %v4709_v19, %v4730_v41 }
 0x348   :  { %v1313_v31 = vsel %vm194_vm1, %v1296_v8, %v4601_v44  ;;  %1721 = vrot.lane.b32.xlu0 %v4415_v25, %s3239_s20  ;;  %1827 = vmatprep.subr.bf16.mxu0 %v1332_v37  ;;  %v1301_v21 = vsel %vm194_vm1, %v5823_v33, %v1296_v8  ;;  %v1305_v37 = vsel %vm194_vm1, %v1280_v34, %v5823_v33 }
 0x349   :  { %1932 = vmatpush1.bf16.msra.mxu1 %v1265_v60  ;;  %1727 = vrot.lane.b32.xlu1 %v4365_v26, %s3239_s20  ;;  %v1298_v44 = vpop.permute.xlu0 %1297  ;;  %v1336_v39 = vpack.c.bf16 %v1328_v55, %v1324_v5  ;;  %v1329_v40 = vmul.f32 %v1306_v48, %v3653_v56  ;;  %v1323_v6 = vmul.f32 %v1313_v31, %v3662_v62  ;;  %v5826_v60 = vld [vmem:[#allocation44_spill] sm:$0xff]  ;;  %v5829_v5 = vld [vmem:[#allocation47_spill] sm:$0xff]  ;;  %v5830_v48 = vld [vmem:[#allocation45_spill] sm:$0xff] }
 0x34a   :  { %1933 = vmatprep.subr.bf16.mxu1 %v5824_v20  ;;  %v1302_v57 = vsel %vm194_vm1, %v4615_v51, %v1298_v44  ;;  %v1314_v2 = vsel %vm194_vm1, %v1298_v44, %v4607_v47  ;;  %v5825_v19 = vpack.c.bf16 %v4701_v24, %v4719_v27  ;;  %v4903_v51 = vmul.f32 %v1452_v49, %v3830_v29  ;;  %v2035_v44 = vld [vmem:[%s5691_s6] sm:$0xff]  ;;  %v5832_v20 = vld [vmem:[#allocation46_spill] sm:$0xff] }
 0x34b   :  { %v1327_v15 = vmul.f32 %v1314_v2, %v3662_v62  ;;  %v1330_v34 = vmul.f32 %v1302_v57, %v3665_v63  ;;  %v1352_v58 = vpop.permute.xlu1 %1351  ;;  %v4906_v41 = vmul.f32 %v1448_v50, %v3845_v43  ;;  %v1326_v47 = vmul.f32 %v1301_v21, %v3665_v63  ;;  %v5828_v63 = vld [vmem:[#allocation37_spill] sm:$0xff] }
 0x34c   :  { %1828 = vmatpush1.bf16.msra.mxu0 %v5825_v19  ;;  %1729 = vrot.lane.b32.xlu0 %v4369_v14, %s3239_s20  ;;  %v1325_v62 = vmul.f32 %v1305_v37, %v3653_v56  ;;  %v1381_v24 = vsel %vm290_vm2, %v5826_v60, %v1352_v58  ;;  %v5827_v27 = vpack.c.bf16 %v4694_v54, %v4716_v9  ;;  %v5831_v9 = vld [vmem:[#allocation38_spill] sm:$0xff]  ;;  %v5833_v19 = vld [vmem:[#allocation7_spill] sm:$0xff] }
 0x34d   :  { %1829 = vmatprep.subr.bf16.mxu0 %v1336_v39  ;;  %v1335_v36 = vpack.c.bf16 %v1327_v15, %v1323_v6  ;;  %1735 = vrot.lane.b32.xlu1 %v4419_v42, %s3239_s20  ;;  %v1354_v55 = vpop.permute.xlu0 %1353  ;;  %v1443_v8 = vsel %vm386_vm3, %v4463_v17, %v5828_v63  ;;  %v1338_v50 = vpack.c.bf16 %v1330_v34, %v1326_v47 }
 0x34e   :  { %1934 = vmatpush1.bf16.msra.mxu1 %v5827_v27  ;;  %v1378_v56 = vsel %vm290_vm2, %v1354_v55, %v5829_v5  ;;  %v1382_v31 = vsel %vm290_vm2, %v5830_v48, %v1354_v55  ;;  %v1455_v54 = vsel %vm386_vm3, %v5828_v63, %v4455_v46  ;;  %v1444_v49 = vsel %vm386_vm3, %v4467_v4, %v5831_v9  ;;  %v5836_v63 = vld [vmem:[#allocation49_spill] sm:$0xff] }
 0x34f   :  { %v1337_v17 = vpack.c.bf16 %v1329_v40, %v1325_v62  ;;  %v1400_v33 = vmul.f32 %v1382_v31, %v3734_v35  ;;  %v1368_v21 = vpop.permute.xlu1 %1367  ;;  %v1396_v37 = vmul.f32 %v1381_v24, %v3734_v35  ;;  %1935 = vmatprep.subr.bf16.mxu1 %v1338_v50  ;;  %v1456_v4 = vsel %vm386_vm3, %v5831_v9, %v5822_v23  ;;  %v2075_v40 = vld [vmem:[%s5692_s7] sm:$0xff]  ;;  %v5838_v50 = vld [vmem:[#allocation50_spill] sm:$0xff] }
 0x350   :  { %1830 = vmatpush1.bf16.msra.mxu0 %v1335_v36  ;;  %v1373_v46 = vsel %vm290_vm2, %v5832_v20, %v1368_v21  ;;  %v1385_v57 = vsel %vm290_vm2, %v1368_v21, %v5826_v60  ;;  %1737 = vrot.lane.b32.xlu0 %v4425_v59, %s3239_s20  ;;  %v1377_v35 = vsel %vm290_vm2, %v1352_v58, %v5832_v20  ;;  %v5834_v36 = vld [vmem:[#allocation48_spill] sm:$0xff] }
 0x351   :  { %v1401_v2 = vmul.f32 %v1378_v56, %v3749_v45  ;;  %1831 = vmatprep.subr.bf16.mxu0 %v1404_v12  ;;  %v1370_v39 = vpop.permute.xlu0 %1369  ;;  %2041 = vperm.xlu1 %3158, %v2035_v44   ;;  %v1408_v15 = vpack.c.bf16 %v1400_v33, %v1396_v37  ;;  %v1395_v13 = vmul.f32 %v1385_v57, %v3758_v52  ;;  %v2077_v33 = vld [vmem:[%s5692_s7 + $0x10] sm:$0xff] }
 0x352   :  { %1936 = vmatpush1.bf16.msra.mxu1 %v1337_v17  ;;  %v1374_v23 = vsel %vm290_vm2, %v5829_v5, %v1370_v39  ;;  %v1386_v6 = vsel %vm290_vm2, %v1370_v39, %v5830_v48  ;;  %v1398_v61 = vmul.f32 %v1373_v46, %v3761_v53  ;;  %v1466_v47 = vmul.f32 %v1444_v49, %v5833_v19 }
 0x353   :  { %1937 = vmatprep.subr.bf16.mxu1 %v1406_v32  ;;  %v1399_v12 = vmul.f32 %v1386_v6, %v3758_v52  ;;  %v1402_v34 = vmul.f32 %v1374_v23, %v3761_v53  ;;  %v1424_v58 = vpop.permute.xlu1 %1423  ;;  %v2036_v32 = vld [vmem:[%s5691_s6 + $0x8] sm:$0xff]  ;;  %v1397_v62 = vmul.f32 %v1377_v35, %v3749_v45  ;;  %v1462_v27 = vmul.f32 %v1443_v8, %v5833_v19  ;;  %v2037_v8 = vld [vmem:[%s5691_s6 + $0x10] sm:$0xff]  ;;  %v2038_v35 = vld [vmem:[%s5691_s6 + $0x18] sm:$0xff] }
 0x354   :  { %1832 = vmatpush1.bf16.msra.mxu0 %v1403_v22  ;;  %v1453_v60 = vsel %vm386_vm3, %v5834_v36, %v1424_v58  ;;  %2081 = vperm.xlu0 %3157, %v2075_v40   ;;  %v5835_v52 = vld [vmem:[#allocation6_spill] sm:$0xff]  ;;  %v1476_v56 = vpack.c.bf16 %v4903_v51, %v4850_v3  ;;  %v1449_v49 = vsel %vm386_vm3, %v1424_v58, %v5838_v50  ;;  %v2078_v23 = vld [vmem:[%s5692_s7 + $0x18] sm:$0xff] }
 0x355   :  { %1833 = vmatprep.subr.bf16.mxu0 %v1408_v15  ;;  %v1459_v53 = vmul.f32 %v1455_v54, %v5835_v52  ;;  %v1463_v24 = vmul.f32 %v1456_v4, %v5835_v52  ;;  %v1407_v16 = vpack.c.bf16 %v1399_v12, %v1395_v13  ;;  %v1426_v11 = vpop.permute.xlu0 %1425  ;;  %v2076_v45 = vld [vmem:[%s5692_s7 + $0x8] sm:$0xff]  ;;  %v1410_v22 = vpack.c.bf16 %v1402_v34, %v1398_v61  ;;  %v5839_v15 = vld [vmem:[#allocation28_spill] sm:$0xff]  ;;  %v5841_v12 = vld [vmem:[#allocation25_spill] sm:$0xff] }
 0x356   :  { %1938 = vmatpush1.bf16.msra.mxu1 %v1405_v7  ;;  %v1409_v55 = vpack.c.bf16 %v1401_v2, %v1397_v62  ;;  %2046 = vperm.xlu1 %3158, %v2036_v32   ;;  %v1454_v5 = vsel %vm386_vm3, %v5836_v63, %v1426_v11  ;;  %v1468_v10 = vmul.f32 %v1453_v60, %v3830_v29  ;;  %v5840_v61 = vld [vmem:[#allocation24_spill] sm:$0xff]  ;;  %v2350_v62 = vld [vmem:[%s5696_s11] sm:$0x3]  ;;  %v5845_v60 = vld [vmem:[#allocation27_spill] sm:$0xff] }
 0x357   :  { %v1450_v7 = vsel %vm386_vm3, %v1426_v11, %v5837_v1  ;;  %v1472_v48 = vmul.f32 %v1454_v5, %v3830_v29  ;;  %v1440_v31 = vpop.permute.xlu1 %1439  ;;  %1939 = vmatprep.subr.bf16.mxu1 %v1410_v22  ;;  %v1478_v51 = vpack.c.bf16 %v1466_v47, %v1462_v27  ;;  %v1477_v29 = vpack.c.bf16 %v4906_v41, %v4853_v38  ;;  %v5842_v58 = vld [vmem:[#allocation36_spill] sm:$0xff]  ;;  %v5849_v11 = vld [vmem:[#allocation42_spill] sm:$0xff]  ;;  %v5850_v22 = vld [vmem:[#allocation29_spill] sm:$0xff] }
 0x358   :  { %1834 = vmatpush1.bf16.msra.mxu0 %v1407_v16  ;;  %v1445_v54 = vsel %vm386_vm3, %v5838_v50, %v1440_v31  ;;  %v1457_v3 = vsel %vm386_vm3, %v1440_v31, %v5834_v36  ;;  %2086 = vperm.xlu0 %3157, %v2076_v45   ;;  %v1475_v9 = vpack.c.bf16 %v1463_v24, %v1459_v53  ;;  %v5843_v32 = vld [vmem:[#allocation40_spill] sm:$0xff]  ;;  %v5844_v36 = vld [vmem:[#allocation26_spill] sm:$0xff]  ;;  %v5847_v53 = vld [vmem:[#allocation33_spill] sm:$0xff] }
 0x359   :  { %1835 = vmatprep.subr.bf16.mxu0 %v1476_v56  ;;  %v1442_v17 = vpop.permute.xlu0 %1441  ;;  %v1480_v21 = vpack.c.bf16 %v1472_v48, %v1468_v10  ;;  %v1473_v44 = vmul.f32 %v1450_v7, %v3845_v43  ;;  %v1467_v37 = vmul.f32 %v1457_v3, %v5835_v52  ;;  %v1470_v20 = vmul.f32 %v1445_v54, %v5833_v19  ;;  %v5848_v16 = vld [vmem:[#allocation34_spill] sm:$0xff]  ;;  %v5853_v48 = vld [vmem:[#allocation31_spill] sm:$0xff]  ;;  %v5855_v54 = vld [vmem:[#allocation41_spill] sm:$0xff] }
 0x35a   :  { %1940 = vmatpush1.bf16.msra.mxu1 %v1409_v55  ;;  %2051 = vperm.xlu1 %3158, %v2037_v8   ;;  %v1446_v38 = vsel %vm386_vm3, %v5837_v1, %v1442_v17  ;;  %v1458_v41 = vsel %vm386_vm3, %v1442_v17, %v5836_v63  ;;  %v1469_v2 = vmul.f32 %v1449_v49, %v3845_v43  ;;  %v5851_v27 = vld [vmem:[#allocation30_spill] sm:$0xff]  ;;  %v5852_v63 = vld [vmem:[#allocation35_spill] sm:$0xff]  ;;  %v2434_v1 = vld [vmem:[%s5698_s13] sm:$0xff] }
 0x35b   :  { %1941 = vmatprep.subr.bf16.mxu1 %v1478_v51  ;;  %v1471_v46 = vmul.f32 %v1458_v41, %v5835_v52  ;;  %v1474_v57 = vmul.f32 %v1446_v38, %v5833_v19  ;;  %v5033_v4 = vpop.permute.xlu1 %1503  ;;  %v1484_v13 = vpack.c.bf16 %v4313_v0, %v5839_v15  ;;  %v1483_v34 = vpack.c.bf16 %v5841_v12, %v5840_v61  ;;  %v5846_v52 = vld [vmem:[#allocation39_spill] sm:$0xff]  ;;  %v5854_v8 = vld [vmem:[#allocation9_spill] sm:$0xff]  ;;  %v5862_v15 = vld [vmem:[#allocation52_spill] sm:$0xff] }
 0x35c   :  { %1836 = vmatpush1.bf16.msra.mxu0 %v1475_v9  ;;  %2091 = vperm.xlu0 %3157, %v2077_v33   ;;  %v1528_v43 = vsel %vm490_vm4, %v5843_v32, %v5842_v58  ;;  %v1481_v19 = vpack.c.bf16 %v1473_v44, %v1469_v2  ;;  %v1485_v0 = vpack.c.bf16 %v5845_v60, %v5844_v36  ;;  %v5857_v49 = vld [vmem:[#allocation11_spill] sm:$0xff]  ;;  %v2435_v33 = vld [vmem:[%s5698_s13 + $0x8] sm:$0xff] }
 0x35d   :  { %1837 = vmatprep.subr.bf16.mxu0 %v1480_v21  ;;  %v1479_v39 = vpack.c.bf16 %v1471_v46, %v1467_v37  ;;  %v1506_v40 = vpop.permute.xlu0 %1505  ;;  %v1482_v6 = vpack.c.bf16 %v1474_v57, %v1470_v20  ;;  %v1531_v24 = vsel %vm490_vm4, %v5847_v53, %v5846_v52  ;;  %v1536_v45 = vsel %vm490_vm4, %v5849_v11, %v5848_v16  ;;  %v5859_v37 = vld [vmem:[#allocation54_spill] sm:$0xff]  ;;  %v2436_v57 = vld [vmem:[%s5698_s13 + $0x10] sm:$0xff] }
 0x35e   :  { %1942 = vmatpush1.bf16.msra.mxu1 %v1477_v29  ;;  %2056 = vperm.xlu1 %3158, %v2038_v35   ;;  %v1486_v55 = vpack.c.bf16 %v5851_v27, %v5850_v22  ;;  %v1527_v5 = vsel %vm490_vm4, %v5846_v52, %v5852_v63  ;;  %v1532_v56 = vsel %vm490_vm4, %v5848_v16, %v5843_v32  ;;  %v5856_v29 = vld [vmem:[#allocation8_spill] sm:$0xff] }
 0x35f   :  { %v5050_v47 = vpop.permute.xlu1 %1519  ;;  %1943 = vmatprep.subr.bf16.mxu1 %v1482_v6  ;;  %v1488_v7 = vpack.c.bf16 %v4415_v25, %v4411_v28  ;;  %v1487_v31 = vpack.c.bf16 %v4361_v30, %v5853_v48  ;;  %v1544_v50 = vmul.f32 %v1528_v43, %v5854_v8  ;;  %v1535_v3 = vsel %vm490_vm4, %v5855_v54, %v5847_v53  ;;  %v5858_v28 = vld [vmem:[#allocation55_spill] sm:$0xff] }
 0x360   :  { %1838 = vmatpush1.bf16.msra.mxu0 %v1479_v39  ;;  %2096 = vperm.xlu0 %3157, %v2078_v23   ;;  %v1489_v51 = vpack.c.bf16 %v4369_v14, %v4365_v26  ;;  %v1539_v9 = vmul.f32 %v1531_v24, %v5856_v29  ;;  %v1546_v17 = vmul.f32 %v1536_v45, %v5857_v49  ;;  %v5861_v23 = vld [vmem:[#allocation10_spill] sm:$0xff] }
 0x361   :  { %1839 = vmatprep.subr.bf16.mxu0 %v1484_v13  ;;  %v1522_v10 = vpop.permute.xlu0 %1521  ;;  %v1530_v30 = vsel %vm490_vm4, %v1506_v40, %v5858_v28  ;;  %v1490_v21 = vpack.c.bf16 %v4425_v59, %v4419_v42  ;;  %v1540_v26 = vmul.f32 %v1527_v5, %v5854_v8  ;;  %v1543_v14 = vmul.f32 %v1532_v56, %v5856_v29  ;;  %v5860_v59 = vld [vmem:[#allocation53_spill] sm:$0xff] }
 0x362   :  { %1944 = vmatpush1.bf16.msra.mxu1 %v1481_v19  ;;  %2353 = vperm.xlu1 %3158, %v2350_v62   ;;  %v1524_v44 = vsel %vm490_vm4, %v5842_v58, %v5849_v11  ;;  %v1523_v38 = vsel %vm490_vm4, %v5852_v63, %v5855_v54  ;;  %v1542_v41 = vmul.f32 %v1535_v3, %v5857_v49 }
 0x363   :  { %1945 = vmatprep.subr.bf16.mxu1 %v1486_v55  ;;  %v5094_v25 = vpop.permute.xlu1 %1563  ;;  %v1529_v42 = vsel %vm490_vm4, %v5033_v4, %v5859_v37  ;;  %v1538_v20 = vsel %vm490_vm4, %v1522_v10, %v5860_v59  ;;  %v1534_v35 = vsel %vm490_vm4, %v5860_v59, %v1506_v40  ;;  %v1552_v2 = vmul.f32 %v1530_v30, %v5854_v8  ;;  %v2437_v40 = vld [vmem:[%s5698_s13 + $0x18] sm:$0xff] }
 0x364   :  { %1840 = vmatpush1.bf16.msra.mxu0 %v1483_v34  ;;  %2440 = vperm.xlu0 %3157, %v2434_v1   ;;  %v1556_v39 = vpack.c.bf16 %v1544_v50, %v1540_v26  ;;  %v1545_v6 = vmul.f32 %v1524_v44, %v5861_v23  ;;  %v1533_v13 = vsel %vm490_vm4, %v5862_v15, %v5033_v4  ;;  %v5866_v26 = vld [vmem:[#allocation15_spill] sm:$0xff] }
 0x365   :  { %1841 = vmatprep.subr.bf16.mxu0 %v1488_v7  ;;  %v1566_v46 = vpop.permute.xlu0 %1565  ;;  %v1537_v61 = vsel %vm490_vm4, %v5050_v47, %v5862_v15  ;;  %v1558_v34 = vpack.c.bf16 %v1546_v17, %v1542_v41  ;;  %v1548_v58 = vmul.f32 %v1529_v42, %v5854_v8  ;;  %v1526_v32 = vsel %vm490_vm4, %v5858_v28, %v1522_v10  ;;  %v5863_v10 = vld [vmem:[#allocation12_spill] sm:$0xff] }
 0x366   :  { %1946 = vmatpush1.bf16.msra.mxu1 %v1485_v0  ;;  %2445 = vperm.xlu1 %3158, %v2435_v33   ;;  %v1554_v4 = vmul.f32 %v1538_v20, %v5857_v49  ;;  %v1555_v43 = vpack.c.bf16 %v1543_v14, %v1539_v9  ;;  %v1541_v19 = vmul.f32 %v1523_v38, %v5861_v23  ;;  %v5865_v33 = vld [vmem:[#allocation14_spill] sm:$0xff] }
 0x367   :  { %1947 = vmatprep.subr.bf16.mxu1 %v1490_v21  ;;  %v1572_v12 = vpop.permute.xlu1 %1571  ;;  %v1551_v62 = vmul.f32 %v1534_v35, %v5856_v29  ;;  %v1525_v36 = vsel %vm490_vm4, %v5859_v37, %v5050_v47  ;;  %v1550_v60 = vmul.f32 %v1537_v61, %v5857_v49  ;;  %v1560_v52 = vpack.c.bf16 %v1552_v2, %v1548_v58 }
 0x368   :  { %1842 = vmatpush1.bf16.msra.mxu0 %v1487_v31  ;;  %2450 = vperm.xlu0 %3157, %v2436_v57   ;;  %v1557_v53 = vpack.c.bf16 %v1545_v6, %v1541_v19  ;;  %v1547_v24 = vmul.f32 %v1533_v13, %v5856_v29  ;;  %v1553_v16 = vmul.f32 %v1526_v32, %v5861_v23  ;;  %v5864_v31 = vld [vmem:[#allocation13_spill] sm:$0xff] }
 0x369   :  { %1843 = vmatprep.subr.bf16.mxu0 %v1556_v39  ;;  %v1562_v22 = vpack.c.bf16 %v1554_v4, %v1550_v60  ;;  %v1549_v47 = vmul.f32 %v1525_v36, %v5861_v23  ;;  %v1603_v63 = vsel %vm586_vm5, %v5094_v25, %v1572_v12 }
 0x36a   :  { %1948 = vmatpush1.bf16.msra.mxu1 %v1489_v51  ;;  %2455 = vperm.xlu1 %3158, %v2437_v40   ;;  %v1574_v0 = vpop.permute.xlu0 %1573  ;;  %v1559_v27 = vpack.c.bf16 %v1551_v62, %v1547_v24  ;;  %v1611_v54 = vmul.f32 %v1603_v63, %v5863_v10  ;;  %v5867_v63 = vld [vmem:[#allocation16_spill] sm:$0xff] }
 0x36b   :  { %1949 = vmatprep.subr.bf16.mxu1 %v1558_v34  ;;  %v1580_v11 = vpop.permute.xlu1 %1579  ;;  %v1604_v45 = vsel %vm586_vm5, %v1566_v46, %v1574_v0  ;;  %v1561_v56 = vpack.c.bf16 %v1553_v16, %v1549_v47 }
 0x36c   :  { %1844 = vmatpush1.bf16.msra.mxu0 %v1555_v43  ;;  %v1599_v55 = vsel %vm586_vm5, %v1572_v12, %v1580_v11  ;;  %v1615_v1 = vmul.f32 %v1604_v45, %v5863_v10 }
 0x36d   :  { %1845 = vmatprep.subr.bf16.mxu0 %v1560_v52  ;;  %v1612_v8 = vmul.f32 %v1599_v55, %v5864_v31 }
 0x36e   :  { %1950 = vmatpush1.bf16.msra.mxu1 %v1557_v53  ;;  %v1582_v5 = vpop.permute.xlu0 %1581  ;;  %v1627_v49 = vpack.c.bf16 %v1615_v1, %v1611_v54  ;;  %v5868_v1 = vld [vmem:[#allocation17_spill] sm:$0xff] }
 0x36f   :  { %1951 = vmatprep.subr.bf16.mxu1 %v1562_v22  ;;  %v1600_v7 = vsel %vm586_vm5, %v1574_v0, %v1582_v5  ;;  %v1588_v48 = vpop.permute.xlu1 %1587 }
 0x370   :  { %1846 = vmatpush1.bf16.msra.mxu0 %v1559_v27  ;;  %v1616_v50 = vmul.f32 %v1600_v7, %v5864_v31  ;;  %v1595_v3 = vsel %vm586_vm5, %v1580_v11, %v1588_v48  ;;  %v1607_v51 = vsel %vm586_vm5, %v1588_v48, %v5094_v25 }
 0x371   :  { %v1613_v21 = vmul.f32 %v1595_v3, %v5865_v33  ;;  %v1614_v14 = vmul.f32 %v1607_v51, %v5866_v26 }
 0x372   :  { %1952 = vmatpush1.bf16.msra.mxu1 %v1561_v56  ;;  %v1590_v29 = vpop.permute.xlu0 %1589  ;;  %v1628_v9 = vpack.c.bf16 %v1616_v50, %v1612_v8 }
 0x373   :  { %v1596_v17 = vsel %vm586_vm5, %v1582_v5, %v1590_v29  ;;  %v1608_v28 = vsel %vm586_vm5, %v1590_v29, %v1566_v46  ;;  %v1568_v30 = vpop.permute.xlu1 %1567 }
 0x374   :  { %v1617_v44 = vmul.f32 %v1596_v17, %v5865_v33  ;;  %v1618_v38 = vmul.f32 %v1608_v28, %v5866_v26  ;;  %1847 = vmatprep.subr.bf16.mxu0 %v1628_v9  ;;  %v5869_v17 = vld [vmem:[#allocation18_spill] sm:$0xff] }
 0x375   :  { %1848 = vmatpush1.bf16.msra.mxu0 %v1627_v49 }
 0x376   :  { %v1629_v25 = vpack.c.bf16 %v1617_v44, %v1613_v21  ;;  %v1570_v41 = vpop.permute.xlu0 %1569  ;;  %v1630_v37 = vpack.c.bf16 %v1618_v38, %v1614_v14 }
 0x377   :  { %v1576_v42 = vpop.permute.xlu1 %1575 }
 0x378   :  { %1953 = vmatprep.subr.bf16.mxu1 %v1630_v37  ;;  %v1605_v35 = vsel %vm586_vm5, %v1568_v30, %v1576_v42 }
 0x379   :  { %1954 = vmatpush1.bf16.msra.mxu1 %v1629_v25  ;;  %v1619_v61 = vmul.f32 %v1605_v35, %v5863_v10 }
 0x37a   :  { %v1578_v59 = vpop.permute.xlu0 %1577 }
 0x37b   :  { %v1584_v20 = vpop.permute.xlu1 %1583  ;;  %v1606_v46 = vsel %vm586_vm5, %v1570_v41, %v1578_v59 }
 0x37c   :  { %v1601_v57 = vsel %vm586_vm5, %v1576_v42, %v1584_v20  ;;  %v1623_v39 = vmul.f32 %v1606_v46, %v5863_v10 }
 0x37d   :  { %v1620_v15 = vmul.f32 %v1601_v57, %v5864_v31 }
 0x37e   :  { %v1586_v2 = vpop.permute.xlu0 %1585  ;;  %v1631_v32 = vpack.c.bf16 %v1623_v39, %v1619_v61 }
 0x37f   :  { %v1602_v23 = vsel %vm586_vm5, %v1578_v59, %v1586_v2  ;;  %v1592_v6 = vpop.permute.xlu1 %1591 }
 0x380   :  { %v1624_v13 = vmul.f32 %v1602_v23, %v5864_v31  ;;  %v1597_v12 = vsel %vm586_vm5, %v1584_v20, %v1592_v6  ;;  %v1609_v40 = vsel %vm586_vm5, %v1592_v6, %v1568_v30  ;;  %v5870_v30 = vld [vmem:[#allocation19_spill] sm:$0xff] }
 0x381   :  { %v1621_v62 = vmul.f32 %v1597_v12, %v5865_v33  ;;  %v1622_v36 = vmul.f32 %v1609_v40, %v5866_v26 }
 0x382   :  { %v1594_v34 = vpop.permute.xlu0 %1593  ;;  %v1632_v58 = vpack.c.bf16 %v1624_v13, %v1620_v15 }
 0x383   :  { %v1598_v4 = vsel %vm586_vm5, %v1586_v2, %v1594_v34  ;;  %v1610_v43 = vsel %vm586_vm5, %v1594_v34, %v1570_v41  ;;  %v1636_v19 = vpop.permute.xlu1 %1635 }
 0x384   :  { %v1625_v60 = vmul.f32 %v1598_v4, %v5865_v33  ;;  %v1626_v0 = vmul.f32 %v1610_v43, %v5866_v26  ;;  %1849 = vmatprep.subr.bf16.mxu0 %v1632_v58 }
 0x385   :  { %1850 = vmatpush1.bf16.msra.mxu0 %v1631_v32 }
 0x386   :  { %v1633_v52 = vpack.c.bf16 %v1625_v60, %v1621_v62  ;;  %v1638_v53 = vpop.permute.xlu0 %1637  ;;  %v1634_v24 = vpack.c.bf16 %v1626_v0, %v1622_v36  ;;  %v3167_v36 = vld [vmem:[%s5690_s5] ss:$12 sps:$4 sm:$0xff]   ;;  %v3170_v60 = vld [vmem:[%s5690_s5 + $0x1c] ss:$12 sps:$4 sm:$0xff]  }
 0x387   :  { %v1644_v16 = vpop.permute.xlu1 %1643 }
 0x388   :  { %1955 = vmatprep.subr.bf16.mxu1 %v1634_v24  ;;  %v1675_v47 = vsel %vm682_vm6, %v1636_v19, %v1644_v16 }
 0x389   :  { %1956 = vmatpush1.bf16.msra.mxu1 %v1633_v52  ;;  %v1683_v31 = vmul.f32 %v1675_v47, %v5867_v63 }
 0x38a   :  { %v1646_v11 = vpop.permute.xlu0 %1645 }
 0x38b   :  { %v1652_v45 = vpop.permute.xlu1 %1651  ;;  %v1676_v22 = vsel %vm682_vm6, %v1638_v53, %v1646_v11 }
 0x38c   :  { %v1671_v27 = vsel %vm682_vm6, %v1644_v16, %v1652_v45  ;;  %v1687_v5 = vmul.f32 %v1676_v22, %v5867_v63  ;;  %v3172_v22 = vld [vmem:[%s5690_s5 + $0x18] ss:$12 sps:$4 sm:$0xff]  }
 0x38d   :  { %v1684_v7 = vmul.f32 %v1671_v27, %v5868_v1 }
 0x38e   :  { %v1654_v55 = vpop.permute.xlu0 %1653  ;;  %v1699_v51 = vpack.c.bf16 %v1687_v5, %v1683_v31 }
 0x38f   :  { %v1672_v56 = vsel %vm682_vm6, %v1646_v11, %v1654_v55  ;;  %v1660_v10 = vpop.permute.xlu1 %1659 }
 0x390   :  { %v1688_v48 = vmul.f32 %v1672_v56, %v5868_v1  ;;  %v1667_v8 = vsel %vm682_vm6, %v1652_v45, %v1660_v10  ;;  %v1679_v50 = vsel %vm682_vm6, %v1660_v10, %v1636_v19 }
 0x391   :  { %v1685_v28 = vmul.f32 %v1667_v8, %v5869_v17  ;;  %v1686_v33 = vmul.f32 %v1679_v50, %v5870_v30 }
 0x392   :  { %v1662_v54 = vpop.permute.xlu0 %1661  ;;  %v1700_v3 = vpack.c.bf16 %v1688_v48, %v1684_v7 }
 0x393   :  { %v1668_v29 = vsel %vm682_vm6, %v1654_v55, %v1662_v54  ;;  %v1680_v9 = vsel %vm682_vm6, %v1662_v54, %v1638_v53  ;;  %v1640_v49 = vpop.permute.xlu1 %1639  ;;  %v5873_v54 = vmov 0  }
 0x394   :  { %v1689_v21 = vmul.f32 %v1668_v29, %v5869_v17  ;;  %v1690_v26 = vmul.f32 %v1680_v9, %v5870_v30  ;;  %1851 = vmatprep.subr.bf16.mxu0 %v1700_v3  ;;  %v5874_v9 = vld [vmem:[#allocation22_spill] sm:$0xff] }
 0x395   :  { %1852 = vmatpush1.bf16.msra.mxu0 %v1699_v51 }
 0x396   :  { %v1701_v14 = vpack.c.bf16 %v1689_v21, %v1685_v28  ;;  %v1642_v44 = vpop.permute.xlu0 %1641  ;;  %v1702_v38 = vpack.c.bf16 %v1690_v26, %v1686_v33  ;;  %v5875_v33 = vld [vmem:[#allocation23_spill] sm:$0xff] }
 0x397   :  { %v1648_v25 = vpop.permute.xlu1 %1647 }
 0x398   :  { %1957 = vmatprep.subr.bf16.mxu1 %v1702_v38  ;;  %v1677_v20 = vsel %vm682_vm6, %v1640_v49, %v1648_v25 }
 0x399   :  { %1958 = vmatpush1.bf16.msra.mxu1 %v1701_v14  ;;  %v1691_v6 = vmul.f32 %v1677_v20, %v5867_v63 }
 0x39a   :  { %v1650_v41 = vpop.permute.xlu0 %1649 }
 0x39b   :  { %v1656_v37 = vpop.permute.xlu1 %1655  ;;  %v1678_v42 = vsel %vm682_vm6, %v1642_v44, %v1650_v41 }
 0x39c   :  { %v1673_v59 = vsel %vm682_vm6, %v1648_v25, %v1656_v37  ;;  %v1695_v57 = vmul.f32 %v1678_v42, %v5867_v63  ;;  %v5871_v63 = vld [vmem:[#allocation20_spill] sm:$0xff] }
 0x39d   :  { %v1692_v39 = vmul.f32 %v1673_v59, %v5868_v1 }
 0x39e   :  { %v1658_v46 = vpop.permute.xlu0 %1657  ;;  %v1703_v40 = vpack.c.bf16 %v1695_v57, %v1691_v6  ;;  %v2132_v6 = vld [vmem:[%s5693_s8 + $0x88] sm:$0xff] }
 0x39f   :  { %v1674_v35 = vsel %vm682_vm6, %v1650_v41, %v1658_v46  ;;  %v1664_v2 = vpop.permute.xlu1 %1663 }
 0x3a0   :  { %v1696_v23 = vmul.f32 %v1674_v35, %v5868_v1  ;;  %v1669_v15 = vsel %vm682_vm6, %v1656_v37, %v1664_v2  ;;  %v1681_v13 = vsel %vm682_vm6, %v1664_v2, %v1640_v49  ;;  %v5872_v1 = vld [vmem:[#allocation21_spill] sm:$0xff] }
 0x3a1   :  { %v1693_v4 = vmul.f32 %v1669_v15, %v5869_v17  ;;  %v1694_v43 = vmul.f32 %v1681_v13, %v5870_v30 }
 0x3a2   :  { %v1666_v61 = vpop.permute.xlu0 %1665  ;;  %v1704_v12 = vpack.c.bf16 %v1696_v23, %v1692_v39  ;;  %v2131_v23 = vld [vmem:[%s5693_s8 + $0x80] sm:$0xff] }
 0x3a3   :  { %v1670_v34 = vsel %vm682_vm6, %v1658_v46, %v1666_v61  ;;  %v1682_v58 = vsel %vm682_vm6, %v1666_v61, %v1642_v44  ;;  %v1708_v32 = vpop.permute.xlu1 %1707 }
 0x3a4   :  { %v1697_v19 = vmul.f32 %v1670_v34, %v5869_v17  ;;  %v1698_v62 = vmul.f32 %v1682_v58, %v5870_v30  ;;  %1853 = vmatprep.subr.bf16.mxu0 %v1704_v12 }
 0x3a5   :  { %1854 = vmatpush1.bf16.msra.mxu0 %v1703_v40 }
 0x3a6   :  { %v1705_v0 = vpack.c.bf16 %v1697_v19, %v1693_v4  ;;  %v1710_v52 = vpop.permute.xlu0 %1709  ;;  %v1706_v53 = vpack.c.bf16 %v1698_v62, %v1694_v43  ;;  %v2115_v4 = vld [vmem:[%s5693_s8] sm:$0xff] }
 0x3a7   :  { %v1716_v24 = vpop.permute.xlu1 %1715 }
 0x3a8   :  { %1959 = vmatprep.subr.bf16.mxu1 %v1706_v53  ;;  %1856 = vmatmul.mubr.bf16.vlgmr.msra.gmra.mrb[8].mxu0 %v3167_v36  ;;  %v1747_v47 = vsel %vm778_vm7, %v1708_v32, %v1716_v24 }
 0x3a9   :  { %1960 = vmatpush1.bf16.msra.mxu1 %v1705_v0  ;;  %1865 = vmatprep.mubr.bf16.mxu0 %v3170_v60  ;;  %v1755_v8 = vmul.f32 %v1747_v47, %v5871_v63  ;;  %v2164_v0 = vld [vmem:[%s5693_s8 + $0x188] sm:$0xff] }
 0x3aa   :  { %v1718_v16 = vpop.permute.xlu0 %1717 }
 0x3ab   :  { %v1724_v11 = vpop.permute.xlu1 %1723  ;;  %v1748_v45 = vsel %vm778_vm7, %v1710_v52, %v1718_v16 }
 0x3ac   :  { %1962 = vmatmul.mubr.bf16.vlgmr.msra.gmra.mrb[8].mxu1 %v3167_v36  ;;  %v1743_v27 = vsel %vm778_vm7, %v1716_v24, %v1724_v11  ;;  %v1759_v5 = vmul.f32 %v1748_v45, %v5871_v63  ;;  %v2116_v36 = vld [vmem:[%s5693_s8 + $0x8] sm:$0xff]  ;;  %v2134_v45 = vld [vmem:[%s5693_s8 + $0x98] sm:$0xff] }
 0x3ad   :  { %1971 = vmatprep.mubr.bf16.mxu1 %v3170_v60  ;;  %v1756_v7 = vmul.f32 %v1743_v27, %v5872_v1  ;;  %v2163_v60 = vld [vmem:[%s5693_s8 + $0x180] sm:$0xff]  ;;  %v3041_v47 = vpack.c.bf16 %v2116_v36, %v2115_v4 }
 0x3ae   :  { %v1726_v55 = vpop.permute.xlu0 %1725  ;;  %v1771_v29 = vpack.c.bf16 %v1759_v5, %v1755_v8  ;;  %v2147_v5 = vld [vmem:[%s5693_s8 + $0x100] sm:$0xff]  ;;  %v2136_v8 = vld [vmem:[%s5693_s8 + $0xa8] sm:$0xff] }
 0x3af   :  { %v1744_v56 = vsel %vm778_vm7, %v1718_v16, %v1726_v55  ;;  %v1732_v10 = vpop.permute.xlu1 %1731  ;;  %v3173_v16 = vld [vmem:[%s5690_s5 + $0x8] ss:$12 sps:$4 sm:$0xff]   ;;  %v2155_v36 = vld [vmem:[%s5693_s8 + $0x140] sm:$0xff] }
 0x3b0   :  { %v1760_v48 = vmul.f32 %v1744_v56, %v5872_v1  ;;  %v1739_v31 = vsel %vm778_vm7, %v1724_v11, %v1732_v10  ;;  %1866 = vmatmul.mubr.bf16.gmra.mrb[12].mxu0 %v3172_v22  ;;  %v1751_v50 = vsel %vm778_vm7, %v1732_v10, %v1708_v32  ;;  %v3039_v32 = vpack.c.bf16 %v2132_v6, %v2131_v23  ;;  %v2133_v11 = vld [vmem:[%s5693_s8 + $0x90] sm:$0xff]  ;;  %v2148_v56 = vld [vmem:[%s5693_s8 + $0x108] sm:$0xff]  ;;  %v2123_v6 = vld [vmem:[%s5693_s8 + $0x40] sm:$0xff] }
 0x3b1   :  { %1908 = vmatprep.mubr.bf16.mxu0 %v5873_v54  ;;  %v1757_v49 = vmul.f32 %v1739_v31, %v5874_v9  ;;  %v1758_v21 = vmul.f32 %v1751_v50, %v5875_v33  ;;  %v3043_v10 = vpack.c.bf16 %v2134_v45, %v2133_v11  ;;  %v2135_v31 = vld [vmem:[%s5693_s8 + $0xa0] sm:$0xff]  ;;  %v3073_v50 = vpack.c.bf16 %v2148_v56, %v2147_v5  ;;  %v2158_v56 = vld [vmem:[%s5693_s8 + $0x158] sm:$0xff] }
 0x3b2   :  { %v1734_v3 = vpop.permute.xlu0 %1733  ;;  %v1772_v51 = vpack.c.bf16 %v1760_v48, %v1756_v7  ;;  %v2165_v7 = vld [vmem:[%s5693_s8 + $0x190] sm:$0xff]  ;;  %v2166_v48 = vld [vmem:[%s5693_s8 + $0x198] sm:$0xff] }
 0x3b3   :  { %v1740_v17 = vsel %vm778_vm7, %v1726_v55, %v1734_v3  ;;  %v1752_v28 = vsel %vm778_vm7, %v1734_v3, %v1710_v52  ;;  %v1712_v30 = vpop.permute.xlu1 %1711  ;;  %v3071_v55 = vpack.c.bf16 %v2164_v0, %v2163_v60  ;;  %v2156_v60 = vld [vmem:[%s5693_s8 + $0x148] sm:$0xff] }
 0x3b4   :  { %v1761_v26 = vmul.f32 %v1740_v17, %v5874_v9  ;;  %v1762_v14 = vmul.f32 %v1752_v28, %v5875_v33  ;;  %1876 = vmatprep.subr.bf16.mxu0 %v1772_v51  ;;  %1972 = vmatmul.mubr.bf16.gmra.mrb[12].mxu1 %v3172_v22  ;;  %v3075_v51 = vpack.c.bf16 %v2166_v48, %v2165_v7  ;;  %v2120_v28 = vld [vmem:[%s5693_s8 + $0x28] sm:$0xff]  ;;  %v2146_v7 = vld [vmem:[%s5693_s8 + $0xf8] sm:$0xff]  ;;  %v2175_v48 = vld [vmem:[%s5693_s8 + $0x1e0] sm:$0xff] }
 0x3b5   :  { %1877 = vmatpush1.bf16.msra.mxu0 %v1771_v29  ;;  %2014 = vmatprep.mubr.bf16.mxu1 %v5873_v54  ;;  %v2119_v29 = vld [vmem:[%s5693_s8 + $0x20] sm:$0xff]  ;;  %v3047_v17 = vpack.c.bf16 %v2136_v8, %v2135_v31  ;;  %v3089_v11 = vpack.c.bf16 %v2156_v60, %v2155_v36  ;;  %v2176_v8 = vld [vmem:[%s5693_s8 + $0x1e8] sm:$0xff] }
 0x3b6   :  { %v1773_v44 = vpack.c.bf16 %v1761_v26, %v1757_v49  ;;  %v1714_v38 = vpop.permute.xlu0 %1713  ;;  %v1774_v25 = vpack.c.bf16 %v1762_v14, %v1758_v21  ;;  %v2150_v49 = vld [vmem:[%s5693_s8 + $0x118] sm:$0xff]  ;;  %v3174_v21 = vld [vmem:[%s5690_s5 + $0x20] ss:$12 sps:$4 sm:$0xff]   ;;  %v2137_v26 = vld [vmem:[%s5693_s8 + $0xb0] sm:$0xff] }
 0x3b7   :  { %v1720_v41 = vpop.permute.xlu1 %1719  ;;  %v2138_v14 = vld [vmem:[%s5693_s8 + $0xb8] sm:$0xff] }
 0x3b8   :  { %1982 = vmatprep.subr.bf16.mxu1 %v1774_v25  ;;  %v1749_v46 = vsel %vm778_vm7, %v1712_v30, %v1720_v41 }
 0x3b9   :  { %1983 = vmatpush1.bf16.msra.mxu1 %v1773_v44  ;;  %v1763_v61 = vmul.f32 %v1749_v46, %v5871_v63  ;;  %v2170_v46 = vld [vmem:[%s5693_s8 + $0x1b8] sm:$0xff] }
 0x3ba   :  { %v1722_v37 = vpop.permute.xlu0 %1721 }
 0x3bb   :  { %v1728_v42 = vpop.permute.xlu1 %1727  ;;  %v1750_v59 = vsel %vm778_vm7, %v1714_v38, %v1722_v37 }
 0x3bc   :  { %v1745_v20 = vsel %vm778_vm7, %v1720_v41, %v1728_v42  ;;  %v1767_v35 = vmul.f32 %v1750_v59, %v5871_v63  ;;  %v2117_v63 = vld [vmem:[%s5693_s8 + $0x10] sm:$0xff]  ;;  %v2122_v59 = vld [vmem:[%s5693_s8 + $0x38] sm:$0xff] }
 0x3bd   :  { %v1764_v15 = vmul.f32 %v1745_v20, %v5872_v1  ;;  %v2121_v41 = vld [vmem:[%s5693_s8 + $0x30] sm:$0xff] }
 0x3be   :  { %v1730_v57 = vpop.permute.xlu0 %1729  ;;  %v1775_v43 = vpack.c.bf16 %v1767_v35, %v1763_v61  ;;  %v2169_v20 = vld [vmem:[%s5693_s8 + $0x1b0] sm:$0xff]  ;;  %v2140_v35 = vld [vmem:[%s5693_s8 + $0xc8] sm:$0xff] }
 0x3bf   :  { %v1746_v2 = vsel %vm778_vm7, %v1722_v37, %v1730_v57  ;;  %v1736_v39 = vpop.permute.xlu1 %1735  ;;  %v2151_v37 = vld [vmem:[%s5693_s8 + $0x120] sm:$0xff]  ;;  %v3083_v23 = vpack.c.bf16 %v2170_v46, %v2169_v20 }
 0x3c0   :  { %v1768_v13 = vmul.f32 %v1746_v2, %v5872_v1  ;;  %v1741_v12 = vsel %vm778_vm7, %v1728_v42, %v1736_v39  ;;  %v1753_v40 = vsel %vm778_vm7, %v1736_v39, %v1712_v30  ;;  %v2118_v1 = vld [vmem:[%s5693_s8 + $0x18] sm:$0xff]  ;;  %v2167_v30 = vld [vmem:[%s5693_s8 + $0x1a0] sm:$0xff]  ;;  %v2152_v42 = vld [vmem:[%s5693_s8 + $0x128] sm:$0xff]  ;;  %v3053_v39 = vpack.c.bf16 %v2122_v59, %v2121_v41 }
 0x3c1   :  { %v1765_v52 = vmul.f32 %v1741_v12, %v5874_v9  ;;  %v1766_v53 = vmul.f32 %v1753_v40, %v5875_v33  ;;  %v3045_v3 = vpack.c.bf16 %v2118_v1, %v2117_v63  ;;  %v3081_v2 = vpack.c.bf16 %v2152_v42, %v2151_v37  ;;  %v2124_v12 = vld [vmem:[%s5693_s8 + $0x48] sm:$0xff]  ;;  %v2171_v40 = vld [vmem:[%s5693_s8 + $0x1c0] sm:$0xff]  ;;  %v2157_v63 = vld [vmem:[%s5693_s8 + $0x150] sm:$0xff] }
 0x3c2   :  { %v1738_v34 = vpop.permute.xlu0 %1737  ;;  %v1776_v58 = vpack.c.bf16 %v1768_v13, %v1764_v15  ;;  %v2153_v15 = vld [vmem:[%s5693_s8 + $0x130] sm:$0xff]  ;;  %v2154_v13 = vld [vmem:[%s5693_s8 + $0x138] sm:$0xff] }
 0x3c3   :  { %v1742_v19 = vsel %vm778_vm7, %v1730_v57, %v1738_v34  ;;  %v1754_v62 = vsel %vm778_vm7, %v1738_v34, %v1714_v38  ;;  %v3049_v38 = vpack.c.bf16 %v2120_v28, %v2119_v29  ;;  %v2139_v57 = vld [vmem:[%s5693_s8 + $0xc0] sm:$0xff]  ;;  %v2172_v34 = vld [vmem:[%s5693_s8 + $0x1c8] sm:$0xff]  ;;  %v3085_v4 = vpack.c.bf16 %v2154_v13, %v2153_v15  ;;  %v2145_v1 = vld [vmem:[%s5693_s8 + $0xf0] sm:$0xff] }
 0x3c4   :  { %v1769_v24 = vmul.f32 %v1742_v19, %v5874_v9  ;;  %v1770_v18 = vmul.f32 %v1754_v62, %v5875_v33  ;;  %1878 = vmatprep.subr.bf16.mxu0 %v1776_v58  ;;  %v2149_v9 = vld [vmem:[%s5693_s8 + $0x110] sm:$0xff]  ;;  %v2168_v33 = vld [vmem:[%s5693_s8 + $0x1a8] sm:$0xff]  ;;  %v3055_v61 = vpack.c.bf16 %v2140_v35, %v2139_v57  ;;  %v3087_v19 = vpack.c.bf16 %v2172_v34, %v2171_v40 }
 0x3c5   :  { %1879 = vmatpush1.bf16.msra.mxu0 %v1775_v43  ;;  %v3077_v44 = vpack.c.bf16 %v2150_v49, %v2149_v9  ;;  %v3079_v25 = vpack.c.bf16 %v2168_v33, %v2167_v30  ;;  %v2141_v58 = vld [vmem:[%s5693_s8 + $0xd0] sm:$0xff]  ;;  %v3057_v43 = vpack.c.bf16 %v2124_v12, %v2123_v6  ;;  %v3067_v31 = vpack.c.bf16 %v2146_v7, %v2145_v1  ;;  %v2159_v9 = vld [vmem:[%s5693_s8 + $0x160] sm:$0xff]  ;;  %v2160_v49 = vld [vmem:[%s5693_s8 + $0x168] sm:$0xff] }
 0x3c6   :  { %v1777_v22 = vpack.c.bf16 %v1769_v24, %v1765_v52  ;;  %v1778_v27 = vpack.c.bf16 %v1770_v18, %v1766_v53  ;;  %3040 = vmatprep.subr.bf16.mxu0 %v3039_v32  ;;  %v2142_v32 = vld [vmem:[%s5693_s8 + $0xd8] sm:$0xff]  ;;  %v2125_v62 = vld [vmem:[%s5693_s8 + $0x50] sm:$0xff]  ;;  %v2143_v18 = vld [vmem:[%s5693_s8 + $0xe0] sm:$0xff] }
 0x3c7   :  { %v3059_v0 = vpack.c.bf16 %v2142_v32, %v2141_v58  ;;  %v2126_v52 = vld [vmem:[%s5693_s8 + $0x58] sm:$0xff]  ;;  %v2173_v53 = vld [vmem:[%s5693_s8 + $0x1d0] sm:$0xff] }
 0x3c8   :  { %2900 = vmatmul.mubr.msk.bf16.vlgmr.msra.gmra.mrb[8].mxu0 %vm880_vm8, %v3173_v16  ;;  %1984 = vmatprep.subr.bf16.mxu1 %v1778_v27  ;;  %v2174_v24 = vld [vmem:[%s5693_s8 + $0x1d8] sm:$0xff]  ;;  %v3061_v45 = vpack.c.bf16 %v2126_v52, %v2125_v62  ;;  %v2177_v28 = vld [vmem:[%s5693_s8 + $0x1f0] sm:$0xff] }
 0x3c9   :  { %1985 = vmatpush1.bf16.msra.mxu1 %v1777_v22  ;;  %1918 = vmatprep.mubr.bf16.mxu0 %v5873_v54  ;;  %v3091_v22 = vpack.c.bf16 %v2174_v24, %v2173_v53  ;;  %v2178_v30 = vld [vmem:[%s5693_s8 + $0x1f8] sm:$0xff] }
 0x3ca   :  { %3042 = vmatpush3.bf16.msra.mxu0 %v3041_v47  ;;  %3072 = vmatprep.subr.bf16.mxu1 %v3071_v55  ;;  %v2127_v47 = vld [vmem:[%s5693_s8 + $0x60] sm:$0xff]  ;;  %v2128_v55 = vld [vmem:[%s5693_s8 + $0x68] sm:$0xff]  ;;  %v3099_v33 = vpack.c.bf16 %v2178_v30, %v2177_v28 }
 0x3cb   :  { %3044 = vmatprep.subr.bf16.mxu0 %v3043_v10  ;;  %v3065_v5 = vpack.c.bf16 %v2128_v55, %v2127_v47  ;;  %v3093_v10 = vpack.c.bf16 %v2158_v56, %v2157_v63 }
 0x3cc   :  { %2902 = vmatmul.mubr.msk.bf16.vlgmr.msra.gmra.mrb[8].mxu1 %vm880_vm8, %v3173_v16  ;;  %v2144_v16 = vld [vmem:[%s5693_s8 + $0xe8] sm:$0xff] }
 0x3cd   :  { %2024 = vmatprep.mubr.bf16.mxu1 %v5873_v54  ;;  %3074 = vmatpush3.bf16.msra.mxu1 %v3073_v50  ;;  %v3051_v54 = vpack.c.bf16 %v2138_v14, %v2137_v26  ;;  %v3063_v27 = vpack.c.bf16 %v2144_v16, %v2143_v18  ;;  %v2129_v50 = vld [vmem:[%s5693_s8 + $0x70] sm:$0xff]  ;;  %v2162_v26 = vld [vmem:[%s5693_s8 + $0x178] sm:$0xff] }
 0x3ce   :  { %3046 = vmatpush3.bf16.msra.mxu0 %v3045_v3  ;;  %3076 = vmatprep.subr.bf16.mxu1 %v3075_v51  ;;  %v2130_v3 = vld [vmem:[%s5693_s8 + $0x78] sm:$0xff]  ;;  %v3095_v51 = vpack.c.bf16 %v2176_v8, %v2175_v48 }
 0x3cf   :  { %3048 = vmatprep.subr.bf16.mxu0 %v3047_v17  ;;  %v3069_v29 = vpack.c.bf16 %v2130_v3, %v2129_v50  ;;  %v3097_v17 = vpack.c.bf16 %v2160_v49, %v2159_v9  ;;  %v3241_v49 = vmov 0.0|0.0  }
 0x3d0   :  { %2901 = vmatmul.mubr.msk.bf16.gmra.mrb[12].mxu0 %vm880_vm8, %v3174_v21 }
 0x3d1   :  { %3078 = vmatpush3.bf16.msra.mxu1 %v3077_v44  ;;  %v2042_v44 = vpop.permute.xlu1 %2041 }
 0x3d2   :  { %3050 = vmatpush3.bf16.msra.mxu0 %v3049_v38  ;;  %3080 = vmatprep.subr.bf16.mxu1 %v3079_v25 }
 0x3d3   :  { %3052 = vmatprep.subr.bf16.mxu0 %v3051_v54  ;;  %v2082_v38 = vpop.permute.xlu0 %2081 }
 0x3d4   :  { %2903 = vmatmul.mubr.msk.bf16.gmra.mrb[12].mxu1 %vm880_vm8, %v3174_v21  ;;  %v2161_v21 = vld [vmem:[%s5693_s8 + $0x170] sm:$0xff] }
 0x3d5   :  { %3082 = vmatpush3.bf16.msra.mxu1 %v3081_v2  ;;  %v3101_v14 = vpack.c.bf16 %v2162_v26, %v2161_v21  ;;  %v2047_v25 = vpop.permute.xlu1 %2046 }
 0x3d6   :  { %3054 = vmatpush3.bf16.msra.mxu0 %v3053_v39  ;;  %3084 = vmatprep.subr.bf16.mxu1 %v3083_v23 }
 0x3d7   :  { %3056 = vmatprep.subr.bf16.mxu0 %v3055_v61  ;;  %v2087_v37 = vpop.permute.xlu0 %2086 }
 0x3d9   :  { %3086 = vmatpush3.bf16.msra.mxu1 %v3085_v4  ;;  %v2052_v39 = vpop.permute.xlu1 %2051 }
 0x3da   :  { %3058 = vmatpush3.bf16.msra.mxu0 %v3057_v43  ;;  %3088 = vmatprep.subr.bf16.mxu1 %v3087_v19 }
 0x3db   :  { %3060 = vmatprep.subr.bf16.mxu0 %v3059_v0  ;;  %v2092_v34 = vpop.permute.xlu0 %2091 }
 0x3dd   :  { %3090 = vmatpush3.bf16.msra.mxu1 %v3089_v11  ;;  %v2057_v18 = vpop.permute.xlu1 %2056 }
 0x3de   :  { %3062 = vmatpush3.bf16.msra.mxu0 %v3061_v45  ;;  %3092 = vmatprep.subr.bf16.mxu1 %v3091_v22 }
 0x3df   :  { %3064 = vmatprep.subr.bf16.mxu0 %v3063_v27  ;;  %v2097_v27 = vpop.permute.xlu0 %2096 }
 0x3e1   :  { %3094 = vmatpush3.bf16.msra.mxu1 %v3093_v10 }
 0x3e2   :  { %3066 = vmatpush3.bf16.msra.mxu0 %v3065_v5  ;;  %3096 = vmatprep.subr.bf16.mxu1 %v3095_v51 }
 0x3e3   :  { %3068 = vmatprep.subr.bf16.mxu0 %v3067_v31 }
 0x3e5   :  { %3098 = vmatpush3.bf16.msra.mxu1 %v3097_v17  ;;  %v3243_v17 = vmov 0.0  }
 0x3e6   :  { %3070 = vmatpush3.bf16.msra.mxu0 %v3069_v29  ;;  %3100 = vmatprep.subr.bf16.mxu1 %v3099_v33 }
 0x3e7   :  { %3103 = vmatprep.subr.bf16.mxu0 %v3241_v49 }
 0x3e9   :  { %3102 = vmatpush3.bf16.msra.mxu1 %v3101_v14 }
 0x49b   :  { %v1910_v41 = vpop.f32.mrb[8].mxu0 }
 0x49c   :  { %v2059_v42 = vmul.f32 %v2042_v44, %v1910_v41  ;;  %v1912_v54 = vpop.f32.mrb[9].mxu0 }
 0x49d   :  { %v2060_v59 = vmul.f32 %v2042_v44, %v1912_v54  ;;  %v1914_v20 = vpop.f32.mrb[10].mxu0 }
 0x49e   :  { %v1916_v46 = vpop.f32.mrb[11].mxu0  ;;  %v5516_v23 = vadd.f32 %v2082_v38, %v2059_v42  ;;  %v2063_v6 = vmul.f32 %v2047_v25, %v1914_v20 }
 0x49f   :  { %v5514_v57 = vadd.f32 %v2082_v38, %v2060_v59  ;;  %v2064_v35 = vmul.f32 %v2047_v25, %v1916_v46  ;;  %v2016_v2 = vpop.f32.mrb[8].mxu1 }
 0x4a0   :  { %v2061_v15 = vmul.f32 %v2042_v44, %v2016_v2  ;;  %v2018_v13 = vpop.f32.mrb[9].mxu1  ;;  %v5525_v19 = vadd.f32 %v2087_v37, %v2063_v6 }
 0x4a1   :  { %v5518_v61 = vadd.f32 %v2087_v37, %v2064_v35  ;;  %v2062_v12 = vmul.f32 %v2042_v44, %v2018_v13  ;;  %v2020_v40 = vpop.f32.mrb[10].mxu1  ;;  %2243 = vmatprep.mubr.f32.mxu0 %v5514_v57 }
 0x4a2   :  { %v2022_v58 = vpop.f32.mrb[11].mxu1  ;;  %2244 = vmatmul.mubr.f32.vlgmr.msra.gmra.mrb[16].mxu0 %v5516_v23  ;;  %v5527_v62 = vadd.f32 %v2082_v38, %v2061_v15  ;;  %v2065_v36 = vmul.f32 %v2047_v25, %v2020_v40 }
 0x4a3   :  { %v5522_v32 = vadd.f32 %v2082_v38, %v2062_v12  ;;  %v2066_v4 = vmul.f32 %v2047_v25, %v2022_v58  ;;  %v1920_v43 = vpop.f32.mrb[12].mxu0  ;;  %2248 = vmatprep.mubr.f32.mxu0 %v5518_v61 }
 0x4a4   :  { %v2067_v60 = vmul.f32 %v2052_v39, %v1920_v43  ;;  %v1922_v0 = vpop.f32.mrb[13].mxu0  ;;  %v5537_v47 = vadd.f32 %v2087_v37, %v2065_v36 }
 0x4a5   :  { %v5529_v52 = vadd.f32 %v2087_v37, %v2066_v4  ;;  %v2068_v53 = vmul.f32 %v2052_v39, %v1922_v0  ;;  %v1924_v24 = vpop.f32.mrb[14].mxu0  ;;  %2328 = vmatprep.mubr.f32.mxu1 %v5522_v32  ;;  %v2349_v0 = vld [vmem:[%s5695_s10] sm:$0x3] }
 0x4a6   :  { %v1926_v16 = vpop.f32.mrb[15].mxu0  ;;  %2249 = vmatmul.mubr.f32.gmra.mrb[18].mxu0 %v5525_v19  ;;  %2329 = vmatmul.mubr.f32.vlgmr.msra.gmra.mrb[16].mxu1 %v5527_v62  ;;  %v5539_v55 = vadd.f32 %v2092_v34, %v2067_v60  ;;  %v2071_v63 = vmul.f32 %v2057_v18, %v1924_v24  ;;  %v2354_v24 = vpop.permute.xlu1 %2353 }
 0x4a7   :  { %v5534_v11 = vadd.f32 %v2092_v34, %v2068_v53  ;;  %v2072_v45 = vmul.f32 %v2057_v18, %v1926_v16  ;;  %v2026_v22 = vpop.f32.mrb[12].mxu1  ;;  %2333 = vmatprep.mubr.f32.mxu1 %v5529_v52  ;;  %v2430_v53 = vld [vmem:[%s5697_s12] sm:$0xff] }
 0x4a8   :  { %v2069_v5 = vmul.f32 %v2052_v39, %v2026_v22  ;;  %v2028_v56 = vpop.f32.mrb[13].mxu1  ;;  %v5549_v50 = vadd.f32 %v2097_v27, %v2071_v63  ;;  %v2432_v63 = vld [vmem:[%s5697_s12 + $0x10] sm:$0xff] }
 0x4a9   :  { %v5541_v10 = vadd.f32 %v2097_v27, %v2072_v45  ;;  %v2070_v1 = vmul.f32 %v2052_v39, %v2028_v56  ;;  %v2030_v7 = vpop.f32.mrb[14].mxu1  ;;  %2253 = vmatprep.mubr.f32.mxu0 %v5534_v11  ;;  %v3244_v56 = vmov 1983009808  }
 0x4aa   :  { %v2032_v48 = vpop.f32.mrb[15].mxu1  ;;  %2254 = vmatmul.mubr.f32.gmra.mrb[20].mxu0 %v5539_v55  ;;  %2334 = vmatmul.mubr.f32.gmra.mrb[18].mxu1 %v5537_v47  ;;  %v5551_v3 = vadd.f32 %v2092_v34, %v2069_v5  ;;  %v2073_v51 = vmul.f32 %v2057_v18, %v2030_v7  ;;  %v2433_v5 = vld [vmem:[%s5697_s12 + $0x18] sm:$0xff] }
 0x4ab   :  { %v5546_v31 = vadd.f32 %v2092_v34, %v2070_v1  ;;  %v2074_v8 = vmul.f32 %v2057_v18, %v2032_v48  ;;  %2258 = vmatprep.mubr.f32.mxu0 %v5541_v10  ;;  %v2584_v1 = vunpack.c.l.s4 %v3244_v56  ;;  %v2580_v48 = vld [vmem:[%s5694_s9] sm:$0xff] }
 0x4ac   :  { %v5559_v9 = vadd.f32 %v2097_v27, %v2073_v51 }
 0x4ad   :  { %v5553_v29 = vadd.f32 %v2097_v27, %v2074_v8  ;;  %2338 = vmatprep.mubr.f32.mxu1 %v5546_v31  ;;  %v2431_v27 = vld [vmem:[%s5697_s12 + $0x8] sm:$0xff]  ;;  %v2585_v7 = vunpack.c.0.s8 %v2584_v1  ;;  %v5876_v8 = vld [vmem:[#allocation5_spill] sm:$0xff] }
 0x4ae   :  { %2259 = vmatmul.mubr.f32.gmra.mrb[22].mxu0 %v5549_v50  ;;  %2339 = vmatmul.mubr.f32.gmra.mrb[20].mxu1 %v5551_v3 }
 0x4af   :  { %2343 = vmatprep.mubr.f32.mxu1 %v5553_v29  ;;  %3028 = vmatprep.mubr.msk.f32.mxu0 %vm3242_vm9, %v3243_v17  ;;  %v2588_v51 = vsub.s32 %v2585_v7, %v5876_v8 }
 0x4b2   :  { %2344 = vmatmul.mubr.f32.gmra.mrb[22].mxu1 %v5559_v9 }
 0x4b3   :  { %3033 = vmatprep.mubr.msk.f32.mxu1 %vm2458_vm10, %v2430_v53 }
 0x575   :  { %v2954_v28 = vpop.f32.mrb[16].mxu0 }
 0x576   :  { %v2955_v30 = vpop.f32.mrb[17].mxu0 }
 0x577   :  { %v2956_v33 = vadd.f32 %v2955_v30, %v2954_v28  ;;  %v2589_v28 = vrot.slane %v2580_v48, %v2588_v51 }
 0x579   :  { %v2957_v21 = vpop.f32.mrb[18].mxu0  ;;  %v2998_v26 = vpop.f32.mrb[16].mxu1 }
 0x57a   :  { %v2958_v14 = vpop.f32.mrb[19].mxu0  ;;  %v2999_v44 = vpop.f32.mrb[17].mxu1 }
 0x57b   :  { %v2959_v38 = vadd.f32 %v2958_v14, %v2957_v21  ;;  %v3000_v25 = vadd.f32 %v2999_v44, %v2998_v26  ;;  %v2446_v26 = vpop.permute.xlu1 %2445  ;;  %v2441_v14 = vpop.permute.xlu0 %2440 }
 0x57d   :  { %v2331_v41 = vadd.f32 %v3000_v25, %v2956_v33  ;;  %v2960_v37 = vpop.f32.mrb[20].mxu0  ;;  %v3001_v42 = vpop.f32.mrb[18].mxu1  ;;  %v2597_v33 = vcombine.high %v2589_v28, %v2589_v28 }
 0x57e   :  { %v2961_v54 = vpop.f32.mrb[21].mxu0  ;;  %v3002_v59 = vpop.f32.mrb[19].mxu1 }
 0x57f   :  { %v2962_v20 = vadd.f32 %v2961_v54, %v2960_v37  ;;  %v3003_v46 = vadd.f32 %v3002_v59, %v3001_v42  ;;  %v2456_v42 = vpop.permute.xlu1 %2455 }
 0x581   :  { %v2336_v35 = vadd.f32 %v3003_v46, %v2959_v38  ;;  %v2963_v2 = vpop.f32.mrb[22].mxu0  ;;  %v3004_v39 = vpop.f32.mrb[20].mxu1 }
 0x582   :  { %v2964_v6 = vpop.f32.mrb[23].mxu0  ;;  %v3005_v15 = vpop.f32.mrb[21].mxu1 }
 0x583   :  { %v3104_v13 = vpack.c.bf16 %v2336_v35, %v2331_v41  ;;  %v2965_v12 = vadd.f32 %v2964_v6, %v2963_v2  ;;  %v3006_v40 = vadd.f32 %v3005_v15, %v3004_v39 }
 0x585   :  { %v2341_v34 = vadd.f32 %v3006_v40, %v2962_v20  ;;  %v3007_v58 = vpop.f32.mrb[22].mxu1  ;;  %3105 = vmatpush3.bf16.msra.mxu0 %v3104_v13  ;;  %v2451_v20 = vpop.permute.xlu0 %2450 }
 0x586   :  { %v3008_v4 = vpop.f32.mrb[23].mxu1  ;;  %3106 = vmatprep.subr.bf16.mxu0 %v3241_v49  ;;  %v2582_v49 = vcombine.high %v2580_v48, %v2580_v48 }
 0x587   :  { %v3009_v43 = vadd.f32 %v3008_v4, %v3007_v58 }
 0x588   :  { %v2596_v30 = vrot.slane %v2582_v49, %v2588_v51  ;;  %v3193_v51 = vld [vmem:[%s5685_s0 + $0x10] sm:$0xff] }
 0x589   :  { %v2346_v36 = vadd.f32 %v3009_v43, %v2965_v12 }
 0x58a   :  { %v2598_v21 = vcombine.high %v2596_v30, %v2596_v30 }
 0x58b   :  { %v3107_v60 = vpack.c.bf16 %v2346_v36, %v2341_v34 }
 0x58d   :  { %3108 = vmatpush3.bf16.msra.mxu0 %v3107_v60 }
 0x58e   :  { %2910 = vmatprep.subr.msk.mxu0 %vm2471_vm11, %v2597_v33 }
 0x590   :  { %3029 = vmatmul.mubr.msk.f32.vlgmr.msra.gmra.mrb[24].mxu0 %vm880_vm8, %v2349_v0 }
 0x591   :  { %2683 = vmatprep.mubr.f32.mxu0 %v3243_v17  ;;  %2911 = vmatpush1.msk.msra.mxu0 %vm2471_vm11, %v2589_v28 }
 0x663   :  { %v2425_v18 = vpop.f32.mrb[24].mxu0 }
 0x664   :  { %v2426_v16 = vadd.f32 %v2425_v18, %v2354_v24  ;;  %v3030_v45 = vpop.f32.mrb[25].mxu0 }
 0x666   :  { %v2429_v22 = vmax.f32 %v2426_v16, 0.0 }
 0x668   :  { %3031 = vmatprep.subr.msk.mxu1 %vm2471_vm11, %v2429_v22 }
 0x669   :  { %3032 = vmatpush3.msk.msra.mxu1 %vm2471_vm11, %v2429_v22 }
 0x66a   :  { %3034 = vmatmul.mubr.msk.f32.vlgmr.msra.gmra.mrb[24].mxu1 %vm2458_vm10, %v2431_v27  ;;  %2916 = vmatprep.subr.msk.mxu1 %vm2471_vm11, %v2598_v21 }
 0x66b   :  { %3036 = vmatprep.mubr.msk.f32.mxu1 %vm2458_vm10, %v2432_v63  ;;  %2917 = vmatpush1.msk.msra.mxu1 %vm2471_vm11, %v2596_v30 }
 0x66e   :  { %3037 = vmatmul.mubr.msk.f32.gmra.mrb[26].mxu1 %vm2458_vm10, %v2433_v5 }
 0x66f   :  { %2772 = vmatprep.mubr.f32.mxu1 %v3243_v17 }
 0x73d   :  { %v3035_v44 = vpop.f32.mrb[24].mxu1 }
 0x73e   :  { %v2547_v38 = vadd.f32 %v3035_v44, %v2446_v26  ;;  %v2541_v25 = vpop.f32.mrb[25].mxu1 }
 0x73f   :  { %v2542_v41 = vadd.f32 %v2541_v25, %v2441_v14 }
 0x740   :  { %v2561_v37 = vsub.f32 0.0, %v2547_v38 }
 0x741   :  { %v2560_v54 = vsub.f32 0.0, %v2542_v41  ;;  %v3038_v59 = vpop.f32.mrb[26].mxu1 }
 0x742   :  { %v2566_v46 = vmul.f32 1.442695, %v2561_v37  ;;  %v2557_v35 = vadd.f32 %v3038_v59, %v2456_v42  ;;  %v2551_v2 = vpop.f32.mrb[27].mxu1 }
 0x743   :  { %v2564_v39 = vmul.f32 1.442695, %v2560_v54  ;;  %v2552_v6 = vadd.f32 %v2551_v2, %v2451_v20  ;;  %v3196_v54 = vld [vmem:[%s5685_s0 + $0x20] sm:$0xff] }
 0x744   :  { %3176 = vpow2.f32 %v2566_v46  ;;  %v2563_v15 = vsub.f32 0.0, %v2557_v35 }
 0x745   :  { %3178 = vpow2.f32 %v2564_v39  ;;  %v2562_v13 = vsub.f32 0.0, %v2552_v6 }
 0x746   :  { %v2570_v40 = vmul.f32 1.442695, %v2563_v15 }
 0x747   :  { %v2568_v12 = vmul.f32 1.442695, %v2562_v13 }
 0x749   :  { %3180 = vpow2.f32 %v2568_v12 }
 0x74a   :  { %3182 = vpow2.f32 %v2570_v40 }
 0x74e   :  { %v3177_v34 = vpop.eup %3176 }
 0x74f   :  { %v3179_v58 = vpop.eup %3178  ;;  %v2573_v43 = vadd.f32 1.0, %v3177_v34 }
 0x750   :  { %v2572_v4 = vadd.f32 1.0, %v3179_v58 }
 0x752   :  { %3184 = vrcp.f32 %v2572_v4 }
 0x753   :  { %v3181_v36 = vpop.eup %3180  ;;  %3186 = vrcp.f32 %v2573_v43 }
 0x754   :  { %v2574_v60 = vadd.f32 1.0, %v3181_v36  ;;  %v3183_v0 = vpop.eup %3182  ;;  %v3200_v36 = vld [vmem:[%s5685_s0 + $0x40] sm:$0xff] }
 0x755   :  { %v2575_v53 = vadd.f32 1.0, %v3183_v0 }
 0x756   :  { %3188 = vrcp.f32 %v2574_v60 }
 0x757   :  { %3190 = vrcp.f32 %v2575_v53 }
 0x75c   :  { %v3185_v24 = vpop.eup %3184 }
 0x75d   :  { %2912 = vmatmul.mubr.msk.f32.vlgmr.msra.gmra.mrb[26].mxu0 %vm2458_vm10, %v3185_v24  ;;  %2918 = vmatmul.mubr.msk.f32.vlgmr.msra.gmra.mrb[28].mxu1 %vm2458_vm10, %v3185_v24  ;;  %v3187_v18 = vpop.eup %3186 }
 0x75e   :  { %2689 = vmatprep.mubr.f32.mxu0 %v3243_v17  ;;  %2778 = vmatprep.mubr.f32.mxu1 %v3243_v17 }
 0x760   :  { %v3189_v16 = vpop.eup %3188 }
 0x761   :  { %2913 = vmatmul.mubr.msk.f32.gmra.mrb[28].mxu0 %vm2458_vm10, %v3187_v18  ;;  %2919 = vmatmul.mubr.msk.f32.gmra.mrb[30].mxu1 %vm2458_vm10, %v3187_v18  ;;  %v3191_v45 = vpop.eup %3190 }
 0x762   :  { %2695 = vmatprep.mubr.f32.mxu0 %v3243_v17  ;;  %2784 = vmatprep.mubr.f32.mxu1 %v3243_v17 }
 0x765   :  { %2914 = vmatmul.mubr.msk.f32.gmra.mrb[30].mxu0 %vm2458_vm10, %v3189_v16  ;;  %2920 = vmatmul.mubr.msk.f32.gmra.mrb[32].mxu1 %vm2458_vm10, %v3189_v16 }
 0x766   :  { %2701 = vmatprep.mubr.f32.mxu0 %v3243_v17  ;;  %2790 = vmatprep.mubr.f32.mxu1 %v3243_v17  ;;  %v3192_v17 = vld [vmem:[%s5685_s0] sm:$0xff] }
 0x769   :  { %2915 = vmatmul.mubr.msk.f32.gmra.mrb[32].mxu0 %vm2458_vm10, %v3191_v45  ;;  %2921 = vmatmul.mubr.msk.f32.gmra.mrb[34].mxu1 %vm2458_vm10, %v3191_v45 }
 0x830   :  { %v2685_v22 = vpop.f32.mrb[26].mxu0  ;;  %v2774_v27 = vpop.f32.mrb[28].mxu1 }
 0x831   :  { %v2797_v63 = vmul.f32 %v2685_v22, %v5516_v23  ;;  %v2799_v5 = vmul.f32 %v2774_v27, %v5527_v62  ;;  %v2687_v56 = vpop.f32.mrb[27].mxu0  ;;  %v2776_v1 = vpop.f32.mrb[29].mxu1  ;;  %v3194_v23 = vld [vmem:[%s5685_s0 + $0x8] sm:$0xff] }
 0x832   :  { %v2798_v7 = vmul.f32 %v2687_v56, %v5514_v57  ;;  %v2800_v48 = vmul.f32 %v2776_v1, %v5522_v32  ;;  %v3195_v57 = vld [vmem:[%s5685_s0 + $0x18] sm:$0xff] }
 0x833   :  { %v2813_v8 = vadd.f32 %v3192_v17, %v2797_v63  ;;  %v2815_v49 = vadd.f32 %v3193_v51, %v2799_v5  ;;  %v3204_v17 = vld [vmem:[%s5685_s0 + $0x60] sm:$0xff]  ;;  %v3207_v51 = vld [vmem:[%s5685_s0 + $0x78] sm:$0xff] }
 0x834   :  { %v2814_v62 = vadd.f32 %v3194_v23, %v2798_v7  ;;  %v2816_v32 = vadd.f32 %v3195_v57, %v2800_v48  ;;  %v2691_v28 = vpop.f32.mrb[28].mxu0  ;;  %v2780_v30 = vpop.f32.mrb[30].mxu1 }
 0x835   :  { %v2829_v33 = vmax.f32 %v2813_v8, 0.0  ;;  %v2831_v21 = vmax.f32 %v2815_v49, 0.0  ;;  %v2801_v26 = vmul.f32 %v2691_v28, %v5525_v19  ;;  %v2803_v14 = vmul.f32 %v2780_v30, %v5537_v47  ;;  %v2693_v44 = vpop.f32.mrb[29].mxu0  ;;  %v2782_v38 = vpop.f32.mrb[31].mxu1  ;;  %v3197_v19 = vld [vmem:[%s5685_s0 + $0x30] sm:$0xff] }
 0x836   :  { %v2830_v25 = vmax.f32 %v2814_v62, 0.0  ;;  %v2832_v41 = vmax.f32 %v2816_v32, 0.0  ;;  %v2802_v37 = vmul.f32 %v2693_v44, %v5518_v61  ;;  %v2804_v42 = vmul.f32 %v2782_v38, %v5529_v52  ;;  %v3198_v61 = vld [vmem:[%s5685_s0 + $0x28] sm:$0xff]  ;;  %v3199_v52 = vld [vmem:[%s5685_s0 + $0x38] sm:$0xff] }
 0x837   :  { %2845 = vst [vmem:[#allocation2] sm:$0xff] %v2829_v33  ;;  %2847 = vst [vmem:[#allocation2 + $0x10] sm:$0xff] %v2831_v21  ;;  %v2817_v59 = vadd.f32 %v3196_v54, %v2801_v26  ;;  %v2819_v47 = vadd.f32 %v3197_v19, %v2803_v14 }
 0x838   :  { %2846 = vst [vmem:[#allocation2 + $0x8] sm:$0xff] %v2830_v25  ;;  %2848 = vst [vmem:[#allocation2 + $0x18] sm:$0xff] %v2832_v41  ;;  %v2818_v20 = vadd.f32 %v3198_v61, %v2802_v37  ;;  %v2820_v46 = vadd.f32 %v3199_v52, %v2804_v42  ;;  %v2697_v35 = vpop.f32.mrb[30].mxu0  ;;  %v2786_v2 = vpop.f32.mrb[32].mxu1 }
 0x839   :  { %v2833_v39 = vmax.f32 %v2817_v59, 0.0  ;;  %v2835_v6 = vmax.f32 %v2819_v47, 0.0  ;;  %v2805_v15 = vmul.f32 %v2697_v35, %v5539_v55  ;;  %v2807_v13 = vmul.f32 %v2786_v2, %v5551_v3  ;;  %v2699_v12 = vpop.f32.mrb[31].mxu0  ;;  %v2788_v40 = vpop.f32.mrb[33].mxu1  ;;  %v3201_v55 = vld [vmem:[%s5685_s0 + $0x50] sm:$0xff] }
 0x83a   :  { %v2834_v34 = vmax.f32 %v2818_v20, 0.0  ;;  %v2836_v58 = vmax.f32 %v2820_v46, 0.0  ;;  %v2806_v4 = vmul.f32 %v2699_v12, %v5534_v11  ;;  %v2808_v43 = vmul.f32 %v2788_v40, %v5546_v31  ;;  %v3202_v11 = vld [vmem:[%s5685_s0 + $0x48] sm:$0xff]  ;;  %v3203_v31 = vld [vmem:[%s5685_s0 + $0x58] sm:$0xff] }
 0x83b   :  { %2849 = vst [vmem:[#allocation2 + $0x20] sm:$0xff] %v2833_v39  ;;  %2851 = vst [vmem:[#allocation2 + $0x30] sm:$0xff] %v2835_v6  ;;  %v2821_v60 = vadd.f32 %v3200_v36, %v2805_v15  ;;  %v2823_v3 = vadd.f32 %v3201_v55, %v2807_v13 }
 0x83c   :  { %2850 = vst [vmem:[#allocation2 + $0x28] sm:$0xff] %v2834_v34  ;;  %2852 = vst [vmem:[#allocation2 + $0x38] sm:$0xff] %v2836_v58  ;;  %v2822_v0 = vadd.f32 %v3202_v11, %v2806_v4  ;;  %v2824_v53 = vadd.f32 %v3203_v31, %v2808_v43  ;;  %v2703_v24 = vpop.f32.mrb[32].mxu0  ;;  %v2792_v18 = vpop.f32.mrb[34].mxu1 }
 0x83d   :  { %v2837_v16 = vmax.f32 %v2821_v60, 0.0  ;;  %v2839_v45 = vmax.f32 %v2823_v3, 0.0  ;;  %v2809_v22 = vmul.f32 %v2703_v24, %v5549_v50  ;;  %v2811_v27 = vmul.f32 %v2792_v18, %v5559_v9  ;;  %v2705_v63 = vpop.f32.mrb[33].mxu0  ;;  %v2794_v5 = vpop.f32.mrb[35].mxu1  ;;  %v3205_v50 = vld [vmem:[%s5685_s0 + $0x70] sm:$0xff] }
 0x83e   :  { %v2838_v56 = vmax.f32 %v2822_v0, 0.0  ;;  %v2840_v1 = vmax.f32 %v2824_v53, 0.0  ;;  %v2810_v7 = vmul.f32 %v2705_v63, %v5541_v10  ;;  %v2812_v48 = vmul.f32 %v2794_v5, %v5553_v29  ;;  %v3206_v10 = vld [vmem:[%s5685_s0 + $0x68] sm:$0xff] }
 0x83f   :  { %2853 = vst [vmem:[#allocation2 + $0x40] sm:$0xff] %v2837_v16  ;;  %2855 = vst [vmem:[#allocation2 + $0x50] sm:$0xff] %v2839_v45  ;;  %v2825_v8 = vadd.f32 %v3204_v17, %v2809_v22  ;;  %v2827_v9 = vadd.f32 %v3205_v50, %v2811_v27 }
 0x840   :  { %2854 = vst [vmem:[#allocation2 + $0x48] sm:$0xff] %v2838_v56  ;;  %2856 = vst [vmem:[#allocation2 + $0x58] sm:$0xff] %v2840_v1  ;;  %v2826_v29 = vadd.f32 %v3206_v10, %v2810_v7  ;;  %v2828_v49 = vadd.f32 %v3207_v51, %v2812_v48 }
 0x841   :  { %v2841_v23 = vmax.f32 %v2825_v8, 0.0  ;;  %v2843_v62 = vmax.f32 %v2827_v9, 0.0 }
 0x842   :  { %v2842_v57 = vmax.f32 %v2826_v29, 0.0  ;;  %v2844_v32 = vmax.f32 %v2828_v49, 0.0 }
 0x843   :  { %2857 = vst [vmem:[#allocation2 + $0x60] sm:$0xff] %v2841_v23  ;;  %2859 = vst [vmem:[#allocation2 + $0x70] sm:$0xff] %v2843_v62 }
 0x844   :  { %2858 = vst [vmem:[#allocation2 + $0x68] sm:$0xff] %v2842_v57  ;;  %2860 = vst [vmem:[#allocation2 + $0x78] sm:$0xff] %v2844_v32 }
 0x845   :  { %3219 = shalt.err (!%p3216_p4)
}
 0x846   :  { %s3220_s0 = scalar_lea.hbm %s5699_s14, 2048 }
 0x847   :  { %p3221_p5 = scmp.ne.s32.totalorder %s5699_s14, %s3220_s0  ;;  %p3224_p6 = scmp.lt.u32.totalorder %s3220_s0, %s5699_s14 }
 0x849   :  { %p3226_p7 = pnand %p3224_p6, %p3221_p5 }
 0x84b   :  { %3229 = shalt.err (!%p3226_p7)
}
 0x84c   :  { %s3246_s1 = smov 512   ;;  %s3247_s4 = smov 32  }
 0x84d   :  { %2872 = dma.vmem_to_hbm [thread:$0]  %s2867_s17, 2048, %s5699_s14, [#allocation3], %s3246_s1, %s3246_s1, %s3247_s4  }
 0x84e   :  { %3230 = dma.done.wait [#allocation3], 2048  }
 0x84f   :  { %3231 = vsyncadd [#allocation3], 4294965248 }
 0x850   :  { %2876 = vsyncpa [#allocation3], 1 }

</bundles_post_ra>
